<compile_context>
chip_gen: v6e
topology: v6e:2x2x1
jax: 0.10.0
libtpu: 0.0.40
codegen_flags: <defaults>
</compile_context>

<pallas_src>
import jax
import jax.numpy as jnp
from jax import lax
from jax.experimental import pallas as pl
from jax.experimental.pallas import tpu as pltpu


def _cls_head_kernel(m_ref, e_ref, s_ref,
                     wm_ref, we_ref, wp_ref, r_ref, b1_ref,
                     w2_ref, b2_ref, w3_ref, b3_ref,
                     o_ref):
    """One batch tile of the classification head.

    m_ref, e_ref : (bm, d)   mention / entity representations (f32)
    s_ref        : (bm, 2)   [md_scores, dis_scores] (f32)
    wm, we, wp   : (d, d)    folded slabs of W1 (compute dtype, bf16 default)
    r_ref        : (2, d)    last two rows of W1 (md / dis contribution), f32
    b1, b2       : (1, d)    f32
    w2_ref       : (d, d)    compute dtype
    w3_ref       : (8, d)    f32; row 0 = W3^T, rows 1..7 zero padding
    b3_ref       : (1, 1)    scalar bias in SMEM
    o_ref        : (1, 1, bm) lane-dense logits for this tile
    """
    cdt = wm_ref.dtype                            # MXU input dtype (bf16 default)
    m32 = m_ref[...]
    e32 = e_ref[...]
    m = m32.astype(cdt)
    e = e32.astype(cdt)
    p = (m32 * e32).astype(cdt)                   # product formed in f32, cast once

    # ---- Linear 1 (folded): 3 MXU matmuls + rank-2 VPU update, f32 accum ----
    h1 = jnp.dot(m, wm_ref[...], preferred_element_type=jnp.float32)
    h1 = h1 + jnp.dot(e, we_ref[...], preferred_element_type=jnp.float32)
    h1 = h1 + jnp.dot(p, wp_ref[...], preferred_element_type=jnp.float32)
    s = s_ref[...]                                # (bm, 2) f32
    r = r_ref[...]                                # (2, d)  f32
    h1 = h1 + s[:, 0:1] * r[0:1, :] + s[:, 1:2] * r[1:2, :]
    h1 = jnp.maximum(h1 + b1_ref[...], 0.0)       # ReLU (Dropout = identity)

    # ---- Linear 2 + ReLU ----
    h2 = jnp.dot(h1.astype(cdt), w2_ref[...], preferred_element_type=jnp.float32)
    h2 = jnp.maximum(h2 + b2_ref[...], 0.0)

    # ---- Linear 3 as a lane-dense row:  W3_rows (8,d) . h2 (bm,d)^T -> (8,bm)
    # Kept in f32 on the validated lowering path; its FLOP count is tiny next
    # to the (d,d) matmuls.  (Review note: if this contraction ever shows a
    # materialized (bm,d) transpose in the MLIR, swap operand order and
    # transpose only the small (bm,8) result instead.)
    logits8 = lax.dot_general(
        w3_ref[...], h2,
        dimension_numbers=(((1,), (1,)), ((), ())),
        preferred_element_type=jnp.float32)
    o_ref[0] = (logits8[0:1, :] + b3_ref[0, 0]).astype(o_ref.dtype)


def _round_up(x, m):
    return ((x + m - 1) // m) * m


def prepare_params(params, *, compute_dtype=jnp.bfloat16):
    """One-time fold of the first Linear around the feature concat.

    Hoisted out of the per-call wrapper so serving-style repeated calls do not
    re-read W1/W2/W3 from HBM or re-run the folding ops.  compute_dtype is the
    MXU input dtype for the (d,d) matmuls (bf16 recommended on all TPU
    generations; accumulation is always f32 inside the kernel).
    """
    w1, b1, w2, b2, w3, b3 = params
    d = w2.shape[0]
    A, B, C, D = w1[0:d], w1[d:2 * d], w1[2 * d:3 * d], w1[3 * d:4 * d]
    wm = (A + C).astype(compute_dtype)                 # multiplies m
    we = (B - C).astype(compute_dtype)                 # multiplies e
    wp = D.astype(compute_dtype)                       # multiplies m * e
    r = w1[4 * d:4 * d + 2].astype(jnp.float32)        # (2, d): md / dis rows
    b1c = jnp.reshape(b1, (1, d)).astype(jnp.float32)
    w2c = w2.astype(compute_dtype)
    b2c = jnp.reshape(b2, (1, d)).astype(jnp.float32)
    w3_rows = jnp.concatenate(                         # (8, d): row 0 = W3^T
        [jnp.transpose(w3).astype(jnp.float32), jnp.zeros((7, d), jnp.float32)],
        axis=0)
    b3s = jnp.reshape(b3, (1, 1)).astype(jnp.float32)
    # TODO(synk): if d is not a multiple of 128 in production, pad the folded
    # weights (and the activations) to the next multiple of 128 here so the
    # 256-wide MXU sees full tiles (d=768/1024 production sizes are fine).
    return (wm, we, wp, r, b1c, w2c, b2c, w3_rows, b3s)


def classification_head_prepared(mentions_repr, entities_repr, md_scores,
                                 dis_scores, prepped, *, block_m=1024):
    """Run the head with pre-folded params (see prepare_params)."""
    wm, we, wp, r, b1, w2, b2, w3_rows, b3s = prepped
    N, d = mentions_repr.shape

    # md/dis merged into one (N, 2) array -> one small DMA per grid step.
    scores = jnp.concatenate([md_scores, dis_scores], axis=1).astype(jnp.float32)

    # ---- batch tile sizing -------------------------------------------------
    # * multiple of 128 so the lane-dense (1, block_m) output stays unmasked
    #   and bf16 sublane tiling of the (block_m, d) inputs stays clean;
    # * capped so the grid has >= 2 blocks whenever possible (v7x: 2 TCs);
    # * no input padding: cdiv grid; the ragged last tile reads unspecified
    #   rows which are fully independent and sliced off below.
    block_m = _round_up(max(block_m, 128), 128)
    if N > 128:
        block_m = min(block_m, _round_up(pl.cdiv(N, 2), 128))
    block_m = min(block_m, _round_up(N, 128))
    num_blocks = pl.cdiv(N, block_m)

    # ---- VMEM budget from the actual buffers (clamped to [32, 64] MiB) -----
    w_itemsize = jnp.dtype(wm.dtype).itemsize
    act_bytes = 2 * (2 * block_m * d * 4 + block_m * 2 * 4)   # m,e,scores x2 bufs
    out_bytes = 2 * block_m * 4
    weight_bytes = 4 * d * d * w_itemsize + (2 + 1 + 1 + 8) * d * 4
    tmp_bytes = 4 * block_m * d * 4                           # h1/h2/cast headroom
    need = act_bytes + out_bytes + 2 * weight_bytes + tmp_bytes
    vmem_limit = int(min(max(int(need * 1.5), 32 * 1024 * 1024),
                         64 * 1024 * 1024))

    row_map = lambda i: (i, 0)
    bcast = lambda i: (0, 0)

    def _build_in_specs(single_buffer_weights):
        # Grid-invariant weight blocks are fetched once; single-buffering them
        # halves their VMEM footprint (matters for d=1024 on v7x's 64 MiB).
        wkw = ({"pipeline_mode": pl.Buffered(1)} if single_buffer_weights else {})
        return [
            pl.BlockSpec((block_m, d), row_map),                  # m
            pl.BlockSpec((block_m, d), row_map),                  # e
            pl.BlockSpec((block_m, 2), row_map),                  # [md, dis]
            pl.BlockSpec((d, d), bcast, **wkw),                   # wm
            pl.BlockSpec((d, d), bcast, **wkw),                   # we
            pl.BlockSpec((d, d), bcast, **wkw),                   # wp
            pl.BlockSpec((2, d), bcast, **wkw),                   # r
            pl.BlockSpec((1, d), bcast, **wkw),                   # b1
            pl.BlockSpec((d, d), bcast, **wkw),                   # w2
            pl.BlockSpec((1, d), bcast, **wkw),                   # b2
            pl.BlockSpec((8, d), bcast, **wkw),                   # w3 rows
            pl.BlockSpec(memory_space=pltpu.MemorySpace.SMEM),    # b3 scalar
        ]

    def _call(single_buffer_weights):
        return pl.pallas_call(
            _cls_head_kernel,
            out_shape=jax.ShapeDtypeStruct((num_blocks, 1, block_m), jnp.float32),
            grid_spec=pltpu.PrefetchScalarGridSpec(
                num_scalar_prefetch=0,
                grid=(num_blocks,),
                in_specs=_build_in_specs(single_buffer_weights),
                out_specs=pl.BlockSpec((1, 1, block_m), lambda i: (i, 0, 0)),
            ),
            compiler_params=pltpu.CompilerParams(
                dimension_semantics=("parallel",),
                vmem_limit_bytes=vmem_limit,
            ),
        )(mentions_repr, entities_repr, scores,
          wm, we, wp, r, b1, w2, b2, w3_rows, b3s)

    try:
        out = _call(True)
    except Exception:   # pragma: no cover - jax without BlockSpec.pipeline_mode
        out = _call(False)

    # (num_blocks, 1, block_m) lane-dense -> (N, 1); ragged tail sliced off.
    return jnp.reshape(out, (num_blocks * block_m,))[:N, None]


def classification_head(mentions_repr, entities_repr, md_scores, dis_scores,
                        params, *, block_m=1024, compute_dtype=jnp.bfloat16):
    """Convenience wrapper: fold params then run (prefer prepare_params once)."""
    prepped = prepare_params(params, compute_dtype=compute_dtype)
    return classification_head_prepared(mentions_repr, entities_repr,
                                        md_scores, dis_scores, prepped,
                                        block_m=block_m)


def init_params(key, d):
    """Deterministic init mimicking torch.nn.Linear default U(-1/sqrt(fan_in), .)."""
    in1 = 4 * d + 2
    ks = jax.random.split(key, 6)

    def lin(kw, kb, fan_in, fan_out):
        bound = 1.0 / jnp.sqrt(fan_in)
        w = jax.random.uniform(kw, (fan_in, fan_out), jnp.float32, -bound, bound)
        b = jax.random.uniform(kb, (1, fan_out), jnp.float32, -bound, bound)
        return w, b

    w1, b1 = lin(ks[0], ks[1], in1, d)
    w2, b2 = lin(ks[2], ks[3], d, d)
    w3, b3 = lin(ks[4], ks[5], d, 1)
    return (w1, b1, w2, b2, w3, b3)


def _reference(m, e, md, dis, params):
    w1, b1, w2, b2, w3, b3 = params
    feats = jnp.concatenate([m, e, m - e, m * e, md, dis], axis=1)
    h1 = jnp.maximum(feats @ w1 + b1, 0.0)
    h2 = jnp.maximum(h1 @ w2 + b2, 0.0)
    return h2 @ w3 + b3


if __name__ == "__main__":
    # Small shapes consistent with the module (ctxt_output_dim shrunk 768 -> 64).
    # N = 300 is NOT a multiple of 128, so this exercises the ragged last tile
    # and a multi-block grid (block_m is capped to 256 -> 2 grid steps).
    N, d = 300, 64
    key = jax.random.PRNGKey(0)
    k_m, k_e, k_md, k_dis, k_p = jax.random.split(key, 5)

    mentions = jax.random.normal(k_m, (N, d), jnp.float32)
    entities = jax.random.normal(k_e, (N, d), jnp.float32)
    md_scores = jax.random.normal(k_md, (N, 1), jnp.float32)
    dis_scores = jax.random.normal(k_dis, (N, 1), jnp.float32)
    params = init_params(k_p, d)
    ref = _reference(mentions, entities, md_scores, dis_scores, params)

    # Default bf16 MXU path (f32 accumulation) -> bf16-level tolerance.
    prepped_bf16 = prepare_params(params)
    out = classification_head_prepared(mentions, entities, md_scores, dis_scores,
                                       prepped_bf16)
    out = jax.block_until_ready(out)
    assert out.shape == (N, 1)
    assert jnp.allclose(out, ref, atol=3e-2, rtol=3e-2), \
        float(jnp.max(jnp.abs(out - ref)))

    # f32 path: verifies the W1 fold / tiling / ragged-tail handling exactly.
    prepped_f32 = prepare_params(params, compute_dtype=jnp.float32)
    out32 = classification_head_prepared(mentions, entities, md_scores,
                                         dis_scores, prepped_f32)
    out32 = jax.block_until_ready(out32)
    assert jnp.allclose(out32, ref, atol=1e-3, rtol=1e-3), \
        float(jnp.max(jnp.abs(out32 - ref)))

    print("KERNEL_OK")
</pallas_src>

<mosaic_0001>
module attributes {stable_mosaic.version = 11 : i64} {
  func.func @_cls_head_kernel(%arg0: i32, %arg1: memref<256x64xf32, #tpu.memory_space<vmem>>, %arg2: memref<256x64xf32, #tpu.memory_space<vmem>>, %arg3: memref<256x2xf32, #tpu.memory_space<vmem>>, %arg4: memref<64x64xbf16, #tpu.memory_space<vmem>>, %arg5: memref<64x64xbf16, #tpu.memory_space<vmem>>, %arg6: memref<64x64xbf16, #tpu.memory_space<vmem>>, %arg7: memref<2x64xf32, #tpu.memory_space<vmem>>, %arg8: memref<1x64xf32, #tpu.memory_space<vmem>>, %arg9: memref<64x64xbf16, #tpu.memory_space<vmem>>, %arg10: memref<1x64xf32, #tpu.memory_space<vmem>>, %arg11: memref<8x64xf32, #tpu.memory_space<vmem>>, %arg12: memref<1x1xf32, #tpu.memory_space<smem>>, %arg13: memref<1x1x256xf32, #tpu.memory_space<vmem>>) attributes {dimension_semantics = [#tpu.dimension_semantics<parallel>], iteration_bounds = array<i64: 2>, scalar_prefetch = 0 : i64, scratch_operands = 0 : i64, tpu.core_type = #tpu.core_type<tc>, window_params = [{transform_indices = @transform_0, window_bounds = array<i64: 256, 64>}, {transform_indices = @transform_1, window_bounds = array<i64: 256, 64>}, {transform_indices = @transform_2, window_bounds = array<i64: 256, 2>}, {pipeline_mode = #tpu.pipeline_mode<synchronous>, transform_indices = @transform_3, window_bounds = array<i64: 64, 64>}, {pipeline_mode = #tpu.pipeline_mode<synchronous>, transform_indices = @transform_4, window_bounds = array<i64: 64, 64>}, {pipeline_mode = #tpu.pipeline_mode<synchronous>, transform_indices = @transform_5, window_bounds = array<i64: 64, 64>}, {pipeline_mode = #tpu.pipeline_mode<synchronous>, transform_indices = @transform_6, window_bounds = array<i64: 2, 64>}, {pipeline_mode = #tpu.pipeline_mode<synchronous>, transform_indices = @transform_7, window_bounds = array<i64: 1, 64>}, {pipeline_mode = #tpu.pipeline_mode<synchronous>, transform_indices = @transform_8, window_bounds = array<i64: 64, 64>}, {pipeline_mode = #tpu.pipeline_mode<synchronous>, transform_indices = @transform_9, window_bounds = array<i64: 1, 64>}, {pipeline_mode = #tpu.pipeline_mode<synchronous>, transform_indices = @transform_10, window_bounds = array<i64: 8, 64>}, {transform_indices = @transform_11, window_bounds = array<i64: 1, 1>}, {transform_indices = @transform_12, window_bounds = array<i64: 1, 1, 256>}]} {
    %c0 = arith.constant 0 : index
    %c0_0 = arith.constant 0 : index
    %0 = vector.load %arg1[%c0, %c0_0] : memref<256x64xf32, #tpu.memory_space<vmem>>, vector<256x64xf32>
    %c0_1 = arith.constant 0 : index
    %c0_2 = arith.constant 0 : index
    %1 = vector.load %arg2[%c0_1, %c0_2] : memref<256x64xf32, #tpu.memory_space<vmem>>, vector<256x64xf32>
    %2 = arith.truncf %0 : vector<256x64xf32> to vector<256x64xbf16>
    %3 = arith.truncf %1 : vector<256x64xf32> to vector<256x64xbf16>
    %4 = arith.mulf %0, %1 : vector<256x64xf32>
    %5 = arith.truncf %4 : vector<256x64xf32> to vector<256x64xbf16>
    %c0_3 = arith.constant 0 : index
    %c0_4 = arith.constant 0 : index
    %6 = vector.load %arg4[%c0_3, %c0_4] : memref<64x64xbf16, #tpu.memory_space<vmem>>, vector<64x64xbf16>
    %cst = arith.constant dense<0.000000e+00> : vector<256x64xf32>
    %7 = tpu.matmul %2, %6, %cst {dimension_numbers = #tpu.dot_dimension_numbers<[1], [0], [0], [1], [0, 0, 1, 1], [], []>} : vector<256x64xbf16>, vector<64x64xbf16>, vector<256x64xf32> -> vector<256x64xf32>
    %c0_5 = arith.constant 0 : index
    %c0_6 = arith.constant 0 : index
    %8 = vector.load %arg5[%c0_5, %c0_6] : memref<64x64xbf16, #tpu.memory_space<vmem>>, vector<64x64xbf16>
    %cst_7 = arith.constant dense<0.000000e+00> : vector<256x64xf32>
    %9 = tpu.matmul %3, %8, %cst_7 {dimension_numbers = #tpu.dot_dimension_numbers<[1], [0], [0], [1], [0, 0, 1, 1], [], []>} : vector<256x64xbf16>, vector<64x64xbf16>, vector<256x64xf32> -> vector<256x64xf32>
    %10 = arith.addf %7, %9 : vector<256x64xf32>
    %c0_8 = arith.constant 0 : index
    %c0_9 = arith.constant 0 : index
    %11 = vector.load %arg6[%c0_8, %c0_9] : memref<64x64xbf16, #tpu.memory_space<vmem>>, vector<64x64xbf16>
    %cst_10 = arith.constant dense<0.000000e+00> : vector<256x64xf32>
    %12 = tpu.matmul %5, %11, %cst_10 {dimension_numbers = #tpu.dot_dimension_numbers<[1], [0], [0], [1], [0, 0, 1, 1], [], []>} : vector<256x64xbf16>, vector<64x64xbf16>, vector<256x64xf32> -> vector<256x64xf32>
    %13 = arith.addf %10, %12 : vector<256x64xf32>
    %c0_11 = arith.constant 0 : index
    %c0_12 = arith.constant 0 : index
    %14 = vector.load %arg3[%c0_11, %c0_12] : memref<256x2xf32, #tpu.memory_space<vmem>>, vector<256x2xf32>
    %c0_13 = arith.constant 0 : index
    %c0_14 = arith.constant 0 : index
    %15 = vector.load %arg7[%c0_13, %c0_14] : memref<2x64xf32, #tpu.memory_space<vmem>>, vector<2x64xf32>
    %16 = vector.extract_strided_slice %14 {offsets = [0, 0], sizes = [256, 1], strides = [1, 1]} : vector<256x2xf32> to vector<256x1xf32>
    %17 = vector.extract_strided_slice %15 {offsets = [0, 0], sizes = [1, 64], strides = [1, 1]} : vector<2x64xf32> to vector<1x64xf32>
    %18 = vector.broadcast %16 : vector<256x1xf32> to vector<256x64xf32>
    %19 = vector.broadcast %17 : vector<1x64xf32> to vector<256x64xf32>
    %20 = arith.mulf %18, %19 : vector<256x64xf32>
    %21 = arith.addf %13, %20 : vector<256x64xf32>
    %22 = vector.extract_strided_slice %14 {offsets = [0, 1], sizes = [256, 1], strides = [1, 1]} : vector<256x2xf32> to vector<256x1xf32>
    %23 = vector.extract_strided_slice %15 {offsets = [1, 0], sizes = [1, 64], strides = [1, 1]} : vector<2x64xf32> to vector<1x64xf32>
    %24 = vector.broadcast %22 : vector<256x1xf32> to vector<256x64xf32>
    %25 = vector.broadcast %23 : vector<1x64xf32> to vector<256x64xf32>
    %26 = arith.mulf %24, %25 : vector<256x64xf32>
    %27 = arith.addf %21, %26 : vector<256x64xf32>
    %c0_15 = arith.constant 0 : index
    %c0_16 = arith.constant 0 : index
    %28 = vector.load %arg8[%c0_15, %c0_16] : memref<1x64xf32, #tpu.memory_space<vmem>>, vector<1x64xf32>
    %29 = vector.broadcast %28 : vector<1x64xf32> to vector<256x64xf32>
    %30 = arith.addf %27, %29 : vector<256x64xf32>
    %cst_17 = arith.constant 0.000000e+00 : f32
    %31 = vector.broadcast %cst_17 : f32 to vector<256x64xf32>
    %32 = arith.maximumf %30, %31 : vector<256x64xf32>
    %33 = arith.truncf %32 : vector<256x64xf32> to vector<256x64xbf16>
    %c0_18 = arith.constant 0 : index
    %c0_19 = arith.constant 0 : index
    %34 = vector.load %arg9[%c0_18, %c0_19] : memref<64x64xbf16, #tpu.memory_space<vmem>>, vector<64x64xbf16>
    %cst_20 = arith.constant dense<0.000000e+00> : vector<256x64xf32>
    %35 = tpu.matmul %33, %34, %cst_20 {dimension_numbers = #tpu.dot_dimension_numbers<[1], [0], [0], [1], [0, 0, 1, 1], [], []>} : vector<256x64xbf16>, vector<64x64xbf16>, vector<256x64xf32> -> vector<256x64xf32>
    %c0_21 = arith.constant 0 : index
    %c0_22 = arith.constant 0 : index
    %36 = vector.load %arg10[%c0_21, %c0_22] : memref<1x64xf32, #tpu.memory_space<vmem>>, vector<1x64xf32>
    %37 = vector.broadcast %36 : vector<1x64xf32> to vector<256x64xf32>
    %38 = arith.addf %35, %37 : vector<256x64xf32>
    %cst_23 = arith.constant 0.000000e+00 : f32
    %39 = vector.broadcast %cst_23 : f32 to vector<256x64xf32>
    %40 = arith.maximumf %38, %39 : vector<256x64xf32>
    %c0_24 = arith.constant 0 : index
    %c0_25 = arith.constant 0 : index
    %41 = vector.load %arg11[%c0_24, %c0_25] : memref<8x64xf32, #tpu.memory_space<vmem>>, vector<8x64xf32>
    %cst_26 = arith.constant dense<0.000000e+00> : vector<8x256xf32>
    %42 = tpu.matmul %41, %40, %cst_26 {dimension_numbers = #tpu.dot_dimension_numbers<[1], [1], [0], [0], [0, 0, 1, 0], [], []>} : vector<8x64xf32>, vector<256x64xf32>, vector<8x256xf32> -> vector<8x256xf32>
    %43 = vector.extract_strided_slice %42 {offsets = [0, 0], sizes = [1, 256], strides = [1, 1]} : vector<8x256xf32> to vector<1x256xf32>
    %c0_27 = arith.constant 0 : index
    %c0_28 = arith.constant 0 : index
    %44 = memref.load %arg12[%c0_27, %c0_28] : memref<1x1xf32, #tpu.memory_space<smem>>
    %45 = vector.broadcast %44 : f32 to vector<1x256xf32>
    %46 = arith.addf %43, %45 : vector<1x256xf32>
    %c0_29 = arith.constant 0 : index
    %c0_30 = arith.constant 0 : index
    %c0_31 = arith.constant 0 : index
    %47 = vector.load %arg13[%c0_29, %c0_30, %c0_31] : memref<1x1x256xf32, #tpu.memory_space<vmem>>, vector<1x1x256xf32>
    %48 = vector.shape_cast %47 : vector<1x1x256xf32> to vector<1x256xf32>
    %49 = vector.shape_cast %46 : vector<1x256xf32> to vector<1x1x256xf32>
    tpu.vector_store %arg13[%c0_29, %c0_30, %c0_31], %49 {strides = array<i32>} : memref<1x1x256xf32, #tpu.memory_space<vmem>>, vector<1x1x256xf32>,
    return
  }
  func.func @transform_0(%arg0: i32) -> (i32, i32) {
    %c0_i32 = arith.constant 0 : i32
    %c0_i32_0 = arith.constant 0 : i32
    return %arg0, %c0_i32 : i32, i32
  }
  func.func @transform_1(%arg0: i32) -> (i32, i32) {
    %c0_i32 = arith.constant 0 : i32
    %c0_i32_0 = arith.constant 0 : i32
    return %arg0, %c0_i32 : i32, i32
  }
  func.func @transform_2(%arg0: i32) -> (i32, i32) {
    %c0_i32 = arith.constant 0 : i32
    %c0_i32_0 = arith.constant 0 : i32
    return %arg0, %c0_i32 : i32, i32
  }
  func.func @transform_3(%arg0: i32) -> (i32, i32) {
    %c0_i32 = arith.constant 0 : i32
    %c0_i32_0 = arith.constant 0 : i32
    %c0_i32_1 = arith.constant 0 : i32
    return %c0_i32, %c0_i32_0 : i32, i32
  }
  func.func @transform_4(%arg0: i32) -> (i32, i32) {
    %c0_i32 = arith.constant 0 : i32
    %c0_i32_0 = arith.constant 0 : i32
    %c0_i32_1 = arith.constant 0 : i32
    return %c0_i32, %c0_i32_0 : i32, i32
  }
  func.func @transform_5(%arg0: i32) -> (i32, i32) {
    %c0_i32 = arith.constant 0 : i32
    %c0_i32_0 = arith.constant 0 : i32
    %c0_i32_1 = arith.constant 0 : i32
    return %c0_i32, %c0_i32_0 : i32, i32
  }
  func.func @transform_6(%arg0: i32) -> (i32, i32) {
    %c0_i32 = arith.constant 0 : i32
    %c0_i32_0 = arith.constant 0 : i32
    %c0_i32_1 = arith.constant 0 : i32
    return %c0_i32, %c0_i32_0 : i32, i32
  }
  func.func @transform_7(%arg0: i32) -> (i32, i32) {
    %c0_i32 = arith.constant 0 : i32
    %c0_i32_0 = arith.constant 0 : i32
    %c0_i32_1 = arith.constant 0 : i32
    return %c0_i32, %c0_i32_0 : i32, i32
  }
  func.func @transform_8(%arg0: i32) -> (i32, i32) {
    %c0_i32 = arith.constant 0 : i32
    %c0_i32_0 = arith.constant 0 : i32
    %c0_i32_1 = arith.constant 0 : i32
    return %c0_i32, %c0_i32_0 : i32, i32
  }
  func.func @transform_9(%arg0: i32) -> (i32, i32) {
    %c0_i32 = arith.constant 0 : i32
    %c0_i32_0 = arith.constant 0 : i32
    %c0_i32_1 = arith.constant 0 : i32
    return %c0_i32, %c0_i32_0 : i32, i32
  }
  func.func @transform_10(%arg0: i32) -> (i32, i32) {
    %c0_i32 = arith.constant 0 : i32
    %c0_i32_0 = arith.constant 0 : i32
    %c0_i32_1 = arith.constant 0 : i32
    return %c0_i32, %c0_i32_0 : i32, i32
  }
  func.func @transform_11(%arg0: i32) -> (i32, i32) {
    %c0_i32 = arith.constant 0 : i32
    %c0_i32_0 = arith.constant 0 : i32
    %c0_i32_1 = arith.constant 0 : i32
    return %c0_i32, %c0_i32_0 : i32, i32
  }
  func.func @transform_12(%arg0: i32) -> (i32, i32, i32) {
    %c0_i32 = arith.constant 0 : i32
    %c0_i32_0 = arith.constant 0 : i32
    %c0_i32_1 = arith.constant 0 : i32
    return %arg0, %c0_i32, %c0_i32_0 : i32, i32, i32
  }
}

module attributes {stable_mosaic.version = 11 : i64} {
  func.func @_cls_head_kernel(%arg0: i32, %arg1: memref<256x64xf32, #tpu.memory_space<vmem>>, %arg2: memref<256x64xf32, #tpu.memory_space<vmem>>, %arg3: memref<256x2xf32, #tpu.memory_space<vmem>>, %arg4: memref<64x64xbf16, #tpu.memory_space<vmem>>, %arg5: memref<64x64xbf16, #tpu.memory_space<vmem>>, %arg6: memref<64x64xbf16, #tpu.memory_space<vmem>>, %arg7: memref<2x64xf32, #tpu.memory_space<vmem>>, %arg8: memref<1x64xf32, #tpu.memory_space<vmem>>, %arg9: memref<64x64xbf16, #tpu.memory_space<vmem>>, %arg10: memref<1x64xf32, #tpu.memory_space<vmem>>, %arg11: memref<8x64xf32, #tpu.memory_space<vmem>>, %arg12: memref<1x1xf32, #tpu.memory_space<smem>>, %arg13: memref<1x1x256xf32, #tpu.memory_space<vmem>>) attributes {dimension_semantics = [#tpu.dimension_semantics<parallel>], iteration_bounds = array<i64: 2>, scalar_prefetch = 0 : i64, scratch_operands = 0 : i64, tpu.core_type = #tpu.core_type<tc>, window_params = [{transform_indices = @transform_0, window_bounds = array<i64: 256, 64>}, {transform_indices = @transform_1, window_bounds = array<i64: 256, 64>}, {transform_indices = @transform_2, window_bounds = array<i64: 256, 2>}, {pipeline_mode = #tpu.pipeline_mode<synchronous>, transform_indices = @transform_3, window_bounds = array<i64: 64, 64>}, {pipeline_mode = #tpu.pipeline_mode<synchronous>, transform_indices = @transform_4, window_bounds = array<i64: 64, 64>}, {pipeline_mode = #tpu.pipeline_mode<synchronous>, transform_indices = @transform_5, window_bounds = array<i64: 64, 64>}, {pipeline_mode = #tpu.pipeline_mode<synchronous>, transform_indices = @transform_6, window_bounds = array<i64: 2, 64>}, {pipeline_mode = #tpu.pipeline_mode<synchronous>, transform_indices = @transform_7, window_bounds = array<i64: 1, 64>}, {pipeline_mode = #tpu.pipeline_mode<synchronous>, transform_indices = @transform_8, window_bounds = array<i64: 64, 64>}, {pipeline_mode = #tpu.pipeline_mode<synchronous>, transform_indices = @transform_9, window_bounds = array<i64: 1, 64>}, {pipeline_mode = #tpu.pipeline_mode<synchronous>, transform_indices = @transform_10, window_bounds = array<i64: 8, 64>}, {transform_indices = @transform_11, window_bounds = array<i64: 1, 1>}, {transform_indices = @transform_12, window_bounds = array<i64: 1, 1, 256>}]} {
    %c0 = arith.constant 0 : index
    %c0_0 = arith.constant 0 : index
    %0 = vector.load %arg1[%c0, %c0_0] : memref<256x64xf32, #tpu.memory_space<vmem>>, vector<256x64xf32>
    %c0_1 = arith.constant 0 : index
    %c0_2 = arith.constant 0 : index
    %1 = vector.load %arg2[%c0_1, %c0_2] : memref<256x64xf32, #tpu.memory_space<vmem>>, vector<256x64xf32>
    %2 = arith.truncf %0 : vector<256x64xf32> to vector<256x64xbf16>
    %3 = arith.truncf %1 : vector<256x64xf32> to vector<256x64xbf16>
    %4 = arith.mulf %0, %1 : vector<256x64xf32>
    %5 = arith.truncf %4 : vector<256x64xf32> to vector<256x64xbf16>
    %c0_3 = arith.constant 0 : index
    %c0_4 = arith.constant 0 : index
    %6 = vector.load %arg4[%c0_3, %c0_4] : memref<64x64xbf16, #tpu.memory_space<vmem>>, vector<64x64xbf16>
    %cst = arith.constant dense<0.000000e+00> : vector<256x64xf32>
    %7 = tpu.matmul %2, %6, %cst {dimension_numbers = #tpu.dot_dimension_numbers<[1], [0], [0], [1], [0, 0, 1, 1], [], []>} : vector<256x64xbf16>, vector<64x64xbf16>, vector<256x64xf32> -> vector<256x64xf32>
    %c0_5 = arith.constant 0 : index
    %c0_6 = arith.constant 0 : index
    %8 = vector.load %arg5[%c0_5, %c0_6] : memref<64x64xbf16, #tpu.memory_space<vmem>>, vector<64x64xbf16>
    %cst_7 = arith.constant dense<0.000000e+00> : vector<256x64xf32>
    %9 = tpu.matmul %3, %8, %cst_7 {dimension_numbers = #tpu.dot_dimension_numbers<[1], [0], [0], [1], [0, 0, 1, 1], [], []>} : vector<256x64xbf16>, vector<64x64xbf16>, vector<256x64xf32> -> vector<256x64xf32>
    %10 = arith.addf %7, %9 : vector<256x64xf32>
    %c0_8 = arith.constant 0 : index
    %c0_9 = arith.constant 0 : index
    %11 = vector.load %arg6[%c0_8, %c0_9] : memref<64x64xbf16, #tpu.memory_space<vmem>>, vector<64x64xbf16>
    %cst_10 = arith.constant dense<0.000000e+00> : vector<256x64xf32>
    %12 = tpu.matmul %5, %11, %cst_10 {dimension_numbers = #tpu.dot_dimension_numbers<[1], [0], [0], [1], [0, 0, 1, 1], [], []>} : vector<256x64xbf16>, vector<64x64xbf16>, vector<256x64xf32> -> vector<256x64xf32>
    %13 = arith.addf %10, %12 : vector<256x64xf32>
    %c0_11 = arith.constant 0 : index
    %c0_12 = arith.constant 0 : index
    %14 = vector.load %arg3[%c0_11, %c0_12] : memref<256x2xf32, #tpu.memory_space<vmem>>, vector<256x2xf32>
    %c0_13 = arith.constant 0 : index
    %c0_14 = arith.constant 0 : index
    %15 = vector.load %arg7[%c0_13, %c0_14] : memref<2x64xf32, #tpu.memory_space<vmem>>, vector<2x64xf32>
    %16 = vector.extract_strided_slice %14 {offsets = [0, 0], sizes = [256, 1], strides = [1, 1]} : vector<256x2xf32> to vector<256x1xf32>
    %17 = vector.extract_strided_slice %15 {offsets = [0, 0], sizes = [1, 64], strides = [1, 1]} : vector<2x64xf32> to vector<1x64xf32>
    %18 = vector.broadcast %16 : vector<256x1xf32> to vector<256x64xf32>
    %19 = vector.broadcast %17 : vector<1x64xf32> to vector<256x64xf32>
    %20 = arith.mulf %18, %19 : vector<256x64xf32>
    %21 = arith.addf %13, %20 : vector<256x64xf32>
    %22 = vector.extract_strided_slice %14 {offsets = [0, 1], sizes = [256, 1], strides = [1, 1]} : vector<256x2xf32> to vector<256x1xf32>
    %23 = vector.extract_strided_slice %15 {offsets = [1, 0], sizes = [1, 64], strides = [1, 1]} : vector<2x64xf32> to vector<1x64xf32>
    %24 = vector.broadcast %22 : vector<256x1xf32> to vector<256x64xf32>
    %25 = vector.broadcast %23 : vector<1x64xf32> to vector<256x64xf32>
    %26 = arith.mulf %24, %25 : vector<256x64xf32>
    %27 = arith.addf %21, %26 : vector<256x64xf32>
    %c0_15 = arith.constant 0 : index
    %c0_16 = arith.constant 0 : index
    %28 = vector.load %arg8[%c0_15, %c0_16] : memref<1x64xf32, #tpu.memory_space<vmem>>, vector<1x64xf32>
    %29 = vector.broadcast %28 : vector<1x64xf32> to vector<256x64xf32>
    %30 = arith.addf %27, %29 : vector<256x64xf32>
    %cst_17 = arith.constant 0.000000e+00 : f32
    %31 = vector.broadcast %cst_17 : f32 to vector<256x64xf32>
    %32 = arith.maximumf %30, %31 : vector<256x64xf32>
    %33 = arith.truncf %32 : vector<256x64xf32> to vector<256x64xbf16>
    %c0_18 = arith.constant 0 : index
    %c0_19 = arith.constant 0 : index
    %34 = vector.load %arg9[%c0_18, %c0_19] : memref<64x64xbf16, #tpu.memory_space<vmem>>, vector<64x64xbf16>
    %cst_20 = arith.constant dense<0.000000e+00> : vector<256x64xf32>
    %35 = tpu.matmul %33, %34, %cst_20 {dimension_numbers = #tpu.dot_dimension_numbers<[1], [0], [0], [1], [0, 0, 1, 1], [], []>} : vector<256x64xbf16>, vector<64x64xbf16>, vector<256x64xf32> -> vector<256x64xf32>
    %c0_21 = arith.constant 0 : index
    %c0_22 = arith.constant 0 : index
    %36 = vector.load %arg10[%c0_21, %c0_22] : memref<1x64xf32, #tpu.memory_space<vmem>>, vector<1x64xf32>
    %37 = vector.broadcast %36 : vector<1x64xf32> to vector<256x64xf32>
    %38 = arith.addf %35, %37 : vector<256x64xf32>
    %cst_23 = arith.constant 0.000000e+00 : f32
    %39 = vector.broadcast %cst_23 : f32 to vector<256x64xf32>
    %40 = arith.maximumf %38, %39 : vector<256x64xf32>
    %c0_24 = arith.constant 0 : index
    %c0_25 = arith.constant 0 : index
    %41 = vector.load %arg11[%c0_24, %c0_25] : memref<8x64xf32, #tpu.memory_space<vmem>>, vector<8x64xf32>
    %cst_26 = arith.constant dense<0.000000e+00> : vector<8x256xf32>
    %42 = tpu.matmul %41, %40, %cst_26 {dimension_numbers = #tpu.dot_dimension_numbers<[1], [1], [0], [0], [0, 0, 1, 0], [], []>} : vector<8x64xf32>, vector<256x64xf32>, vector<8x256xf32> -> vector<8x256xf32>
    %43 = vector.extract_strided_slice %42 {offsets = [0, 0], sizes = [1, 256], strides = [1, 1]} : vector<8x256xf32> to vector<1x256xf32>
    %c0_27 = arith.constant 0 : index
    %c0_28 = arith.constant 0 : index
    %44 = memref.load %arg12[%c0_27, %c0_28] : memref<1x1xf32, #tpu.memory_space<smem>>
    %45 = vector.broadcast %44 : f32 to vector<1x256xf32>
    %46 = arith.addf %43, %45 : vector<1x256xf32>
    %c0_29 = arith.constant 0 : index
    %c0_30 = arith.constant 0 : index
    %c0_31 = arith.constant 0 : index
    %47 = vector.load %arg13[%c0_29, %c0_30, %c0_31] : memref<1x1x256xf32, #tpu.memory_space<vmem>>, vector<1x1x256xf32>
    %48 = vector.shape_cast %47 : vector<1x1x256xf32> to vector<1x256xf32>
    %49 = vector.shape_cast %46 : vector<1x256xf32> to vector<1x1x256xf32>
    tpu.vector_store %arg13[%c0_29, %c0_30, %c0_31], %49 {strides = array<i32>} : memref<1x1x256xf32, #tpu.memory_space<vmem>>, vector<1x1x256xf32>,
    return
  }
  func.func @transform_0(%arg0: i32) -> (i32, i32) {
    %c0_i32 = arith.constant 0 : i32
    %c0_i32_0 = arith.constant 0 : i32
    return %arg0, %c0_i32 : i32, i32
  }
  func.func @transform_1(%arg0: i32) -> (i32, i32) {
    %c0_i32 = arith.constant 0 : i32
    %c0_i32_0 = arith.constant 0 : i32
    return %arg0, %c0_i32 : i32, i32
  }
  func.func @transform_2(%arg0: i32) -> (i32, i32) {
    %c0_i32 = arith.constant 0 : i32
    %c0_i32_0 = arith.constant 0 : i32
    return %arg0, %c0_i32 : i32, i32
  }
  func.func @transform_3(%arg0: i32) -> (i32, i32) {
    %c0_i32 = arith.constant 0 : i32
    %c0_i32_0 = arith.constant 0 : i32
    %c0_i32_1 = arith.constant 0 : i32
    return %c0_i32, %c0_i32_0 : i32, i32
  }
  func.func @transform_4(%arg0: i32) -> (i32, i32) {
    %c0_i32 = arith.constant 0 : i32
    %c0_i32_0 = arith.constant 0 : i32
    %c0_i32_1 = arith.constant 0 : i32
    return %c0_i32, %c0_i32_0 : i32, i32
  }
  func.func @transform_5(%arg0: i32) -> (i32, i32) {
    %c0_i32 = arith.constant 0 : i32
    %c0_i32_0 = arith.constant 0 : i32
    %c0_i32_1 = arith.constant 0 : i32
    return %c0_i32, %c0_i32_0 : i32, i32
  }
  func.func @transform_6(%arg0: i32) -> (i32, i32) {
    %c0_i32 = arith.constant 0 : i32
    %c0_i32_0 = arith.constant 0 : i32
    %c0_i32_1 = arith.constant 0 : i32
    return %c0_i32, %c0_i32_0 : i32, i32
  }
  func.func @transform_7(%arg0: i32) -> (i32, i32) {
    %c0_i32 = arith.constant 0 : i32
    %c0_i32_0 = arith.constant 0 : i32
    %c0_i32_1 = arith.constant 0 : i32
    return %c0_i32, %c0_i32_0 : i32, i32
  }
  func.func @transform_8(%arg0: i32) -> (i32, i32) {
    %c0_i32 = arith.constant 0 : i32
    %c0_i32_0 = arith.constant 0 : i32
    %c0_i32_1 = arith.constant 0 : i32
    return %c0_i32, %c0_i32_0 : i32, i32
  }
  func.func @transform_9(%arg0: i32) -> (i32, i32) {
    %c0_i32 = arith.constant 0 : i32
    %c0_i32_0 = arith.constant 0 : i32
    %c0_i32_1 = arith.constant 0 : i32
    return %c0_i32, %c0_i32_0 : i32, i32
  }
  func.func @transform_10(%arg0: i32) -> (i32, i32) {
    %c0_i32 = arith.constant 0 : i32
    %c0_i32_0 = arith.constant 0 : i32
    %c0_i32_1 = arith.constant 0 : i32
    return %c0_i32, %c0_i32_0 : i32, i32
  }
  func.func @transform_11(%arg0: i32) -> (i32, i32) {
    %c0_i32 = arith.constant 0 : i32
    %c0_i32_0 = arith.constant 0 : i32
    %c0_i32_1 = arith.constant 0 : i32
    return %c0_i32, %c0_i32_0 : i32, i32
  }
  func.func @transform_12(%arg0: i32) -> (i32, i32, i32) {
    %c0_i32 = arith.constant 0 : i32
    %c0_i32_0 = arith.constant 0 : i32
    %c0_i32_1 = arith.constant 0 : i32
    return %arg0, %c0_i32, %c0_i32_0 : i32, i32, i32
  }
}

</mosaic_0001>

<bundles_post_ra>
// kernel: tpu_custom_call.1
= control target key start
LH: loop header
LB: loop body
LE: loop exit
PB: predicated region body
PF: predicated region fallthrough
CT: control target
= control target key end

     0   :  { %s4430_s0 = inlined_call_operand.vmem [shape: f32[300,64], index: 0, kind: input, shape index: {}]   ;;  %s4431_s1 = inlined_call_operand.vmem [shape: f32[300,64], index: 1, kind: input, shape index: {}]   ;;  %s4432_s2 = inlined_call_operand.vmem [shape: f32[300,2], index: 2, kind: input, shape index: {}]   ;;  %s4433_s3 = inlined_call_operand.vmem [shape: bf16[64,64], index: 3, kind: input, shape index: {}]   ;;  %s4434_s4 = inlined_call_operand.vmem [shape: bf16[64,64], index: 4, kind: input, shape index: {}]   ;;  %s4435_s5 = inlined_call_operand.vmem [shape: bf16[64,64], index: 5, kind: input, shape index: {}]   ;;  %s4436_s6 = inlined_call_operand.vmem [shape: f32[2,64], index: 6, kind: input, shape index: {}]   ;;  %s4437_s7 = inlined_call_operand.vmem [shape: f32[1,64], index: 7, kind: input, shape index: {}]   ;;  %s4438_s8 = inlined_call_operand.vmem [shape: bf16[64,64], index: 8, kind: input, shape index: {}]   ;;  %s4439_s9 = inlined_call_operand.vmem [shape: f32[1,64], index: 9, kind: input, shape index: {}]   ;;  %s4440_s10 = inlined_call_operand.vmem [shape: f32[8,64], index: 10, kind: input, shape index: {}]   ;;  %s4441_s11 = inlined_call_operand.<no memory space> [shape: f32[1,1], index: 11, kind: input, shape index: {}]   ;;  %s4442_s12 = inlined_call_operand.hbm [shape: f32[2,1,256], index: 12, kind: output, shape index: {}]  }
   0x1   :  { %4469 = sst [smem:[#allocation49_spill]] %s4430_s0 }
   0x2   :  { %4470 = sst [smem:[#allocation50_spill]] %s4431_s1 }
   0x3   :  { %17 = sst [smem:[#allocation2]] %s4441_s11 }
   0x4   :  { %18 = vsyncpa [#allocation4], 0 }
   0x5   :  { %20 = vsyncpa [#allocation4 + $0x1], 0  ;;  %s3156_s23 = smov 0   ;;  %s3158_s24 = smov 0  }
   0x6   :  { %s3160_s25 = smov 0   ;;  %s3162_s26 = smov 0  }
   0x7 LB: > { %s2539_s11 = sadd.s32 4294967295, %s3082_s26   ;;  %s2540_s27 = sadd.s32 4294967294, %s3082_s26   ;;  %s3082_s26 = sphi %s3162_s26, %s4607_s26   ;;  %s3078_s25 = sphi %s3160_s25, %s4606_s25   ;;  %s3074_s24 = sphi %s3158_s24, %s4605_s24   ;;  %s3070_s23 = sphi %s3156_s23, %s4604_s23  }
   0x8   : > { %s3179_s28 = sadd.s32 1, %s3082_s26   ;;  %s300_s29 = sadd.s32 1, %s3078_s25 }
   0x9   : > { %s297_s30 = ssub.s32 %s3082_s26, %s3179_s28  ;;  %p310_p0 = scmp.ne.s32.totalorder %s3078_s25, %s3074_s24 }
   0xa   : > { %p298_p1 = scmp.eq.s32.totalorder %s297_s30, 0  ;;  %p311_p2 = scmp.eq.s32.totalorder %s2539_s11, 1 }
   0xb   : > { %p316_p3 = scmp.ne.s32.totalorder %s3074_s24, %s3070_s23  ;;  %p317_p4 = scmp.eq.s32.totalorder %s2540_s27, 1 }
   0xc   : > { %s3189_s13 = scalar_select %p298_p1, %s3078_s25, %s300_s29  }
   0xd   : > { %p3191_p5 = por %p311_p2, %p310_p0  ;;  %p3195_p6 = por %p317_p4, %p316_p3 }
   0xe   : > { %p2543_p7 = scmp.ge.s32.totalorder %s3082_s26, 1  ;;  %p413_p8 = scmp.lt.s32.totalorder %s3082_s26, 3 }
  0x10   : > { %p414_p9 = pnand %p2543_p7, %p413_p8 }
  0x12   : > { %417 = sbr.rel (%p414_p9) target bundleno = 854 (0x356), region = 68 }
  0x17   : > { %v3006_v0 = vld [vmem:[%s4434_s4 + $0x18] sm:$0xff]   ;;  %s3204_s18 = sshll.u32 %s2539_s11, 5  ;;  %v3008_v2 = vld [vmem:[%s4434_s4 + $0x10] sm:$0xff]   ;;  %v3010_v4 = vld [vmem:[%s4434_s4 + $0x8] sm:$0xff]   ;;  %v4443_v6 = vmov 0   ;;  %s4473_s1 = sld [smem:[#allocation50_spill]] }
  0x18   : > { %v3007_v1 = vld [vmem:[%s4433_s3 + $0x18] sm:$0xff]   ;;  %p482_p10 = scmp.lt.s32.totalorder %s3204_s18, 37  ;;  %2786 = vmatprep.subr.bf16.mxu0 %v3006_v0  ;;  %v3009_v3 = vld [vmem:[%s4433_s3 + $0x10] sm:$0xff]   ;;  %v3011_v5 = vld [vmem:[%s4433_s3 + $0x8] sm:$0xff]   ;;  %2989 = vset.pattern.permute.xlu1 %v4443_v6  ;;  %s4474_s0 = sld [smem:[#allocation49_spill]]  ;;  %vm704_vm0 = vcmask 523264  }
  0x19   : > { %2826 = vmatprep.subr.bf16.mxu1 %v3007_v1  ;;  %2787 = vmatpush3.bf16.msra.mxu0 %v3006_v0  ;;  %v3012_v7 = vld [vmem:[%s4434_s4] sm:$0xff]   ;;  %v3014_v19 = vld [vmem:[%s4435_s5 + $0x18] sm:$0xff]   ;;  %v3015_v28 = vld [vmem:[%s4435_s5 + $0x10] sm:$0xff]   ;;  %v4445_v54 = vmov 1   ;;  %s2415_s22 = sld [smem:[#allocation2]]  ;;  %s474_s29 = sand.u32 1, %s3074_s24  }
  0x1a   : > { %s483_s11 = scalar_select %p482_p10, %s3204_s18, 37  ;;  %2827 = vmatpush3.bf16.msra.mxu1 %v3007_v1  ;;  %2788 = vmatprep.subr.bf16.mxu0 %v3008_v2  ;;  %v3013_v11 = vld [vmem:[%s4433_s3] sm:$0xff]   ;;  %v3016_v43 = vld [vmem:[%s4435_s5 + $0x8] sm:$0xff]  }
  0x1b   : > { %2828 = vmatprep.subr.bf16.mxu1 %v3009_v3  ;;  %2988 = vset.pattern.permute.xlu0 %v4443_v6  ;;  %v3017_v59 = vld [vmem:[%s4435_s5] sm:$0xff]   ;;  %s2455_s19 = scalar_lea.hbm %s4442_s12, %s3204_s18  ;;  %s2443_s21 = scalar_lea.sflag [#allocation4], %s474_s29 }
  0x1c   : > { %s3223_s20 = sshll.u32 %s483_s11, 3 }
  0x1d   : > { %s3230_s27 = scalar_lea.vmem %s4473_s1, %s3223_s20  ;;  %2789 = vmatpush3.bf16.msra.mxu0 %v3008_v2  ;;  %s3298_s17 = scalar_lea.vmem %s4432_s2, %s3223_s20 }
  0x1e   : > { %s3236_s16 = scalar_lea.vmem %s4474_s0, %s3223_s20  ;;  %2829 = vmatpush3.bf16.msra.mxu1 %v3009_v3  ;;  %2790 = vmatprep.subr.bf16.mxu0 %v3010_v4  ;;  %v3243_v8 = vld [vmem:[%s3230_s27] sm:$0xff]  ;;  %v3246_v9 = vld [vmem:[%s3230_s27 + $0x8] sm:$0xff]  ;;  %v3262_v15 = vld [vmem:[%s3230_s27 + $0x10] sm:$0xff] }
  0x1f   : > { %v3249_v10 = vld [vmem:[%s3236_s16] sm:$0xff]  ;;  %2830 = vmatprep.subr.bf16.mxu1 %v3011_v5  ;;  %v600_v12 = vpack.c.bf16 %v3246_v9, %v3243_v8  ;;  %v3257_v13 = vld [vmem:[%s3236_s16 + $0x8] sm:$0xff]  ;;  %v3266_v16 = vld [vmem:[%s3230_s27 + $0x18] sm:$0xff] }
  0x20   : > { %v584_v14 = vpack.c.bf16 %v3257_v13, %v3249_v10  ;;  %v3269_v17 = vld [vmem:[%s3236_s16 + $0x10] sm:$0xff]  ;;  %v3272_v18 = vld [vmem:[%s3236_s16 + $0x18] sm:$0xff]  ;;  %v3278_v20 = vld [vmem:[%s3230_s27 + $0x20] sm:$0xff]  ;;  %v601_v24 = vpack.c.bf16 %v3266_v16, %v3262_v15 }
  0x21   : > { %2791 = vmatpush3.bf16.msra.mxu0 %v3010_v4  ;;  %2794 = vmatprep.mubr.msk.bf16.mxu0 %vm704_vm0, %v600_v12  ;;  %v3282_v21 = vld [vmem:[%s3230_s27 + $0x28] sm:$0xff]  ;;  %v3285_v22 = vld [vmem:[%s3236_s16 + $0x20] sm:$0xff]  ;;  %v585_v25 = vpack.c.bf16 %v3272_v18, %v3269_v17  ;;  %v1422_v29 = vld [vmem:[%s3298_s17 + $0x10] sm:$0xff] }
  0x22   : > { %2831 = vmatpush3.bf16.msra.mxu1 %v3011_v5  ;;  %2792 = vmatprep.subr.bf16.mxu0 %v3012_v7  ;;  %v3288_v23 = vld [vmem:[%s3236_s16 + $0x28] sm:$0xff]  ;;  %v602_v26 = vpack.c.bf16 %v3282_v21, %v3278_v20  ;;  %v3311_v30 = vld [vmem:[%s3230_s27 + $0x30] sm:$0xff]  ;;  %v3314_v31 = vld [vmem:[%s3230_s27 + $0x38] sm:$0xff] }
  0x23   : > { %2832 = vmatprep.subr.bf16.mxu1 %v3013_v11  ;;  %2834 = vmatprep.mubr.msk.bf16.mxu1 %vm704_vm0, %v584_v14  ;;  %v586_v27 = vpack.c.bf16 %v3288_v23, %v3285_v22  ;;  %v3317_v32 = vld [vmem:[%s3236_s16 + $0x30] sm:$0xff]  ;;  %v3322_v33 = vld [vmem:[%s3236_s16 + $0x38] sm:$0xff]  ;;  %v3325_v34 = vld [vmem:[%s3230_s27 + $0x40] sm:$0xff]  ;;  %v603_v38 = vpack.c.bf16 %v3314_v31, %v3311_v30 }
  0x24   : > { %v3328_v35 = vld [vmem:[%s3230_s27 + $0x48] sm:$0xff]  ;;  %v3331_v36 = vld [vmem:[%s3236_s16 + $0x40] sm:$0xff]  ;;  %1465 = vperm.xlu1 %2989, %v1422_v29   ;;  %v3339_v39 = vld [vmem:[%s3298_s17 + $0x18] sm:$0xff]  ;;  %v587_v40 = vpack.c.bf16 %v3322_v33, %v3317_v32 }
  0x25   : > { %2793 = vmatpush3.bf16.msra.mxu0 %v3012_v7  ;;  %v3334_v37 = vld [vmem:[%s3236_s16 + $0x48] sm:$0xff]  ;;  %v604_v41 = vpack.c.bf16 %v3328_v35, %v3325_v34  ;;  %v3353_v44 = vld [vmem:[%s3230_s27 + $0x50] sm:$0xff]  ;;  %v3356_v45 = vld [vmem:[%s3230_s27 + $0x58] sm:$0xff] }
  0x26   : > { %2833 = vmatpush3.bf16.msra.mxu1 %v3013_v11  ;;  %2866 = vmatprep.subr.bf16.mxu0 %v3014_v19  ;;  %v588_v42 = vpack.c.bf16 %v3334_v37, %v3331_v36  ;;  %v3361_v46 = vld [vmem:[%s3236_s16 + $0x50] sm:$0xff]  ;;  %v3364_v47 = vld [vmem:[%s3236_s16 + $0x58] sm:$0xff]  ;;  %v1421_v48 = vld [vmem:[%s3298_s17 + $0x8] sm:$0xff]  ;;  %v605_v55 = vpack.c.bf16 %v3356_v45, %v3353_v44 }
  0x27   : > { %v3369_v49 = vld [vmem:[%s3230_s27 + $0x60] sm:$0xff]  ;;  %v3372_v50 = vld [vmem:[%s3230_s27 + $0x68] sm:$0xff]  ;;  %v589_v56 = vpack.c.bf16 %v3364_v47, %v3361_v46  ;;  %v3398_v60 = vld [vmem:[%s3230_s27 + $0x70] sm:$0xff] }
  0x28   : > { %2795 = vmatmul.mubr.msk.bf16.vlgmr.msra.gmra.mxu0 %vm704_vm0, %v601_v24  ;;  %1470 = vperm.xlu1 %2989, %v3339_v39   ;;  %v3375_v51 = vld [vmem:[%s3298_s17] sm:$0xff]  ;;  %v3381_v53 = vld [vmem:[%s3236_s16 + $0x68] sm:$0xff]  ;;  %v606_v57 = vpack.c.bf16 %v3372_v50, %v3369_v49  ;;  %v3403_v61 = vld [vmem:[%s3230_s27 + $0x78] sm:$0xff] }
  0x29   : > { %2835 = vmatmul.mubr.msk.bf16.vlgmr.msra.gmra.mxu1 %vm704_vm0, %v585_v25  ;;  %2867 = vmatpush3.bf16.msra.mxu0 %v3014_v19  ;;  %v3378_v52 = vld [vmem:[%s3236_s16 + $0x60] sm:$0xff]  ;;  %v3406_v62 = vld [vmem:[%s3236_s16 + $0x70] sm:$0xff]  ;;  %v3409_v63 = vld [vmem:[%s3236_s16 + $0x78] sm:$0xff]  ;;  %v607_v7 = vpack.c.bf16 %v3403_v61, %v3398_v60 }
  0x2a   : > { %2798 = vmatprep.mubr.msk.bf16.mxu0 %vm704_vm0, %v602_v26  ;;  %2838 = vmatprep.mubr.msk.bf16.mxu1 %vm704_vm0, %v586_v27  ;;  %v590_v58 = vpack.c.bf16 %v3381_v53, %v3378_v52  ;;  %v3413_v0 = vld [vmem:[%s3230_s27 + $0x80] sm:$0xff]  ;;  %v3416_v1 = vld [vmem:[%s3230_s27 + $0x88] sm:$0xff]  ;;  %v591_v11 = vpack.c.bf16 %v3409_v63, %v3406_v62  ;;  %v3439_v19 = vld [vmem:[%s3230_s27 + $0x90] sm:$0xff] }
  0x2b   : > { %2868 = vmatprep.subr.bf16.mxu0 %v3015_v28  ;;  %1455 = vperm.xlu0 %2988, %v3375_v51   ;;  %v3419_v2 = vld [vmem:[%s3298_s17 + $0x20] sm:$0xff]  ;;  %v3425_v4 = vld [vmem:[%s3236_s16 + $0x88] sm:$0xff]  ;;  %v608_v12 = vpack.c.bf16 %v3416_v1, %v3413_v0  ;;  %v3442_v24 = vld [vmem:[%s3230_s27 + $0x98] sm:$0xff] }
  0x2c   : > { %2990 = vset.pattern.permute.xlu1 %v4445_v54  ;;  %v3422_v3 = vld [vmem:[%s3236_s16 + $0x80] sm:$0xff]  ;;  %v1425_v5 = vld [vmem:[%s3298_s17 + $0x28] sm:$0xff]  ;;  %v1426_v25 = vld [vmem:[%s3298_s17 + $0x30] sm:$0xff] }
  0x2d   : > { %2869 = vmatpush3.bf16.msra.mxu0 %v3015_v28  ;;  %1686 = vperm.xlu1 %2990, %v1421_v48   ;;  %v592_v14 = vpack.c.bf16 %v3425_v4, %v3422_v3  ;;  %v3447_v26 = vld [vmem:[%s3236_s16 + $0x90] sm:$0xff]  ;;  %v3450_v27 = vld [vmem:[%s3236_s16 + $0x98] sm:$0xff]  ;;  %v3453_v28 = vld [vmem:[%s3230_s27 + $0xa0] sm:$0xff] }
  0x2e   : > { %2870 = vmatprep.subr.bf16.mxu0 %v3016_v43 }
  0x2f   : > { %1460 = vperm.xlu0 %2988, %v1421_v48   ;;  %v609_v48 = vpack.c.bf16 %v3442_v24, %v3439_v19 }
  0x30   : > { %2799 = vmatmul.mubr.msk.bf16.gmra.mxu0 %vm704_vm0, %v603_v38  ;;  %v3459_v38 = vld [vmem:[%s3298_s17 + $0x48] sm:$0xff] }
  0x31   : > { %2839 = vmatmul.mubr.msk.bf16.gmra.mxu1 %vm704_vm0, %v587_v40  ;;  %2802 = vmatprep.mubr.msk.bf16.mxu0 %vm704_vm0, %v604_v41  ;;  %v3464_v40 = vld [vmem:[%s3236_s16 + $0xa0] sm:$0xff]  ;;  %v3467_v41 = vld [vmem:[%s3236_s16 + $0xa8] sm:$0xff] }
  0x32   : > { %2842 = vmatprep.mubr.msk.bf16.mxu1 %vm704_vm0, %v588_v42  ;;  %2871 = vmatpush3.bf16.msra.mxu0 %v3016_v43  ;;  %4476 = vst [vmem:[#allocation7_spill] sm:$0xff] %v3467_v41  ;;  %v3470_v42 = vld [vmem:[%s3298_s17 + $0x38] sm:$0xff]  ;;  %v3475_v43 = vld [vmem:[%s3298_s17 + $0x68] sm:$0xff] }
  0x33   : > { %1690 = vperm.xlu1 %2990, %v1422_v29   ;;  %2872 = vmatprep.subr.bf16.mxu0 %v3017_v59  ;;  %v3456_v29 = vld [vmem:[%s3230_s27 + $0xa8] sm:$0xff] }
  0x34   : > { %1480 = vperm.xlu0 %2988, %v1425_v5   ;;  %4475 = vst [vmem:[#allocation6_spill] sm:$0xff] %v3456_v29 }
  0x36   : > { %2873 = vmatpush3.bf16.msra.mxu0 %v3017_v59  ;;  %v3494_v59 = vld [vmem:[%s3230_s27 + $0xb0] sm:$0xff] }
  0x37   : > { %2991 = vset.pattern.permute.xlu1 %v4443_v6  ;;  %4478 = vst [vmem:[#allocation9_spill] sm:$0xff] %v3494_v59  ;;  %v3523_v6 = vld [vmem:[%s3298_s17 + $0xa8] sm:$0xff] }
  0x38   : > { %2803 = vmatmul.mubr.msk.bf16.gmra.mxu0 %vm704_vm0, %v605_v55  ;;  %1475 = vperm.xlu1 %2991, %v3419_v2   ;;  %v593_v55 = vpack.c.bf16 %v3450_v27, %v3447_v26  ;;  %4486 = vst [vmem:[#allocation17_spill] sm:$0xff] %v3523_v6 }
  0x39   : > { %2843 = vmatmul.mubr.msk.bf16.gmra.mxu1 %vm704_vm0, %v589_v56  ;;  %2806 = vmatprep.mubr.msk.bf16.mxu0 %vm704_vm0, %v606_v57  ;;  %v610_v56 = vpack.c.bf16 %v3456_v29, %v3453_v28  ;;  %v594_v57 = vpack.c.bf16 %v3467_v41, %v3464_v40  ;;  %v1430_v41 = vld [vmem:[%s3298_s17 + $0x50] sm:$0xff] }
  0x3a   : > { %2846 = vmatprep.mubr.msk.bf16.mxu1 %vm704_vm0, %v590_v58  ;;  %1500 = vperm.xlu0 %2988, %v3459_v38   ;;  %v3489_v58 = vld [vmem:[%s3298_s17 + $0x88] sm:$0xff] }
  0x3b   : > { %4477 = vst [vmem:[#allocation8_spill] sm:$0xff] %v3489_v58 }
  0x3c   : > { %1485 = vperm.xlu1 %2991, %v1426_v25  }
  0x3e   : > { %1520 = vperm.xlu0 %2988, %v3475_v43  }
  0x40   : > { %2807 = vmatmul.mubr.msk.bf16.gmra.mxu0 %vm704_vm0, %v607_v7  ;;  %1490 = vperm.xlu1 %2991, %v3470_v42   ;;  %v3497_v7 = vld [vmem:[%s3230_s27 + $0xb8] sm:$0xff] }
  0x41   : > { %2847 = vmatmul.mubr.msk.bf16.gmra.mxu1 %vm704_vm0, %v591_v11  ;;  %2810 = vmatprep.mubr.msk.bf16.mxu0 %vm704_vm0, %v608_v12  ;;  %4479 = vst [vmem:[#allocation10_spill] sm:$0xff] %v3497_v7  ;;  %v3500_v11 = vld [vmem:[%s3236_s16 + $0xb0] sm:$0xff]  ;;  %v3504_v12 = vld [vmem:[%s3236_s16 + $0xb8] sm:$0xff] }
  0x42   : > { %2850 = vmatprep.mubr.msk.bf16.mxu1 %vm704_vm0, %v592_v14  ;;  %4480 = vst [vmem:[#allocation11_spill] sm:$0xff] %v3500_v11  ;;  %4481 = vst [vmem:[#allocation12_spill] sm:$0xff] %v3504_v12  ;;  %v3507_v14 = vld [vmem:[%s3230_s27 + $0xc0] sm:$0xff]  ;;  %1540 = vperm.xlu0 %2988, %v3489_v58   ;;  %v3534_v58 = vld [vmem:[%s3230_s27 + $0xd0] sm:$0xff] }
  0x43   : > { %4482 = vst [vmem:[#allocation13_spill] sm:$0xff] %v3507_v14  ;;  %4487 = vst [vmem:[#allocation18_spill] sm:$0xff] %v3534_v58 }
  0x44   : > { %2992 = vset.pattern.permute.xlu1 %v4445_v54  ;;  %v595_v54 = vpack.c.bf16 %v3504_v12, %v3500_v11  ;;  %v3562_v12 = vld [vmem:[%s3236_s16 + $0xe8] sm:$0xff] }
  0x45   : > { %1702 = vperm.xlu1 %2992, %v1425_v5   ;;  %4493 = vst [vmem:[#allocation24_spill] sm:$0xff] %v3562_v12 }
  0x46   : > { %1560 = vperm.xlu0 %2988, %v3523_v6   ;;  %v3556_v6 = vld [vmem:[%s3230_s27 + $0xe8] sm:$0xff] }
  0x47   : > { %4491 = vst [vmem:[#allocation22_spill] sm:$0xff] %v3556_v6 }
  0x48   : > { %2811 = vmatmul.mubr.msk.bf16.gmra.mxu0 %vm704_vm0, %v609_v48  ;;  %v3510_v48 = vld [vmem:[%s3230_s27 + $0xc8] sm:$0xff] }
  0x49   : > { %2851 = vmatmul.mubr.msk.bf16.gmra.mxu1 %vm704_vm0, %v593_v55  ;;  %2814 = vmatprep.mubr.msk.bf16.mxu0 %vm704_vm0, %v610_v56  ;;  %4483 = vst [vmem:[#allocation14_spill] sm:$0xff] %v3510_v48  ;;  %v3514_v55 = vld [vmem:[%s3236_s16 + $0xc0] sm:$0xff]  ;;  %v3517_v56 = vld [vmem:[%s3236_s16 + $0xc8] sm:$0xff]  ;;  %v612_v29 = vpack.c.bf16 %v3510_v48, %v3507_v14  ;;  %v3542_v48 = vld [vmem:[%s3230_s27 + $0xd8] sm:$0xff] }
  0x4a   : > { %2854 = vmatprep.mubr.msk.bf16.mxu1 %vm704_vm0, %v594_v57  ;;  %4484 = vst [vmem:[#allocation15_spill] sm:$0xff] %v3514_v55  ;;  %4485 = vst [vmem:[#allocation16_spill] sm:$0xff] %v3517_v56  ;;  %v611_v57 = vpack.c.bf16 %v3497_v7, %v3494_v59  ;;  %v596_v5 = vpack.c.bf16 %v3517_v56, %v3514_v55  ;;  %1706 = vperm.xlu1 %2992, %v1426_v25   ;;  %v3537_v7 = vld [vmem:[%s3298_s17 + $0xc8] sm:$0xff]  ;;  %v3545_v14 = vld [vmem:[%s3236_s16 + $0xd0] sm:$0xff] }
  0x4b   : > { %4488 = vst [vmem:[#allocation19_spill] sm:$0xff] %v3537_v7  ;;  %4489 = vst [vmem:[#allocation20_spill] sm:$0xff] %v3542_v48  ;;  %v1428_v56 = vld [vmem:[%s3298_s17 + $0x40] sm:$0xff]  ;;  %v3550_v25 = vld [vmem:[%s3236_s16 + $0xd8] sm:$0xff]  ;;  %1580 = vperm.xlu0 %2988, %v3537_v7  }
  0x4c   : > { %v3559_v55 = vld [vmem:[%s3236_s16 + $0xe0] sm:$0xff]  ;;  %v597_v59 = vpack.c.bf16 %v3550_v25, %v3545_v14 }
  0x4d   : > { %4492 = vst [vmem:[#allocation23_spill] sm:$0xff] %v3559_v55  ;;  %v598_v7 = vpack.c.bf16 %v3562_v12, %v3559_v55  ;;  %v1431_v12 = vld [vmem:[%s3298_s17 + $0x58] sm:$0xff]  ;;  %v4496_v55 = vmov 1  }
  0x50   : > { %2815 = vmatmul.mubr.msk.bf16.gmra.mxu0 %vm704_vm0, %v611_v57  ;;  %v3553_v57 = vld [vmem:[%s3230_s27 + $0xe0] sm:$0xff] }
  0x51   : > { %2855 = vmatmul.mubr.msk.bf16.gmra.mxu1 %vm704_vm0, %v595_v54  ;;  %2818 = vmatprep.mubr.msk.bf16.mxu0 %vm704_vm0, %v612_v29  ;;  %4490 = vst [vmem:[#allocation21_spill] sm:$0xff] %v3553_v57  ;;  %v4494_v54 = vmov 0   ;;  %v613_v29 = vpack.c.bf16 %v3542_v48, %v3534_v58  ;;  %v614_v11 = vpack.c.bf16 %v3556_v6, %v3553_v57  ;;  %v3587_v6 = vld [vmem:[%s3230_s27 + $0xf0] sm:$0xff]  ;;  %v3590_v57 = vld [vmem:[%s3230_s27 + $0xf8] sm:$0xff] }
  0x52   : > { %2858 = vmatprep.mubr.msk.bf16.mxu1 %vm704_vm0, %v596_v5  ;;  %2993 = vset.pattern.permute.xlu1 %v4494_v54  ;;  %v3569_v5 = vld [vmem:[%s3298_s17 + $0xe8] sm:$0xff]  ;;  %v616_v48 = vmul.f32 %v3243_v8, %v3249_v10  ;;  %v617_v58 = vmul.f32 %v3246_v9, %v3257_v13  ;;  %v615_v8 = vpack.c.bf16 %v3590_v57, %v3587_v6 }
  0x53   : > { %1495 = vperm.xlu1 %2993, %v1428_v56   ;;  %4495 = vst [vmem:[#allocation25_spill] sm:$0xff] %v3569_v5  ;;  %1600 = vperm.xlu0 %2988, %v3569_v5   ;;  %v3595_v5 = vld [vmem:[%s3236_s16 + $0xf0] sm:$0xff]  ;;  %v618_v13 = vmul.f32 %v3262_v15, %v3269_v17  ;;  %v622_v17 = vmul.f32 %v3311_v30, %v3317_v32 }
  0x54   : > { %v648_v9 = vpack.c.bf16 %v617_v58, %v616_v48  ;;  %v621_v58 = vmul.f32 %v3282_v21, %v3288_v23  ;;  %v624_v21 = vmul.f32 %v3325_v34, %v3331_v36  ;;  %v1434_v30 = vld [vmem:[%s3298_s17 + $0x70] sm:$0xff]  ;;  %v1435_v34 = vld [vmem:[%s3298_s17 + $0x78] sm:$0xff]  ;;  %v629_v36 = vmul.f32 %v3372_v50, %v3381_v53  ;;  %v1436_v53 = vld [vmem:[%s3298_s17 + $0x80] sm:$0xff] }
  0x55   : > { %v3018_v50 = vld [vmem:[%s4438_s8 + $0x18] sm:$0xff]   ;;  %v4506_v48 = vld [vmem:[#allocation14_spill] sm:$0xff] }
  0x56   : > { %2906 = vmatprep.subr.bf16.mxu1 %v3018_v50 }
  0x57   : > { %1505 = vperm.xlu1 %2993, %v1430_v41   ;;  %3004 = vset.pattern.permute.xlu0 %v4496_v55 }
  0x58   : > { %2819 = vmatmul.mubr.msk.bf16.gmra.mxu0 %vm704_vm0, %v613_v29  ;;  %v3598_v29 = vld [vmem:[%s3236_s16 + $0xf8] sm:$0xff]  ;;  %1682 = vperm.xlu0 %3004, %v3375_v51   ;;  %v620_v51 = vmul.f32 %v3278_v20, %v3285_v22  ;;  %v1432_v20 = vld [vmem:[%s3298_s17 + $0x60] sm:$0xff]  ;;  %v625_v22 = vmul.f32 %v3328_v35, %v3334_v37  ;;  %v628_v35 = vmul.f32 %v3369_v49, %v3378_v52 }
  0x59   : > { %2859 = vmatmul.mubr.msk.bf16.gmra.mxu1 %vm704_vm0, %v597_v59  ;;  %2822 = vmatprep.mubr.msk.bf16.mxu0 %vm704_vm0, %v614_v11  ;;  %v599_v10 = vpack.c.bf16 %v3598_v29, %v3595_v5  ;;  %v619_v59 = vmul.f32 %v3266_v16, %v3272_v18  ;;  %v623_v18 = vmul.f32 %v3314_v31, %v3322_v33 }
  0x5a   : > { %2862 = vmatprep.mubr.msk.bf16.mxu1 %vm704_vm0, %v598_v7  ;;  %v650_v16 = vpack.c.bf16 %v621_v58, %v620_v51  ;;  %v652_v32 = vpack.c.bf16 %v625_v22, %v624_v21  ;;  %v626_v31 = vmul.f32 %v3353_v44, %v3361_v46  ;;  %v627_v33 = vmul.f32 %v3356_v45, %v3364_v47  ;;  %v4504_v7 = vld [vmem:[#allocation13_spill] sm:$0xff]  ;;  %v4508_v58 = vld [vmem:[#allocation18_spill] sm:$0xff]  ;;  %v4512_v22 = vld [vmem:[#allocation24_spill] sm:$0xff] }
  0x5b   : > { %1510 = vperm.xlu1 %2993, %v1431_v12   ;;  %v649_v15 = vpack.c.bf16 %v619_v59, %v618_v13  ;;  %v651_v23 = vpack.c.bf16 %v623_v18, %v622_v17  ;;  %v630_v44 = vmul.f32 %v3398_v60, %v3406_v62  ;;  %v631_v45 = vmul.f32 %v3403_v61, %v3409_v63  ;;  %v1439_v60 = vld [vmem:[%s3298_s17 + $0x98] sm:$0xff]  ;;  %v3019_v59 = vld [vmem:[%s4438_s8 + $0x10] sm:$0xff]  }
  0x5c   : > { %1694 = vperm.xlu0 %3004, %v3339_v39   ;;  %v653_v37 = vpack.c.bf16 %v627_v33, %v626_v31  ;;  %v654_v39 = vpack.c.bf16 %v629_v36, %v628_v35  ;;  %v632_v46 = vmul.f32 %v3413_v0, %v3422_v3  ;;  %v633_v47 = vmul.f32 %v3416_v1, %v3425_v4  ;;  %v4497_v0 = vld [vmem:[#allocation7_spill] sm:$0xff]  ;;  %v4498_v1 = vld [vmem:[#allocation6_spill] sm:$0xff]  ;;  %v4507_v13 = vld [vmem:[#allocation8_spill] sm:$0xff] }
  0x5d   : > { %v655_v49 = vpack.c.bf16 %v631_v45, %v630_v44  ;;  %2907 = vmatpush3.bf16.msra.mxu1 %v3018_v50  ;;  %v634_v61 = vmul.f32 %v3439_v19, %v3447_v26  ;;  %v635_v62 = vmul.f32 %v3442_v24, %v3450_v27  ;;  %v636_v63 = vmul.f32 %v3453_v28, %v3464_v40  ;;  %v1438_v3 = vld [vmem:[%s3298_s17 + $0x90] sm:$0xff]  ;;  %v1440_v4 = vld [vmem:[%s3298_s17 + $0xa0] sm:$0xff]  ;;  %v1443_v24 = vld [vmem:[%s3298_s17 + $0xb8] sm:$0xff] }
  0x5e   : > { %v656_v52 = vpack.c.bf16 %v633_v47, %v632_v46  ;;  %v4499_v26 = vld [vmem:[#allocation11_spill] sm:$0xff]  ;;  %v4500_v27 = vld [vmem:[#allocation9_spill] sm:$0xff]  ;;  %v4501_v28 = vld [vmem:[#allocation12_spill] sm:$0xff]  ;;  %2908 = vmatprep.subr.bf16.mxu1 %v3019_v59 }
  0x5f   : > { %2994 = vset.pattern.permute.xlu1 %v4496_v55  ;;  %v4502_v40 = vld [vmem:[#allocation10_spill] sm:$0xff]  ;;  %v1447_v51 = vld [vmem:[%s3298_s17 + $0xd8] sm:$0xff]  ;;  %v4510_v18 = vld [vmem:[#allocation23_spill] sm:$0xff] }
  0x60   : > { %2823 = vmatmul.mubr.msk.bf16.gmra.mxu0 %vm704_vm0, %v615_v8  ;;  %1718 = vperm.xlu1 %2994, %v3459_v38   ;;  %v657_v38 = vpack.c.bf16 %v635_v62, %v634_v61  ;;  %v1444_v8 = vld [vmem:[%s3298_s17 + $0xc0] sm:$0xff]  ;;  %v1442_v35 = vld [vmem:[%s3298_s17 + $0xb0] sm:$0xff] }
  0x61   : > { %2863 = vmatmul.mubr.msk.bf16.gmra.mxu1 %vm704_vm0, %v599_v10  ;;  %2874 = vmatprep.mubr.msk.bf16.mxu0 %vm704_vm0, %v648_v9  ;;  %v3021_v45 = vld [vmem:[%s4438_s8] sm:$0xff]   ;;  %v4515_v47 = vld [vmem:[#allocation19_spill] sm:$0xff] }
  0x62   : > { %1698 = vperm.xlu0 %3004, %v3419_v2   ;;  %v637_v2 = vmul.f32 %v4498_v1, %v4497_v0  ;;  %2909 = vmatpush3.bf16.msra.mxu1 %v3019_v59  ;;  %v4516_v0 = vld [vmem:[#allocation25_spill] sm:$0xff] }
  0x64   : > { %1722 = vperm.xlu1 %2994, %v1430_v41   ;;  %v658_v19 = vpack.c.bf16 %v637_v2, %v636_v63  ;;  %v638_v41 = vmul.f32 %v4500_v27, %v4499_v26 }
  0x66   : > { %1710 = vperm.xlu0 %3004, %v3470_v42   ;;  %v639_v42 = vmul.f32 %v4502_v40, %v4501_v28 }
  0x68   : > { %2875 = vmatmul.mubr.msk.bf16.vlgmr.msra.gmra.mxu0 %vm704_vm0, %v649_v15  ;;  %2995 = vset.pattern.permute.xlu1 %v4494_v54  ;;  %v659_v9 = vpack.c.bf16 %v639_v42, %v638_v41  ;;  %v642_v15 = vmul.f32 %v4508_v58, %v3545_v14  ;;  %v1451_v14 = vld [vmem:[%s3298_s17 + $0xf8] sm:$0xff] }
  0x69   : > { %2878 = vmatprep.mubr.msk.bf16.mxu0 %vm704_vm0, %v650_v16  ;;  %1515 = vperm.xlu1 %2995, %v1432_v20   ;;  %v4509_v16 = vld [vmem:[#allocation20_spill] sm:$0xff] }
  0x6a   : > { %1714 = vperm.xlu0 %3004, %v1428_v56   ;;  %v643_v17 = vmul.f32 %v4509_v16, %v3550_v25  ;;  %v646_v25 = vmul.f32 %v3587_v6, %v3595_v5  ;;  %v4514_v6 = vld [vmem:[#allocation17_spill] sm:$0xff] }
  0x6c   : > { %v661_v31 = vpack.c.bf16 %v643_v17, %v642_v15 }
  0x6d   : > { %1525 = vperm.xlu1 %2995, %v1434_v30  }
  0x6e   : > { %1726 = vperm.xlu0 %3004, %v1431_v12   ;;  %v4505_v12 = vld [vmem:[#allocation16_spill] sm:$0xff] }
  0x6f   : > { %v641_v56 = vmul.f32 %v4506_v48, %v4505_v12 }
  0x70   : > { %2879 = vmatmul.mubr.msk.bf16.gmra.mxu0 %vm704_vm0, %v651_v23  ;;  %v4513_v23 = vld [vmem:[#allocation22_spill] sm:$0xff] }
  0x71   : > { %2882 = vmatprep.mubr.msk.bf16.mxu0 %vm704_vm0, %v652_v32  ;;  %1530 = vperm.xlu1 %2995, %v1435_v34   ;;  %v1448_v32 = vld [vmem:[%s3298_s17 + $0xe0] sm:$0xff] }
  0x72   : > { %1730 = vperm.xlu0 %3004, %v1432_v20   ;;  %v4511_v20 = vld [vmem:[#allocation21_spill] sm:$0xff] }
  0x73   : > { %v644_v21 = vmul.f32 %v4511_v20, %v4510_v18 }
  0x75   : > { %2996 = vset.pattern.permute.xlu1 %v4496_v55 }
  0x76   : > { %1734 = vperm.xlu1 %2996, %v3475_v43   ;;  %1742 = vperm.xlu0 %3004, %v1435_v34   ;;  %v4503_v43 = vld [vmem:[#allocation15_spill] sm:$0xff]  ;;  %v647_v34 = vmul.f32 %v3590_v57, %v3598_v29 }
  0x77   : > { %v640_v11 = vmul.f32 %v4504_v7, %v4503_v43  ;;  %v1446_v29 = vld [vmem:[%s3298_s17 + $0xd0] sm:$0xff] }
  0x78   : > { %2883 = vmatmul.mubr.msk.bf16.gmra.mxu0 %vm704_vm0, %v653_v37  ;;  %v663_v36 = vpack.c.bf16 %v647_v34, %v646_v25  ;;  %v3020_v37 = vld [vmem:[%s4438_s8 + $0x8] sm:$0xff]  }
  0x79   : > { %2886 = vmatprep.mubr.msk.bf16.mxu0 %vm704_vm0, %v654_v39  ;;  %v660_v10 = vpack.c.bf16 %v641_v56, %v640_v11  ;;  %2910 = vmatprep.subr.bf16.mxu1 %v3020_v37 }
  0x7a   : > { %1738 = vperm.xlu1 %2996, %v1434_v30   ;;  %1746 = vperm.xlu0 %3004, %v1436_v53   ;;  %v645_v30 = vmul.f32 %v4513_v23, %v4512_v22 }
  0x7b   : > { %2911 = vmatpush3.bf16.msra.mxu1 %v3020_v37 }
  0x7c   : > { %v662_v33 = vpack.c.bf16 %v645_v30, %v644_v21  ;;  %2912 = vmatprep.subr.bf16.mxu1 %v3021_v45 }
  0x7e   : > { %2997 = vset.pattern.permute.xlu1 %v4494_v54  ;;  %1758 = vperm.xlu0 %3004, %v1439_v60  }
  0x7f   : > { %1535 = vperm.xlu1 %2997, %v1436_v53   ;;  %2913 = vmatpush3.bf16.msra.mxu1 %v3021_v45 }
  0x80   : > { %2887 = vmatmul.mubr.msk.bf16.gmra.mxu0 %vm704_vm0, %v655_v49 }
  0x81   : > { %2890 = vmatprep.mubr.msk.bf16.mxu0 %vm704_vm0, %v656_v52  ;;  %v1450_v52 = vld [vmem:[%s3298_s17 + $0xf0] sm:$0xff]  ;;  %s2544_s17 = sshll.u32 %s474_s29, 1 }
  0x82   : > { %1762 = vperm.xlu0 %3004, %v1440_v4   ;;  %s476_s30 = scalar_lea.vmem [#allocation3], %s2544_s17 }
  0x83   : > { %1545 = vperm.xlu1 %2997, %v1438_v3   ;;  %s2457_s27 = sshll.u32 %s476_s30, 4  ;;  %s2458_s27 = int_to_ptr.vmem [resolvable:$true] %s2457_s27 }
  0x84   : > { %s3022_s20 = scalar_lea.vmem %s2458_s27, 32 }
  0x85   : > { %p3023_p11 = scmp.ne.s32.totalorder %s2458_s27, %s3022_s20 }
  0x86   : > { %1774 = vperm.xlu0 %3004, %v1443_v24  }
  0x87   : > { %1550 = vperm.xlu1 %2997, %v1439_v60   ;;  %p3024_p12 = pnand %p3023_p11, %p3191_p5 }
  0x88   : > { %2891 = vmatmul.mubr.msk.bf16.gmra.mxu0 %vm704_vm0, %v657_v38 }
  0x89   : > { %2894 = vmatprep.mubr.msk.bf16.mxu0 %vm704_vm0, %v658_v19  ;;  %p3025_p13 = pneg %p3024_p12 }
  0x8a   : > { %1778 = vperm.xlu0 %3004, %v1444_v8  }
  0x8b   : > { %2998 = vset.pattern.permute.xlu1 %v4496_v55 }
  0x8c   : > { %1750 = vperm.xlu1 %2998, %v4507_v13  }
  0x8e   : > { %1790 = vperm.xlu0 %3004, %v1447_v51  }
  0x90   : > { %2895 = vmatmul.mubr.msk.bf16.gmra.mxu0 %vm704_vm0, %v659_v9  ;;  %1754 = vperm.xlu1 %2998, %v1438_v3  }
  0x91   : > { %2898 = vmatprep.mubr.msk.bf16.mxu0 %vm704_vm0, %v660_v10 }
  0x92   : > { %1794 = vperm.xlu0 %3004, %v1448_v32  }
  0x94   : > { %2999 = vset.pattern.permute.xlu1 %v4494_v54 }
  0x95   : > { %1555 = vperm.xlu1 %2999, %v1440_v4  }
  0x96   : > { %1806 = vperm.xlu0 %3004, %v1451_v14  }
  0x98   : > { %2899 = vmatmul.mubr.msk.bf16.gmra.mxu0 %vm704_vm0, %v661_v31 }
  0x99   : > { %2902 = vmatprep.mubr.msk.bf16.mxu0 %vm704_vm0, %v662_v33  ;;  %1565 = vperm.xlu1 %2999, %v1442_v35  }
  0x9d   : > { %1570 = vperm.xlu1 %2999, %v1443_v24  }
  0x9f   : > { %v3720_v57 = vpop.permute.xlu1 %1465 }
  0xa0   : > { %2903 = vmatmul.mubr.msk.bf16.gmra.mxu0 %vm704_vm0, %v663_v36 }
  0xa1   : > { %3000 = vset.pattern.permute.xlu1 %v4496_v55 }
  0xa2   : > { %1766 = vperm.xlu1 %3000, %v4514_v6  }
  0xa3   : > { %v3722_v5 = vpop.permute.xlu1 %1470 }
  0xa6   : > { %1770 = vperm.xlu1 %3000, %v1442_v35   ;;  %v3745_v60 = vpop.permute.xlu0 %1455 }
  0xa8   : > { %v3726_v39 = vpop.permute.xlu1 %1686 }
  0xaa   : > { %3001 = vset.pattern.permute.xlu1 %v4494_v54  ;;  %v3749_v62 = vpop.permute.xlu0 %1460 }
  0xab   : > { %1575 = vperm.xlu1 %3001, %v1444_v8  }
  0xae   : > { %v3728_v44 = vpop.permute.xlu1 %1690 }
  0xaf   : > { %1585 = vperm.xlu1 %3001, %v1446_v29   ;;  %v3757_v1 = vpop.permute.xlu0 %1480 }
  0xb3   : > { %1590 = vperm.xlu1 %3001, %v1447_v51   ;;  %v3733_v46 = vpop.permute.xlu1 %1475 }
  0xb5   : > { %v3761_v3 = vpop.permute.xlu0 %1500 }
  0xb7   : > { %3002 = vset.pattern.permute.xlu1 %v4496_v55  ;;  %v3737_v49 = vpop.permute.xlu1 %1485 }
  0xb8   : > { %1782 = vperm.xlu1 %3002, %v4515_v47  }
  0xb9   : > { %v3765_v38 = vpop.permute.xlu0 %1520 }
  0xbb   : > { %v3740_v50 = vpop.permute.xlu1 %1490 }
  0xbc   : > { %1786 = vperm.xlu1 %3002, %v1446_v29  }
  0xc0   : > { %3003 = vset.pattern.permute.xlu1 %v4494_v54  ;;  %v3743_v53 = vpop.permute.xlu1 %1702 }
  0xc1   : > { %1595 = vperm.xlu1 %3003, %v1448_v32  }
  0xc5   : > { %1605 = vperm.xlu1 %3003, %v1450_v52   ;;  %v3747_v61 = vpop.permute.xlu1 %1706 }
  0xc9   : > { %1610 = vperm.xlu1 %3003, %v1451_v14  }
  0xcd   : > { %3005 = vset.pattern.permute.xlu1 %v4496_v55  ;;  %v3769_v55 = vpop.permute.xlu0 %1540 }
  0xce   : > { %v3752_v63 = vpop.permute.xlu1 %1495  ;;  %1798 = vperm.xlu1 %3005, %v4516_v0  }
  0xd1   : > { %v3783_v42 = vpop.permute.xlu0 %1560 }
  0xd2   : > { %v3755_v54 = vpop.permute.xlu1 %1505  ;;  %1802 = vperm.xlu1 %3005, %v1450_v52  }
  0xd5   : > { %v3797_v8 = vpop.permute.xlu0 %1580 }
  0xd6   : > { %v3759_v2 = vpop.permute.xlu1 %1510 }
  0xd9   : > { %v3815_v17 = vpop.permute.xlu0 %1600 }
  0xda   : > { %4520 = vst [vmem:[#allocation9_spill] sm:$0xff] %v3815_v17 }
  0xdb   : > { %v3763_v4 = vpop.permute.xlu1 %1718 }
  0xdd   : > { %v3827_v30 = vpop.permute.xlu0 %1682 }
  0xdf   : > { %v3767_v19 = vpop.permute.xlu1 %1722 }
  0xe1   : > { %v3841_v35 = vpop.permute.xlu0 %1694 }
  0xe4   : > { %v3771_v24 = vpop.permute.xlu1 %1515 }
  0xe5   : > { %v3855_v52 = vpop.permute.xlu0 %1698 }
  0xe8   : > { %v3773_v26 = vpop.f32.mrf.mxu0  ;;  %v3779_v28 = vpop.permute.xlu1 %1525 }
  0xe9   : > { %v3775_v27 = vpop.f32.mrf.mxu1 }
  0xea   : > { %v3777_v41 = vpop.f32.mrf.mxu0 }
  0xeb   : > { %v3781_v40 = vpop.f32.mrf.mxu1 }
  0xec   : > { %v3785_v43 = vpop.f32.mrf.mxu0  ;;  %v3793_v48 = vpop.permute.xlu1 %1530 }
  0xed   : > { %v3787_v7 = vpop.f32.mrf.mxu1  ;;  %4517 = vst [vmem:[#allocation7_spill] sm:$0xff] %v3793_v48 }
  0xee   : > { %v3789_v11 = vpop.f32.mrf.mxu0 }
  0xef   : > { %v3791_v12 = vpop.f32.mrf.mxu1 }
  0xf0   : > { %v3795_v56 = vpop.f32.mrf.mxu0 }
  0xf1   : > { %v3801_v10 = vpop.f32.mrf.mxu1  ;;  %v3803_v13 = vpop.permute.xlu1 %1734 }
  0xf2   : > { %v3799_v9 = vpop.f32.mrf.mxu0  ;;  %4518 = vst [vmem:[#allocation6_spill] sm:$0xff] %v3803_v13 }
  0xf3   : > { %v3809_v58 = vpop.f32.mrf.mxu1 }
  0xf4   : > { %v3805_v59 = vpop.f32.mrf.mxu0 }
  0xf5   : > { %v3811_v15 = vpop.permute.xlu1 %1738  ;;  %v3819_v20 = vpop.f32.mrf.mxu1 }
  0xf6   : > { %v3807_v51 = vpop.f32.mrf.mxu0  ;;  %4519 = vst [vmem:[#allocation11_spill] sm:$0xff] %v3811_v15 }
  0xf7   : > { %v3829_v32 = vpop.f32.mrf.mxu1 }
  0xf8   : > { %v3813_v16 = vpop.f32.mrf.mxu0 }
  0xf9   : > { %v3837_v25 = vpop.f32.mrf.mxu1 }
  0xfa   : > { %v3817_v18 = vpop.f32.mrf.mxu0  ;;  %v3823_v22 = vpop.permute.xlu1 %1535 }
  0xfb   : > { %4521 = vst [vmem:[#allocation12_spill] sm:$0xff] %v3823_v22  ;;  %v3847_v6 = vpop.f32.mrf.mxu1 }
  0xfc   : > { %v3821_v21 = vpop.f32.mrf.mxu0 }
  0xfd   : > { %v3857_v0 = vpop.f32.mrf.mxu1 }
  0xfe   : > { %v3825_v23 = vpop.f32.mrf.mxu0  ;;  %v3833_v33 = vpop.permute.xlu1 %1545  ;;  %4532 = vst [vmem:[#allocation24_spill] sm:$0xff] %v3857_v0  ;;  %v1029_v0 = vadd.f32 %v3775_v27, %v3773_v26 }
  0xff   : > { %4522 = vst [vmem:[#allocation10_spill] sm:$0xff] %v3825_v23  ;;  %4524 = vst [vmem:[#allocation13_spill] sm:$0xff] %v3833_v33 }
 0x100   : > { %v3831_v31 = vpop.f32.mrf.mxu0 }
 0x101   : > { %4523 = vst [vmem:[#allocation15_spill] sm:$0xff] %v3831_v31  ;;  %v4467_v31 = vlaneseq }
 0x102   : > { %v3835_v14 = vpop.f32.mrf.mxu0  ;;  %v3843_v36 = vpop.permute.xlu1 %1550 }
 0x103   : > { %4525 = vst [vmem:[#allocation16_spill] sm:$0xff] %v3835_v14  ;;  %4527 = vst [vmem:[#allocation8_spill] sm:$0xff] %v3843_v36  ;;  %v3865_v36 = vpop.f32.mrf.mxu1 }
 0x104   : > { %v3839_v34 = vpop.f32.mrf.mxu0  ;;  %4536 = vst [vmem:[#allocation25_spill] sm:$0xff] %v3865_v36 }
 0x105   : > { %4526 = vst [vmem:[#allocation14_spill] sm:$0xff] %v3839_v34  ;;  %v3869_v34 = vpop.permute.xlu0 %1710 }
 0x106   : > { %v3845_v37 = vpop.f32.mrf.mxu0 }
 0x107   : > { %4528 = vst [vmem:[#allocation18_spill] sm:$0xff] %v3845_v37  ;;  %v3851_v45 = vpop.permute.xlu1 %1750 }
 0x108   : > { %v3849_v29 = vpop.f32.mrf.mxu0  ;;  %4530 = vst [vmem:[#allocation23_spill] sm:$0xff] %v3851_v45 }
 0x109   : > { %4529 = vst [vmem:[#allocation20_spill] sm:$0xff] %v3849_v29 }
 0x10a   : > { %v3853_v47 = vpop.f32.mrf.mxu0 }
 0x10b   : > { %4531 = vst [vmem:[#allocation21_spill] sm:$0xff] %v3853_v47  ;;  %v3861_v33 = vpop.permute.xlu1 %1754  ;;  %v3875_v47 = vpop.f32.mrf.mxu1 }
 0x10c   : > { %v3859_v17 = vpop.f32.mrf.mxu0  ;;  %4534 = vst [vmem:[#allocation17_spill] sm:$0xff] %v3861_v33  ;;  %4540 = vst [vmem:[#allocation29_spill] sm:$0xff] %v3875_v47  ;;  %v3883_v33 = vpop.permute.xlu0 %1714 }
 0x10d   : > { %4533 = vst [vmem:[#allocation22_spill] sm:$0xff] %v3859_v17 }
 0x10e   : > { %v3863_v22 = vpop.f32.mrf.mxu0 }
 0x10f   : > { %4535 = vst [vmem:[#allocation19_spill] sm:$0xff] %v3863_v22  ;;  %v3885_v22 = vpop.f32.mrf.mxu1 }
 0x110   : > { %v3867_v37 = vpop.f32.mrf.mxu0  ;;  %v3873_v45 = vpop.permute.xlu1 %1555  ;;  %4544 = vst [vmem:[#allocation33_spill] sm:$0xff] %v3885_v22 }
 0x111   : > { %4537 = vst [vmem:[#allocation26_spill] sm:$0xff] %v3867_v37  ;;  %4539 = vst [vmem:[#allocation28_spill] sm:$0xff] %v3873_v45  ;;  %v3894_v45 = vshrl.u32 %v4467_v31, 7  ;;  %v1452_v31 = vld [vmem:[%s4436_s6] sm:$0x3] }
 0x112   : > { %v3871_v29 = vpop.f32.mrf.mxu0 }
 0x113   : > { %4538 = vst [vmem:[#allocation27_spill] sm:$0xff] %v3871_v29  ;;  %v3891_v29 = vpop.f32.mrf.mxu1  ;;  %4548 = vst [vmem:[#allocation37_spill] sm:$0xff] %v3894_v45  ;;  %v1615_v22 = vsub.s32 0, %v3894_v45 }
 0x114   : > { %v3877_v15 = vpop.f32.mrf.mxu0  ;;  %v3881_v17 = vpop.permute.xlu1 %1565  ;;  %4547 = vst [vmem:[#allocation36_spill] sm:$0xff] %v3891_v29 }
 0x115   : > { %4541 = vst [vmem:[#allocation30_spill] sm:$0xff] %v3877_v15  ;;  %4543 = vst [vmem:[#allocation32_spill] sm:$0xff] %v3881_v17  ;;  %v3904_v36 = vpop.f32.mrf.mxu1 }
 0x116   : > { %v3879_v14 = vpop.f32.mrf.mxu0  ;;  %4552 = vst [vmem:[#allocation41_spill] sm:$0xff] %v3904_v36 }
 0x117   : > { %4542 = vst [vmem:[#allocation31_spill] sm:$0xff] %v3879_v14  ;;  %v3900_v14 = vpop.permute.xlu0 %1726 }
 0x118   : > { %v3887_v37 = vpop.f32.mrf.mxu0  ;;  %v3898_v15 = vpop.permute.xlu1 %1570 }
 0x119   : > { %4545 = vst [vmem:[#allocation34_spill] sm:$0xff] %v3887_v37  ;;  %4550 = vst [vmem:[#allocation39_spill] sm:$0xff] %v3898_v15  ;;  %v3917_v15 = vpop.f32.mrf.mxu1 }
 0x11a   : > { %v3889_v13 = vpop.f32.mrf.mxu0  ;;  %4556 = vst [vmem:[#allocation45_spill] sm:$0xff] %v3917_v15 }
 0x11b   : > { %4546 = vst [vmem:[#allocation35_spill] sm:$0xff] %v3889_v13  ;;  %v3919_v23 = vpop.permute.xlu0 %1730 }
 0x11c   : > { %v3896_v47 = vpop.f32.mrf.mxu0 }
 0x11d   : > { %4549 = vst [vmem:[#allocation38_spill] sm:$0xff] %v3896_v47  ;;  %v3909_v13 = vpop.permute.xlu1 %1766  ;;  %v1811_v47 = vsub.s32 1, %v3894_v45  ;;  %v3933_v45 = vpop.f32.mrf.mxu1 }
 0x11e   : > { %v3902_v17 = vpop.f32.mrf.mxu0  ;;  %4554 = vst [vmem:[#allocation43_spill] sm:$0xff] %v3909_v13 }
 0x11f   : > { %4551 = vst [vmem:[#allocation40_spill] sm:$0xff] %v3902_v17  ;;  %v3921_v17 = vrot.slane %v1452_v31, %v1615_v22  ;;  %v3925_v48 = vrot.slane %v1452_v31, %v1811_v47 }
 0x120   : > { %v3907_v37 = vpop.f32.mrf.mxu0 }
 0x121   : > { %4553 = vst [vmem:[#allocation42_spill] sm:$0xff] %v3907_v37  ;;  %v3929_v13 = vpop.permute.xlu1 %1770  ;;  %v1620_v22 = vmul.f32 %v3921_v17, %v3722_v5  ;;  %v1814_v31 = vmul.f32 %v3925_v48, %v3726_v39  ;;  %v1617_v47 = vmul.f32 %v3921_v17, %v3745_v60  ;;  %v1815_v27 = vmul.f32 %v3925_v48, %v3728_v44 }
 0x122   : > { %v3915_v29 = vpop.f32.mrf.mxu0  ;;  %4559 = vst [vmem:[#allocation48_spill] sm:$0xff] %v3929_v13  ;;  %v1618_v5 = vmul.f32 %v3921_v17, %v3749_v62  ;;  %v3955_v39 = vmul.f32 %v3921_v17, %v3757_v1  ;;  %v1624_v62 = vmul.f32 %v3921_v17, %v3740_v50  ;;  %v3969_v1 = vmul.f32 %v3921_v17, %v3761_v3 }
 0x123   : > { %4555 = vst [vmem:[#allocation44_spill] sm:$0xff] %v3915_v29  ;;  %v1619_v29 = vmul.f32 %v3921_v17, %v3720_v57  ;;  %v1621_v57 = vmul.f32 %v3921_v17, %v3733_v46  ;;  %v1623_v46 = vmul.f32 %v3921_v17, %v3737_v49  ;;  %v3980_v49 = vld [vmem:[%s4437_s7] ss:$0 sm:$0xff]  ;;  %v3984_v3 = vmul.f32 %v3925_v48, %v3743_v53 }
 0x124   : > { %v3923_v36 = vpop.f32.mrf.mxu0 }
 0x125   : > { %4557 = vst [vmem:[#allocation46_spill] sm:$0xff] %v3923_v36  ;;  %v3945_v36 = vpop.permute.xlu0 %1742 }
 0x126   : > { %v3927_v37 = vpop.f32.mrf.mxu0  ;;  %v3973_v13 = vpop.permute.xlu1 %1575 }
 0x127   : > { %4558 = vst [vmem:[#allocation47_spill] sm:$0xff] %v3927_v37  ;;  %v1021_v37 = vadd.f32 %v3781_v40, %v3777_v41  ;;  %v1032_v41 = vadd.f32 %v3787_v7, %v3785_v43  ;;  %v1813_v40 = vmul.f32 %v3925_v48, %v3827_v30  ;;  %v1816_v43 = vmul.f32 %v3925_v48, %v3841_v35 }
 0x128   : > { %v2876_v15 = vpop.f32.mrf.mxu0  ;;  %v1024_v30 = vadd.f32 %v3791_v12, %v3789_v11  ;;  %v3988_v35 = vmul.f32 %v3921_v17, %v3765_v38  ;;  %v3994_v11 = vmul.f32 %v3921_v17, %v3769_v55  ;;  %v1045_v55 = vadd.f32 %v3801_v10, %v3795_v56 }
 0x129   : > { %v1390_v26 = vadd.f32 %v2876_v15, %v1029_v0  ;;  %v3961_v15 = vpop.f32.mrf.mxu1  ;;  %v4002_v53 = vpop.permute.xlu0 %1746  ;;  %v1048_v56 = vadd.f32 %v3819_v20, %v3805_v59 }
 0x12a   : > { %v1261_v60 = vpop.f32.mrf.mxu0 }
 0x12b   : > { %v1651_v44 = vadd.f32 %v1619_v29, %v1390_v26  ;;  %v1388_v0 = vadd.f32 %v1261_v60, %v1021_v37  ;;  %v1819_v26 = vmul.f32 %v3925_v48, %v3747_v61  ;;  %v4010_v61 = vmul.f32 %v3921_v17, %v3797_v8 }
 0x12c   : > { %v2877_v7 = vpop.f32.mrf.mxu0  ;;  %v4025_v8 = vmul.f32 %v3925_v48, %v3763_v4  ;;  %v1817_v4 = vmul.f32 %v3925_v48, %v3855_v52 }
 0x12d   : > { %v1847_v37 = vadd.f32 %v1815_v27, %v1651_v44  ;;  %v1649_v50 = vadd.f32 %v1617_v47, %v1388_v0  ;;  %v1391_v29 = vadd.f32 %v2877_v7, %v1032_v41  ;;  %v3998_v47 = vmul.f32 %v3921_v17, %v3783_v42  ;;  %v4000_v27 = vpop.f32.mrf.mxu1 }
 0x12e   : > { %v1264_v12 = vpop.f32.mrf.mxu0  ;;  %v4006_v44 = vmul.f32 %v3921_v17, %v3752_v63  ;;  %v1627_v7 = vmul.f32 %v3921_v17, %v3755_v54  ;;  %v4021_v63 = vmul.f32 %v3921_v17, %v3759_v2 }
 0x12f   : > { %v1845_v60 = vadd.f32 %v1813_v40, %v1649_v50  ;;  %v1652_v41 = vadd.f32 %v1620_v22, %v1391_v29  ;;  %v1389_v38 = vadd.f32 %v1264_v12, %v1024_v30  ;;  %v1886_v42 = vadd.f32 %v3980_v49, %v1847_v37  ;;  %v4029_v50 = vpop.permute.xlu1 %1585  ;;  %v4031_v54 = vpop.f32.mrf.mxu1 }
 0x130   : > { %v2880_v0 = vpop.f32.mrf.mxu0  ;;  %v1037_v22 = vadd.f32 %v3809_v58, %v3799_v9  ;;  %v4039_v12 = vpop.permute.xlu0 %1758 }
 0x131   : > { %v1848_v40 = vadd.f32 %v1816_v43, %v1652_v41  ;;  %v1650_v30 = vadd.f32 %v1618_v5, %v1389_v38  ;;  %v1394_v10 = vadd.f32 %v2880_v0, %v1045_v55  ;;  %v1884_v9 = vadd.f32 %v3980_v49, %v1845_v60 }
 0x132   : > { %v1277_v37 = vpop.f32.mrf.mxu0  ;;  %v1823_v43 = vmul.f32 %v3925_v48, %v3767_v19  ;;  %v1918_v29 = vmax.f32 %v1886_v42, 0.0  ;;  %v1061_v0 = vadd.f32 %v3837_v25, %v3813_v16  ;;  %v1820_v19 = vmul.f32 %v3925_v48, %v3869_v34 }
 0x133   : > { %v1887_v58 = vadd.f32 %v3980_v49, %v1848_v40  ;;  %v1846_v5 = vadd.f32 %v1814_v31, %v1650_v30  ;;  %v1392_v2 = vadd.f32 %v1277_v37, %v1037_v22  ;;  %v1655_v59 = vadd.f32 %v1623_v46, %v1394_v10  ;;  %v4048_v46 = vpop.f32.mrf.mxu1 }
 0x134   : > { %v2881_v20 = vpop.f32.mrf.mxu0  ;;  %v1040_v31 = vadd.f32 %v3829_v32, %v3807_v51  ;;  %v1916_v22 = vmax.f32 %v1884_v9, 0.0  ;;  %v1821_v51 = vmul.f32 %v3925_v48, %v3883_v33  ;;  %v1053_v34 = vadd.f32 %v3847_v6, %v3817_v18  ;;  %v4070_v18 = vpop.permute.xlu0 %1762 }
 0x135   : > { %v1919_v41 = vmax.f32 %v1887_v58, 0.0  ;;  %v1885_v38 = vadd.f32 %v3980_v49, %v1846_v5  ;;  %v1653_v55 = vadd.f32 %v1621_v57, %v1392_v2  ;;  %v1395_v60 = vadd.f32 %v2881_v20, %v1048_v56  ;;  %v4056_v56 = vpop.permute.xlu1 %1590  ;;  %v4560_v2 = vld [vmem:[#allocation24_spill] sm:$0xff] }
 0x136   : > { %v1851_v52 = vadd.f32 %v1819_v26, %v1655_v59  ;;  %v1280_v42 = vpop.f32.mrf.mxu0  ;;  %v4052_v57 = vmul.f32 %v3921_v17, %v3771_v24  ;;  %v1824_v24 = vmul.f32 %v3925_v48, %v3900_v14 }
 0x137   : > { %v1949_v40 = vpack.c.bf16 %v1919_v41, %v1918_v29  ;;  %v1917_v30 = vmax.f32 %v1885_v38, 0.0  ;;  %v1656_v10 = vadd.f32 %v1624_v62, %v1395_v60  ;;  %v1849_v32 = vadd.f32 %v1817_v4, %v1653_v55  ;;  %v4068_v29 = vpop.f32.mrf.mxu1  ;;  %v4563_v60 = vld [vmem:[#allocation25_spill] sm:$0xff] }
 0x138   : > { %v1393_v16 = vadd.f32 %v1280_v42, %v1040_v31  ;;  %v2884_v25 = vpop.f32.mrf.mxu0  ;;  %v1631_v62 = vmul.f32 %v3921_v17, %v3779_v28  ;;  %v1890_v58 = vadd.f32 %v3980_v49, %v1851_v52  ;;  %v1064_v4 = vadd.f32 %v4560_v2, %v3821_v21  ;;  %v4561_v28 = vld [vmem:[#allocation7_spill] sm:$0xff]  ;;  %v4564_v42 = vld [vmem:[#allocation6_spill] sm:$0xff]  ;;  %v4567_v2 = vld [vmem:[#allocation16_spill] sm:$0xff] }
 0x139   : > { %v1852_v26 = vadd.f32 %v1820_v19, %v1656_v10  ;;  %v1398_v37 = vadd.f32 %v2884_v25, %v1061_v0  ;;  %v1948_v9 = vpack.c.bf16 %v1917_v30, %v1916_v22  ;;  %v1632_v14 = vmul.f32 %v3921_v17, %v4561_v28  ;;  %v4083_v55 = vpop.permute.xlu1 %1782 }
 0x13a   : > { %v1654_v33 = vadd.f32 %v3955_v39, %v1393_v16  ;;  %v1293_v5 = vpop.f32.mrf.mxu0  ;;  %v4078_v39 = vmul.f32 %v3925_v48, %v3919_v23  ;;  %v1888_v41 = vadd.f32 %v3980_v49, %v1849_v32  ;;  %v4090_v23 = vmul.f32 %v3925_v48, %v4564_v42  ;;  %v4565_v32 = vld [vmem:[#allocation15_spill] sm:$0xff]  ;;  %v4572_v42 = vld [vmem:[#allocation18_spill] sm:$0xff] }
 0x13b   : > { %v1891_v6 = vadd.f32 %v3980_v49, %v1852_v26  ;;  %v1659_v59 = vadd.f32 %v1627_v7, %v1398_v37  ;;  %v1396_v20 = vadd.f32 %v1293_v5, %v1053_v34  ;;  %2914 = vmatprep.mubr.msk.bf16.mxu1 %vm704_vm0, %v1948_v9  ;;  %v4562_v7 = vld [vmem:[#allocation10_spill] sm:$0xff]  ;;  %v1922_v22 = vmax.f32 %v1890_v58, 0.0  ;;  %v4097_v34 = vpop.f32.mrf.mxu1 }
 0x13c   : > { %v1850_v21 = vadd.f32 %v3984_v3, %v1654_v33  ;;  %v2885_v38 = vpop.f32.mrf.mxu0  ;;  %2915 = vmatmul.mubr.msk.bf16.vlgmr.msra.gmra.mxu1 %vm704_vm0, %v1949_v40  ;;  %v1056_v31 = vadd.f32 %v4563_v60, %v4562_v7  ;;  %v4566_v40 = vld [vmem:[#allocation29_spill] sm:$0xff]  ;;  %v1828_v25 = vmul.f32 %v3925_v48, %v3945_v36  ;;  %v1920_v37 = vmax.f32 %v1888_v41, 0.0  ;;  %v4570_v60 = vld [vmem:[#allocation14_spill] sm:$0xff] }
 0x13d   : > { %v1923_v0 = vmax.f32 %v1891_v6, 0.0  ;;  %v1657_v19 = vadd.f32 %v4006_v44, %v1396_v20  ;;  %v1399_v52 = vadd.f32 %v2885_v38, %v1064_v4  ;;  %v1855_v3 = vadd.f32 %v1823_v43, %v1659_v59  ;;  %v4568_v4 = vld [vmem:[#allocation33_spill] sm:$0xff]  ;;  %v4569_v6 = vld [vmem:[#allocation11_spill] sm:$0xff]  ;;  %v1775_v20 = vpop.permute.xlu0 %1774  ;;  %v4110_v7 = vpop.permute.xlu1 %1786 }
 0x13e   : > { %v1889_v30 = vadd.f32 %v3980_v49, %v1850_v21  ;;  %v1296_v10 = vpop.f32.mrf.mxu0  ;;  %v1077_v16 = vadd.f32 %v4566_v40, %v4565_v32  ;;  %v1069_v43 = vadd.f32 %v4568_v4, %v4567_v2  ;;  %v1827_v59 = vmul.f32 %v3925_v48, %v4569_v6  ;;  %v4576_v4 = vld [vmem:[#allocation20_spill] sm:$0xff] }
 0x13f   : > { %v1660_v44 = vadd.f32 %v4021_v63, %v1399_v52  ;;  %v1397_v26 = vadd.f32 %v1296_v10, %v1056_v31  ;;  %v1853_v33 = vadd.f32 %v1821_v51, %v1657_v19  ;;  %v1951_v58 = vpack.c.bf16 %v1923_v0, %v1922_v22  ;;  %v4571_v31 = vld [vmem:[#allocation36_spill] sm:$0xff]  ;;  %v4114_v19 = vpop.f32.mrf.mxu1 }
 0x140   : > { %v1921_v9 = vmax.f32 %v1889_v30, 0.0  ;;  %v2888_v5 = vpop.f32.mrf.mxu0  ;;  %v4107_v21 = vmul.f32 %v3925_v48, %v4002_v53  ;;  %v1894_v63 = vadd.f32 %v3980_v49, %v1855_v3  ;;  %v1080_v0 = vadd.f32 %v4571_v31, %v4570_v60  ;;  %v4573_v53 = vld [vmem:[#allocation41_spill] sm:$0xff]  ;;  %v4574_v30 = vld [vmem:[#allocation12_spill] sm:$0xff] }
 0x141   : > { %v1856_v28 = vadd.f32 %v1824_v24, %v1660_v44  ;;  %v1658_v36 = vadd.f32 %v3969_v1, %v1397_v26  ;;  %v1402_v41 = vadd.f32 %v2888_v5, %v1077_v16  ;;  %v1072_v22 = vadd.f32 %v4573_v53, %v4572_v42  ;;  %v4578_v31 = vld [vmem:[#allocation8_spill] sm:$0xff] }
 0x142   : > { %v1309_v51 = vpop.f32.mrf.mxu0  ;;  %v1950_v38 = vpack.c.bf16 %v1921_v9, %v1920_v37  ;;  %v1633_v3 = vmul.f32 %v3921_v17, %v4574_v30  ;;  %v1892_v10 = vadd.f32 %v3980_v49, %v1853_v33  ;;  %v1832_v5 = vmul.f32 %v3925_v48, %v4039_v12  ;;  %v4580_v30 = vld [vmem:[#allocation22_spill] sm:$0xff] }
 0x143   : > { %v1895_v24 = vadd.f32 %v3980_v49, %v1856_v28  ;;  %v1854_v1 = vadd.f32 %v4025_v8, %v1658_v36  ;;  %v1400_v52 = vadd.f32 %v1309_v51, %v1069_v43  ;;  %v1663_v32 = vadd.f32 %v1631_v62, %v1402_v41  ;;  %v4575_v8 = vld [vmem:[#allocation13_spill] sm:$0xff]  ;;  %v4133_v28 = vpop.f32.mrf.mxu1  ;;  %v1779_v36 = vpop.permute.xlu0 %1778 }
 0x144   : > { %2918 = vmatprep.mubr.msk.bf16.mxu1 %vm704_vm0, %v1950_v38  ;;  %v2889_v40 = vpop.f32.mrf.mxu0  ;;  %v1635_v9 = vmul.f32 %v3921_v17, %v4575_v8  ;;  %v1926_v2 = vmax.f32 %v1894_v63, 0.0  ;;  %v4577_v43 = vld [vmem:[#allocation45_spill] sm:$0xff]  ;;  %v1924_v38 = vmax.f32 %v1892_v10, 0.0  ;;  %v1096_v10 = vadd.f32 %v3961_v15, %v4580_v30  ;;  %v4583_v15 = vld [vmem:[#allocation19_spill] sm:$0xff]  ;;  %v4587_v30 = vld [vmem:[#allocation28_spill] sm:$0xff] }
 0x145   : > { %v1927_v16 = vmax.f32 %v1895_v24, 0.0  ;;  %v1893_v44 = vadd.f32 %v3980_v49, %v1854_v1  ;;  %v1661_v26 = vadd.f32 %v4052_v57, %v1400_v52  ;;  %v1403_v37 = vadd.f32 %v2889_v40, %v1080_v0  ;;  %2919 = vmatmul.mubr.msk.bf16.gmra.mxu1 %vm704_vm0, %v1951_v58 }
 0x146   : > { %v1859_v33 = vadd.f32 %v1827_v59, %v1663_v32  ;;  %v1312_v62 = vpop.f32.mrf.mxu0  ;;  %v1093_v6 = vadd.f32 %v4577_v43, %v4576_v4  ;;  %v4137_v58 = vmul.f32 %v3925_v48, %v4070_v18  ;;  %v4140_v59 = vpop.permute.xlu1 %1595  ;;  %v1636_v0 = vmul.f32 %v3921_v17, %v4578_v31 }
 0x147   : > { %v1925_v41 = vmax.f32 %v1893_v44, 0.0  ;;  %v1664_v57 = vadd.f32 %v1632_v14, %v1403_v37  ;;  %v1401_v51 = vadd.f32 %v1312_v62, %v1072_v22  ;;  %v1857_v60 = vadd.f32 %v4078_v39, %v1661_v26  ;;  %v4579_v14 = vld [vmem:[#allocation21_spill] sm:$0xff]  ;;  %v4153_v32 = vpop.f32.mrf.mxu1 }
 0x148   : > { %v2892_v12 = vpop.f32.mrf.mxu0  ;;  %v1953_v63 = vpack.c.bf16 %v1927_v16, %v1926_v2  ;;  %v1085_v42 = vadd.f32 %v3933_v45, %v4579_v14  ;;  %v4148_v18 = vmul.f32 %v3925_v48, %v1775_v20  ;;  %v1898_v53 = vadd.f32 %v3980_v49, %v1859_v33  ;;  %v4581_v16 = vld [vmem:[#allocation23_spill] sm:$0xff]  ;;  %v4582_v44 = vld [vmem:[#allocation17_spill] sm:$0xff]  ;;  %v1791_v33 = vpop.permute.xlu0 %1790 }
 0x149   : > { %v1860_v24 = vadd.f32 %v1828_v25, %v1664_v57  ;;  %v1662_v1 = vadd.f32 %v3988_v35, %v1401_v51  ;;  %v1406_v52 = vadd.f32 %v2892_v12, %v1093_v6  ;;  %v1952_v22 = vpack.c.bf16 %v1925_v41, %v1924_v38  ;;  %v4584_v38 = vld [vmem:[#allocation26_spill] sm:$0xff] }
 0x14a   : > { %v1325_v39 = vpop.f32.mrf.mxu0  ;;  %v1830_v45 = vmul.f32 %v3925_v48, %v4581_v16  ;;  %v1831_v20 = vmul.f32 %v3925_v48, %v4582_v44  ;;  %v1896_v26 = vadd.f32 %v3980_v49, %v1857_v60  ;;  %v1088_v2 = vadd.f32 %v4000_v27, %v4583_v15  ;;  %v4170_v51 = vpop.permute.xlu1 %1605 }
 0x14b   : > { %v1899_v25 = vadd.f32 %v3980_v49, %v1860_v24  ;;  %v1858_v35 = vadd.f32 %v4090_v23, %v1662_v1  ;;  %v1667_v40 = vadd.f32 %v1635_v9, %v1406_v52  ;;  %v1404_v37 = vadd.f32 %v1325_v39, %v1085_v42  ;;  %2922 = vmatprep.mubr.msk.bf16.mxu1 %vm704_vm0, %v1952_v22  ;;  %v4174_v27 = vpop.f32.mrf.mxu1  ;;  %v4585_v1 = vld [vmem:[#allocation27_spill] sm:$0xff] }
 0x14c   : > { %v2893_v8 = vpop.f32.mrf.mxu0  ;;  %v4168_v4 = vmul.f32 %v3925_v48, %v1779_v36  ;;  %v1930_v43 = vmax.f32 %v1898_v53, 0.0  ;;  %v1109_v60 = vadd.f32 %v4031_v54, %v4584_v38  ;;  %v1928_v52 = vmax.f32 %v1896_v26, 0.0  ;;  %v4588_v26 = vld [vmem:[#allocation30_spill] sm:$0xff] }
 0x14d   : > { %v1931_v62 = vmax.f32 %v1899_v25, 0.0  ;;  %v1897_v23 = vadd.f32 %v3980_v49, %v1858_v35  ;;  %v1407_v9 = vadd.f32 %v2893_v8, %v1096_v10  ;;  %2923 = vmatmul.mubr.msk.bf16.gmra.mxu1 %vm704_vm0, %v1953_v63  ;;  %v1863_v6 = vadd.f32 %v1831_v20, %v1667_v40  ;;  %v1795_v40 = vpop.permute.xlu0 %1794  ;;  %v4589_v8 = vld [vmem:[#allocation48_spill] sm:$0xff] }
 0x14e   : > { %v1665_v41 = vadd.f32 %v1633_v3, %v1404_v37  ;;  %v1328_v57 = vpop.f32.mrf.mxu0  ;;  %v1101_v63 = vadd.f32 %v4048_v46, %v4585_v1  ;;  %v4586_v3 = vld [vmem:[#allocation32_spill] sm:$0xff]  ;;  %v1637_v10 = vmul.f32 %v3921_v17, %v4587_v30  ;;  %v4192_v37 = vmul.f32 %v3925_v48, %v1795_v40  ;;  %v4593_v1 = vld [vmem:[#allocation35_spill] sm:$0xff] }
 0x14f   : > { %v1929_v12 = vmax.f32 %v1897_v23, 0.0  ;;  %v1668_v31 = vadd.f32 %v1636_v0, %v1407_v9  ;;  %v1405_v24 = vadd.f32 %v1328_v57, %v1088_v2  ;;  %v1955_v42 = vpack.c.bf16 %v1931_v62, %v1930_v43  ;;  %v4198_v62 = vpop.permute.xlu1 %1610  ;;  %v4590_v23 = vld [vmem:[#allocation31_spill] sm:$0xff] }
 0x150   : > { %v1861_v36 = vadd.f32 %v4107_v21, %v1665_v41  ;;  %v2896_v14 = vpop.f32.mrf.mxu0  ;;  %v1639_v53 = vmul.f32 %v3921_v17, %v4586_v3  ;;  %v4185_v0 = vmul.f32 %v3925_v48, %v1791_v33  ;;  %v1902_v46 = vadd.f32 %v3980_v49, %v1863_v6  ;;  %v2864_v21 = vpop.f32.mrf.mxu1  ;;  %v4591_v6 = vld [vmem:[#allocation39_spill] sm:$0xff] }
 0x151   : > { %v1864_v39 = vadd.f32 %v1832_v5, %v1668_v31  ;;  %v1666_v22 = vadd.f32 %v3994_v11, %v1405_v24  ;;  %v1410_v54 = vadd.f32 %v2896_v14, %v1109_v60  ;;  %v1954_v35 = vpack.c.bf16 %v1929_v12, %v1928_v52  ;;  %v4592_v31 = vld [vmem:[#allocation34_spill] sm:$0xff] }
 0x152   : > { %v1341_v25 = vpop.f32.mrf.mxu0  ;;  %v1112_v11 = vadd.f32 %v4068_v29, %v4588_v26  ;;  %v1835_v15 = vmul.f32 %v3925_v48, %v4589_v8  ;;  %v1900_v2 = vadd.f32 %v3980_v49, %v1861_v36  ;;  %v1640_v41 = vmul.f32 %v3921_v17, %v4591_v6 }
 0x153   : > { %v1903_v16 = vadd.f32 %v3980_v49, %v1864_v39  ;;  %v1862_v44 = vadd.f32 %v1830_v45, %v1666_v22  ;;  %v1671_v20 = vadd.f32 %v1639_v53, %v1410_v54  ;;  %v1408_v5 = vadd.f32 %v1341_v25, %v1101_v63  ;;  %2926 = vmatprep.mubr.msk.bf16.mxu1 %vm704_vm0, %v1954_v35  ;;  %v4211_v22 = vpop.permute.xlu1 %1798  ;;  %v4594_v54 = vld [vmem:[#allocation43_spill] sm:$0xff] }
 0x154   : > { %v2897_v33 = vpop.f32.mrf.mxu0  ;;  %v1104_v45 = vadd.f32 %v4097_v34, %v4590_v23  ;;  %v1934_v57 = vmax.f32 %v1902_v46, 0.0  ;;  %v1125_v24 = vadd.f32 %v4114_v19, %v4592_v31  ;;  %v1117_v63 = vadd.f32 %v4133_v28, %v4593_v1  ;;  %v1132_v34 = vpop.f32.mrf.mxu1  ;;  %v4595_v46 = vld [vmem:[#allocation38_spill] sm:$0xff] }
 0x155   : > { %v1935_v9 = vmax.f32 %v1903_v16, 0.0  ;;  %v1901_v43 = vadd.f32 %v3980_v49, %v1862_v44  ;;  %v1669_v29 = vadd.f32 %v1637_v10, %v1408_v5  ;;  %2927 = vmatmul.mubr.msk.bf16.gmra.mxu1 %vm704_vm0, %v1955_v42  ;;  %v1867_v38 = vadd.f32 %v1835_v15, %v1671_v20 }
 0x156   : > { %v1411_v60 = vadd.f32 %v2897_v33, %v1112_v11  ;;  %v1344_v12 = vpop.f32.mrf.mxu0  ;;  %v1932_v14 = vmax.f32 %v1900_v2, 0.0  ;;  %v1834_v30 = vmul.f32 %v3925_v48, %v4594_v54  ;;  %v1643_v19 = vmul.f32 %v3921_v17, %v4029_v50  ;;  %v4596_v11 = vld [vmem:[#allocation40_spill] sm:$0xff] }
 0x157   : > { %v1933_v52 = vmax.f32 %v1901_v43, 0.0  ;;  %v1409_v36 = vadd.f32 %v1344_v12, %v1104_v45  ;;  %v1865_v3 = vadd.f32 %v4137_v58, %v1669_v29  ;;  %v1957_v39 = vpack.c.bf16 %v1935_v9, %v1934_v57  ;;  %v1803_v6 = vpop.permute.xlu1 %1802 }
 0x158   : > { %v1672_v42 = vadd.f32 %v1640_v41, %v1411_v60  ;;  %v2900_v53 = vpop.f32.mrf.mxu0  ;;  %v1128_v25 = vadd.f32 %v4153_v32, %v4595_v46  ;;  %v1906_v35 = vadd.f32 %v3980_v49, %v1867_v38  ;;  %v1641_v44 = vmul.f32 %v3921_v17, %v3973_v13  ;;  %v4598_v41 = vld [vmem:[#allocation44_spill] sm:$0xff]  ;;  %v4599_v38 = vld [vmem:[#allocation46_spill] sm:$0xff]  ;;  %v1807_v46 = vpop.permute.xlu0 %1806 }
 0x159   : > { %v1670_v10 = vadd.f32 %v3998_v47, %v1409_v36  ;;  %v1414_v28 = vadd.f32 %v2900_v53, %v1125_v24  ;;  %v1956_v16 = vpack.c.bf16 %v1933_v52, %v1932_v14  ;;  %v1120_v50 = vadd.f32 %v4174_v27, %v4596_v11  ;;  %v2865_v47 = vpop.f32.mrf.mxu1  ;;  %v4597_v27 = vld [vmem:[#allocation42_spill] sm:$0xff] }
 0x15a   : > { %v1868_v58 = vadd.f32 %v4148_v18, %v1672_v42  ;;  %v1357_v40 = vpop.f32.mrf.mxu0  ;;  %v1839_v8 = vmul.f32 %v3925_v48, %v4110_v7  ;;  %v1904_v32 = vadd.f32 %v3980_v49, %v1865_v3  ;;  %v1644_v13 = vmul.f32 %v3921_v17, %v4056_v56 }
 0x15b   : > { %v1866_v20 = vadd.f32 %v1834_v30, %v1670_v10  ;;  %v1675_v5 = vadd.f32 %v1643_v19, %v1414_v28  ;;  %v1412_v26 = vadd.f32 %v1357_v40, %v1117_v63  ;;  %2930 = vmatprep.mubr.msk.bf16.mxu1 %vm704_vm0, %v1956_v16  ;;  %v1141_v45 = vadd.f32 %v2864_v21, %v4597_v27  ;;  %v1135_v36 = vpop.f32.mrf.mxu1 }
 0x15c   : > { %v1907_v15 = vadd.f32 %v3980_v49, %v1868_v58  ;;  %v2901_v18 = vpop.f32.mrf.mxu0  ;;  %v1938_v9 = vmax.f32 %v1906_v35, 0.0  ;;  %v1133_v57 = vadd.f32 %v1132_v34, %v4598_v41  ;;  %v1144_v60 = vadd.f32 %v2865_v47, %v4599_v38  ;;  %v4274_v41 = vld [vmem:[%s4440_s10] sm:$0xff] }
 0x15d   : > { %v1905_v2 = vadd.f32 %v3980_v49, %v1866_v20  ;;  %v1673_v33 = vadd.f32 %v1641_v44, %v1412_v26  ;;  %v1415_v23 = vadd.f32 %v2901_v18, %v1128_v25  ;;  %2931 = vmatmul.mubr.msk.bf16.gmra.mxu1 %vm704_vm0, %v1957_v39  ;;  %v1871_v43 = vadd.f32 %v1839_v8, %v1675_v5  ;;  %v4601_v44 = vld [vmem:[#allocation9_spill] sm:$0xff] }
 0x15e   : > { %v1939_v7 = vmax.f32 %v1907_v15, 0.0  ;;  %v1360_v29 = vpop.f32.mrf.mxu0  ;;  %v1936_v56 = vmax.f32 %v1904_v32, 0.0  ;;  %v1647_v21 = vmul.f32 %v3921_v17, %v4170_v51  ;;  %v1843_v42 = vmul.f32 %v3925_v48, %v1803_v6  ;;  %2784 = vmatprep.mubr.msk.f32.mxu0 %vm704_vm0, %v4274_v41 }
 0x15f   : > { %v1937_v12 = vmax.f32 %v1905_v2, 0.0  ;;  %v1676_v31 = vadd.f32 %v1644_v13, %v1415_v23  ;;  %v1869_v24 = vadd.f32 %v4168_v4, %v1673_v33  ;;  %v1413_v1 = vadd.f32 %v1360_v29, %v1120_v50 }
 0x160   : > { %v2904_v63 = vpop.f32.mrf.mxu0  ;;  %v1959_v52 = vpack.c.bf16 %v1939_v7, %v1938_v9  ;;  %v1838_v34 = vmul.f32 %v3925_v48, %v4083_v55  ;;  %v1910_v53 = vadd.f32 %v3980_v49, %v1871_v43  ;;  %v1645_v30 = vmul.f32 %v3921_v17, %v4140_v59 }
 0x161   : > { %v1872_v14 = vadd.f32 %v4185_v0, %v1676_v31  ;;  %v1418_v3 = vadd.f32 %v2904_v63, %v1141_v45  ;;  %v1674_v39 = vadd.f32 %v4010_v61, %v1413_v1  ;;  %v1958_v54 = vpack.c.bf16 %v1937_v12, %v1936_v56  ;;  %v4600_v0 = vld [vmem:[#allocation47_spill] sm:$0xff] }
 0x162   : > { %v1373_v4 = vpop.f32.mrf.mxu0  ;;  %v1136_v28 = vadd.f32 %v1135_v36, %v4600_v0  ;;  %v1648_v25 = vmul.f32 %v3921_v17, %v4198_v62  ;;  %v1908_v55 = vadd.f32 %v3980_v49, %v1869_v24  ;;  %v1646_v20 = vmul.f32 %v3921_v17, %v4601_v44 }
 0x163   : > { %v1911_v19 = vadd.f32 %v3980_v49, %v1872_v14  ;;  %v1679_v51 = vadd.f32 %v1647_v21, %v1418_v3  ;;  %v1416_v10 = vadd.f32 %v1373_v4, %v1133_v57  ;;  %v1870_v35 = vadd.f32 %v1838_v34, %v1674_v39  ;;  %2934 = vmatprep.mubr.msk.bf16.mxu1 %vm704_vm0, %v1958_v54 }
 0x164   : > { %v2905_v61 = vpop.f32.mrf.mxu0  ;;  %v1942_v5 = vmax.f32 %v1910_v53, 0.0  ;;  %v1844_v62 = vmul.f32 %v3925_v48, %v1807_v46  ;;  %v1940_v32 = vmax.f32 %v1908_v55, 0.0  ;;  %v1842_v13 = vmul.f32 %v3925_v48, %v4211_v22 }
 0x165   : > { %v1943_v58 = vmax.f32 %v1911_v19, 0.0  ;;  %v1875_v40 = vadd.f32 %v1843_v42, %v1679_v51  ;;  %v1677_v16 = vadd.f32 %v1645_v30, %v1416_v10  ;;  %v1419_v59 = vadd.f32 %v2905_v61, %v1144_v60  ;;  %2935 = vmatmul.mubr.msk.bf16.gmra.mxu1 %vm704_vm0, %v1959_v52 }
 0x166   : > { %v1909_v26 = vadd.f32 %v3980_v49, %v1870_v35  ;;  %v1376_v11 = vpop.f32.mrf.mxu0  ;;  %v4311_v35 = vld [vmem:[%s4439_s9] ss:$0 sm:$0xff] }
 0x167   : > { %v1873_v50 = vadd.f32 %v4192_v37, %v1677_v16  ;;  %v1680_v47 = vadd.f32 %v1648_v25, %v1419_v59  ;;  %v1417_v8 = vadd.f32 %v1376_v11, %v1136_v28  ;;  %v1961_v18 = vpack.c.bf16 %v1943_v58, %v1942_v5 }
 0x168   : > { %v1941_v15 = vmax.f32 %v1909_v26, 0.0  ;;  %v1914_v2 = vadd.f32 %v3980_v49, %v1875_v40 }
 0x169   : > { %v1876_v33 = vadd.f32 %v1844_v62, %v1680_v47  ;;  %v1678_v17 = vadd.f32 %v1646_v20, %v1417_v8  ;;  %v1912_v27 = vadd.f32 %v3980_v49, %v1873_v50 }
 0x16a   : > { %v1960_v23 = vpack.c.bf16 %v1941_v15, %v1940_v32  ;;  %v1946_v37 = vmax.f32 %v1914_v2, 0.0 }
 0x16b   : > { %v1915_v45 = vadd.f32 %v3980_v49, %v1876_v33  ;;  %v1874_v9 = vadd.f32 %v1842_v13, %v1678_v17  ;;  %v1944_v29 = vmax.f32 %v1912_v27, 0.0 }
 0x16c   : > { %2938 = vmatprep.mubr.msk.bf16.mxu1 %vm704_vm0, %v1960_v23 }
 0x16d   : > { %v1947_v7 = vmax.f32 %v1915_v45, 0.0  ;;  %v1913_v43 = vadd.f32 %v3980_v49, %v1874_v9  ;;  %2939 = vmatmul.mubr.msk.bf16.gmra.mxu1 %vm704_vm0, %v1961_v18 }
 0x16f   : > { %v1945_v48 = vmax.f32 %v1913_v43, 0.0  ;;  %v1963_v22 = vpack.c.bf16 %v1947_v7, %v1946_v37 }
 0x171   : > { %v1962_v6 = vpack.c.bf16 %v1945_v48, %v1944_v29 }
 0x173   : > { %2942 = vmatprep.mubr.msk.bf16.mxu1 %vm704_vm0, %v1962_v6 }
 0x175   : > { %2943 = vmatmul.mubr.msk.bf16.gmra.mxu1 %vm704_vm0, %v1963_v22 }
 0x1fc   : > { %v4276_v57 = vpop.f32.mrf.mxu1 }
 0x1fe   : > { %v4280_v49 = vpop.f32.mrf.mxu1 }
 0x200   : > { %v4282_v38 = vpop.f32.mrf.mxu1 }
 0x202   : > { %v4284_v60 = vpop.f32.mrf.mxu1 }
 0x205   : > { %v4286_v12 = vpop.f32.mrf.mxu1 }
 0x207   : > { %v4288_v31 = vpop.f32.mrf.mxu1 }
 0x209   : > { %v4290_v56 = vpop.f32.mrf.mxu1 }
 0x20b   : > { %v4292_v24 = vpop.f32.mrf.mxu1 }
 0x20d   : > { %v2924_v1 = vpop.f32.mrf.mxu1 }
 0x20e   : > { %v2126_v27 = vadd.f32 %v2924_v1, %v4311_v35 }
 0x20f   : > { %v4294_v63 = vpop.f32.mrf.mxu1 }
 0x210   : > { %v2222_v7 = vmax.f32 %v2126_v27, 0.0  ;;  %v2118_v22 = vadd.f32 %v4311_v35, %v4294_v63  ;;  %v2110_v63 = vadd.f32 %v4286_v12, %v4311_v35  ;;  %v2102_v12 = vadd.f32 %v4311_v35, %v4288_v31 }
 0x211   : > { %v2925_v52 = vpop.f32.mrf.mxu1  ;;  %v2094_v31 = vadd.f32 %v4276_v57, %v4311_v35  ;;  %v2086_v57 = vadd.f32 %v4311_v35, %v4280_v49  ;;  %v2416_v49 = vstv %s2415_s22  ;;  %s3087_s22 = smov [#allocation3]  }
 0x212   : > { %v2129_v2 = vadd.f32 %v2925_v52, %v4311_v35  ;;  %s3026_s0 = sshll.u32 %s3087_s22, 4  ;;  %s3027_s0 = int_to_ptr.vmem [resolvable:$false] %s3026_s0 }
 0x213   : > { %v2120_v36 = vpop.f32.mrf.mxu1  ;;  %s3028_s17 = scalar_lea.vmem %s3027_s0, 64  ;;  %p3029_p0 = scmp.lt.s32.totalorder %s2458_s27, %s3027_s0 }
 0x214   : > { %v2223_v45 = vmax.f32 %v2129_v2, 0.0  ;;  %v2121_v43 = vadd.f32 %v4311_v35, %v2120_v36  ;;  %v2113_v36 = vadd.f32 %v4290_v56, %v4311_v35  ;;  %v2218_v56 = vmax.f32 %v2110_v63, 0.0  ;;  %p3030_p1 = scmp.lt.s32.totalorder %s3028_s17, %s3022_s20 }
 0x215   : > { %v2928_v21 = vpop.f32.mrf.mxu1 }
 0x216   : > { %v2142_v20 = vadd.f32 %v2928_v21, %v4311_v35  ;;  %v2221_v6 = vmax.f32 %v2121_v43, 0.0  ;;  %v2220_v21 = vmax.f32 %v2118_v22, 0.0  ;;  %p3031_p2 = por %p3030_p1, %p3029_p0 }
 0x217   : > { %v2133_v14 = vpop.f32.mrf.mxu1 }
 0x218   : > { %v2226_v62 = vmax.f32 %v2142_v20, 0.0  ;;  %v2134_v32 = vadd.f32 %v4311_v35, %v2133_v14  ;;  %v2212_v20 = vmax.f32 %v2086_v57, 0.0  ;;  %p3032_p3 = pnand %p3031_p2, %p3025_p13 }
 0x219   : > { %v2929_v3 = vpop.f32.mrf.mxu1 }
 0x21a   : > { %v2145_v61 = vadd.f32 %v2929_v3, %v4311_v35  ;;  %v2224_v33 = vmax.f32 %v2134_v32, 0.0 }
 0x21b   : > { %v2136_v42 = vpop.f32.mrf.mxu1 }
 0x21c   : > { %v2227_v5 = vmax.f32 %v2145_v61, 0.0  ;;  %v2137_v50 = vadd.f32 %v4311_v35, %v2136_v42  ;;  %v2219_v42 = vmax.f32 %v2113_v36, 0.0 }
 0x21d   : > { %v4296_v34 = vpop.f32.mrf.mxu1 }
 0x21e   : > { %v2225_v15 = vmax.f32 %v2137_v50, 0.0  ;;  %v4602_v50 = vld [vmem:[#allocation37_spill] sm:$0xff] }
 0x21f   : > { %v4298_v53 = vpop.f32.mrf.mxu1 }
 0x221   : > { %v4300_v39 = vpop.f32.mrf.mxu1 }
 0x223   : > { %v4302_v4 = vpop.f32.mrf.mxu1 }
 0x225   : > { %v2936_v54 = vpop.f32.mrf.mxu1 }
 0x226   : > { %v2174_v14 = vadd.f32 %v2936_v54, %v4311_v35  ;;  %v2105_v54 = vadd.f32 %v4311_v35, %v4292_v24  ;;  %v2097_v24 = vadd.f32 %v4282_v38, %v4311_v35  ;;  %v2214_v38 = vmax.f32 %v2094_v31, 0.0 }
 0x227   : > { %v4304_v30 = vpop.f32.mrf.mxu1 }
 0x229   : > { %v2937_v19 = vpop.f32.mrf.mxu1 }
 0x22a   : > { %v2177_v1 = vadd.f32 %v2937_v19, %v4311_v35  ;;  %v2234_v19 = vmax.f32 %v2174_v14, 0.0 }
 0x22b   : > { %v4306_v51 = vpop.f32.mrf.mxu1 }
 0x22c   : > { %v2235_v3 = vmax.f32 %v2177_v1, 0.0 }
 0x22d   : > { %v2940_v10 = vpop.f32.mrf.mxu1 }
 0x22e   : > { %v2190_v17 = vadd.f32 %v2940_v10, %v4311_v35  ;;  %v2169_v10 = vadd.f32 %v4311_v35, %v4306_v51  ;;  %v2217_v51 = vmax.f32 %v2105_v54, 0.0 }
 0x22f   : > { %v2181_v0 = vpop.f32.mrf.mxu1 }
 0x230   : > { %v2238_v9 = vmax.f32 %v2190_v17, 0.0  ;;  %v2182_v29 = vadd.f32 %v4311_v35, %v2181_v0  ;;  %v2166_v0 = vadd.f32 %v4311_v35, %v4304_v30  ;;  %v2216_v30 = vmax.f32 %v2102_v12, 0.0 }
 0x231   : > { %v2941_v28 = vpop.f32.mrf.mxu1 }
 0x232   : > { %v2193_v18 = vadd.f32 %v2941_v28, %v4311_v35  ;;  %v2236_v52 = vmax.f32 %v2182_v29, 0.0  ;;  %v2233_v28 = vmax.f32 %v2169_v10, 0.0 }
 0x233   : > { %v2184_v46 = vpop.f32.mrf.mxu1 }
 0x234   : > { %v2239_v23 = vmax.f32 %v2193_v18, 0.0  ;;  %v2185_v37 = vadd.f32 %v4311_v35, %v2184_v46  ;;  %v2161_v46 = vadd.f32 %v4300_v39, %v4311_v35  ;;  %v2215_v39 = vmax.f32 %v2097_v24, 0.0 }
 0x235   : > { %v2944_v25 = vpop.f32.mrf.mxu1 }
 0x236   : > { %v2206_v40 = vadd.f32 %v2944_v25, %v4311_v35  ;;  %v2237_v48 = vmax.f32 %v2185_v37, 0.0  ;;  %v2232_v25 = vmax.f32 %v2166_v0, 0.0  ;;  %v2231_v61 = vmax.f32 %v2161_v46, 0.0 }
 0x237   : > { %v2197_v55 = vpop.f32.mrf.mxu1 }
 0x238   : > { %v2242_v26 = vmax.f32 %v2206_v40, 0.0  ;;  %v2198_v47 = vadd.f32 %v4311_v35, %v2197_v55  ;;  %v2158_v55 = vadd.f32 %v4296_v34, %v4311_v35  ;;  %v2153_v40 = vadd.f32 %v4311_v35, %v4302_v4 }
 0x239   : > { %v2945_v58 = vpop.f32.mrf.mxu1  ;;  %v2089_v34 = vadd.f32 %v4311_v35, %v4284_v60  ;;  %v3086_v60 = vmov 1966171168  }
 0x23a   : > { %v2209_v16 = vadd.f32 %v2945_v58, %v4311_v35  ;;  %v2240_v13 = vmax.f32 %v2198_v47, 0.0  ;;  %v2230_v58 = vmax.f32 %v2158_v55, 0.0 }
 0x23b   : > { %v2200_v59 = vpop.f32.mrf.mxu1  ;;  %v2213_v4 = vmax.f32 %v2089_v34, 0.0 }
 0x23c   : > { %v2243_v44 = vmax.f32 %v2209_v16, 0.0  ;;  %v2201_v11 = vadd.f32 %v4311_v35, %v2200_v59  ;;  %v2150_v16 = vadd.f32 %v4311_v35, %v4298_v53  ;;  %v2229_v59 = vmax.f32 %v2153_v40, 0.0 }
 0x23d   : > { %v2423_v53 = vunpack.c.l.s4 %v3086_v60 }
 0x23e   : > { %2752 = vmatprep.subr.msk.mxu0 %vm704_vm0, %v2243_v44  ;;  %v2241_v8 = vmax.f32 %v2201_v11, 0.0  ;;  %v2228_v44 = vmax.f32 %v2150_v16, 0.0 }
 0x23f   : > { %2753 = vmatpush3.xpose.msk.msra.mxu0 %vm704_vm0, %v2227_v5  ;;  %v2424_v5 = vunpack.c.0.s8 %v2423_v53 }
 0x240   : > { %2754 = vmatprep.subr.msk.mxu0 %vm704_vm0, %v2242_v26 }
 0x241   : > { %v2427_v47 = vsub.s32 %v2424_v5, %v4602_v50 }
 0x243   : > { %2755 = vmatpush3.xpose.msk.msra.mxu0 %vm704_vm0, %v2226_v62 }
 0x244   : > { %2756 = vmatprep.subr.msk.mxu0 %vm704_vm0, %v2241_v8 }
 0x247   : > { %2757 = vmatpush3.xpose.msk.msra.mxu0 %vm704_vm0, %v2225_v15 }
 0x248   : > { %2758 = vmatprep.subr.msk.mxu0 %vm704_vm0, %v2240_v13 }
 0x24b   : > { %2759 = vmatpush3.xpose.msk.msra.mxu0 %vm704_vm0, %v2224_v33 }
 0x24c   : > { %2760 = vmatprep.subr.msk.mxu0 %vm704_vm0, %v2239_v23 }
 0x24f   : > { %2761 = vmatpush3.xpose.msk.msra.mxu0 %vm704_vm0, %v2223_v45 }
 0x250   : > { %2762 = vmatprep.subr.msk.mxu0 %vm704_vm0, %v2238_v9 }
 0x253   : > { %2763 = vmatpush3.xpose.msk.msra.mxu0 %vm704_vm0, %v2222_v7 }
 0x254   : > { %2764 = vmatprep.subr.msk.mxu0 %vm704_vm0, %v2237_v48 }
 0x257   : > { %2765 = vmatpush3.xpose.msk.msra.mxu0 %vm704_vm0, %v2221_v6 }
 0x258   : > { %2766 = vmatprep.subr.msk.mxu0 %vm704_vm0, %v2236_v52 }
 0x25b   : > { %2767 = vmatpush3.xpose.msk.msra.mxu0 %vm704_vm0, %v2220_v21 }
 0x25c   : > { %2768 = vmatprep.subr.msk.mxu0 %vm704_vm0, %v2235_v3 }
 0x25f   : > { %2769 = vmatpush3.xpose.msk.msra.mxu0 %vm704_vm0, %v2219_v42 }
 0x260   : > { %2770 = vmatprep.subr.msk.mxu0 %vm704_vm0, %v2234_v19 }
 0x263   : > { %2771 = vmatpush3.xpose.msk.msra.mxu0 %vm704_vm0, %v2218_v56 }
 0x264   : > { %2772 = vmatprep.subr.msk.mxu0 %vm704_vm0, %v2233_v28 }
 0x267   : > { %2773 = vmatpush3.xpose.msk.msra.mxu0 %vm704_vm0, %v2217_v51 }
 0x268   : > { %2774 = vmatprep.subr.msk.mxu0 %vm704_vm0, %v2232_v25 }
 0x26b   : > { %2775 = vmatpush3.xpose.msk.msra.mxu0 %vm704_vm0, %v2216_v30 }
 0x26c   : > { %2776 = vmatprep.subr.msk.mxu0 %vm704_vm0, %v2231_v61 }
 0x26f   : > { %2777 = vmatpush3.xpose.msk.msra.mxu0 %vm704_vm0, %v2215_v39 }
 0x270   : > { %2778 = vmatprep.subr.msk.mxu0 %vm704_vm0, %v2230_v58 }
 0x273   : > { %2779 = vmatpush3.xpose.msk.msra.mxu0 %vm704_vm0, %v2214_v38 }
 0x274   : > { %2780 = vmatprep.subr.msk.mxu0 %vm704_vm0, %v2229_v59 }
 0x277   : > { %2781 = vmatpush3.xpose.msk.msra.mxu0 %vm704_vm0, %v2213_v4 }
 0x278   : > { %2782 = vmatprep.subr.msk.mxu0 %vm704_vm0, %v2228_v44 }
 0x27b   : > { %2783 = vmatpush3.xpose.msk.msra.mxu0 %vm704_vm0, %v2212_v20 }
 0x27e   : > { %2785 = vmatmul.mubr.msk.f32.vlgmr.msra.gmra.mxu0 %vm704_vm0, %v4274_v41  ;;  %v4603_v41 = vlaneseq }
 0x280   : > { %vm2439_vm1 = vcmp.lt.s32.totalorder %v4603_v41, 256 }
 0x33e   : > { %v2410_v26 = vpop.f32.mrf.mxu0 }
 0x33f   : > { %v2417_v11 = vadd.f32 %v2416_v49, %v2410_v26 }
 0x340   : > { %v2412_v35 = vpop.f32.mrf.mxu0 }
 0x341   : > { %v2418_v62 = vadd.f32 %v2416_v49, %v2412_v35 }
 0x343   : > { %v2421_v8 = vcombine.low %v2417_v11, %v2418_v62 }
 0x345   : > { %v2428_v32 = vrot.slane %v2421_v8, %v2427_v47 }
 0x347   : > { %v2435_v15 = vrot.slane %v2428_v32, %v2427_v47 }
 0x349   : > { %2441 = vst.msk [vmem:[%s476_s30] sm:$0x3] %vm2439_vm1, %v2435_v15 }
 0x34a   : > { %3035 = shalt.err (!%p3032_p3)
}
 0x34b   : > { %s3036_s1 = scalar_lea.hbm %s2455_s19, 32  ;;  %s3040_s30 = scalar_lea.hbm %s4442_s12, 64 }
 0x34c   : > { %p3037_p4 = scmp.ne.s32.totalorder %s2455_s19, %s3036_s1  ;;  %p3041_p9 = scmp.lt.s32.totalorder %s2455_s19, %s4442_s12 }
 0x34d   : > { %p3042_p10 = scmp.lt.s32.totalorder %s3040_s30, %s3036_s1 }
 0x34e   : > { %p3038_p7 = pnand %p3037_p4, %p3191_p5 }
 0x34f   : > { %p3043_p11 = por %p3042_p10, %p3041_p9 }
 0x350   : > { %p3039_p8 = pneg %p3038_p7 }
 0x352   : > { %p3044_p12 = pnand %p3043_p11, %p3039_p8 }
 0x354   : > { %3047 = shalt.err (!%p3044_p12)
}
 0x355   : > { %2946 = dma.vmem_to_hbm [thread:$0]  (%p3191_p5), %s2458_s27, 32, %s2455_s19, %s2443_s21  }
 0x356 PF: > { %p2952_p13 = scmp.ge.s32.totalorder %s3082_s26, 2  ;;  %s2469_s0 = sand.u32 1, %s3070_s23  }
 0x357   : > { %s2470_s20 = scalar_lea.sflag [#allocation4], %s2469_s0 }
 0x358   : > { %p2949_p0 = pnand %p2952_p13, %p3195_p6 }
 0x35a   : > { %p2950_p1 = pneg %p2949_p0 }
 0x35c   : > { %3065 = dma.done.wait (%p2950_p1), %s2470_s20, 32  }
 0x35d   : > { %3067 = vsyncadd (%p2950_p1), %s2470_s20, 4294967264  ;;  %p23_p2 = scmp.ge.s32.totalorder %s3179_s28, 4   ;;  %s4604_s23 = smov %s3074_s24 }
 0x35e   : > { %s4605_s24 = smov %s3078_s25  ;;  %s4606_s25 = smov %s3189_s13 }
 0x35f   : > { %s4607_s26 = smov %s3179_s28  ;;  %25 = sbr.rel (!%p23_p2) target bundleno = 7 (0x7), region = 109 }
 0x364   :  { %2475 = vsyncpa [#allocation4], 1 }
 0x365   :  { %2477 = vsyncpa [#allocation4 + $0x1], 1 }

// kernel: tpu_custom_call.1
= control target key start
LH: loop header
LB: loop body
LE: loop exit
PB: predicated region body
PF: predicated region fallthrough
CT: control target
= control target key end

     0   :  { %s4430_s0 = inlined_call_operand.vmem [shape: f32[300,64], index: 0, kind: input, shape index: {}]   ;;  %s4431_s1 = inlined_call_operand.vmem [shape: f32[300,64], index: 1, kind: input, shape index: {}]   ;;  %s4432_s2 = inlined_call_operand.vmem [shape: f32[300,2], index: 2, kind: input, shape index: {}]   ;;  %s4433_s3 = inlined_call_operand.vmem [shape: bf16[64,64], index: 3, kind: input, shape index: {}]   ;;  %s4434_s4 = inlined_call_operand.vmem [shape: bf16[64,64], index: 4, kind: input, shape index: {}]   ;;  %s4435_s5 = inlined_call_operand.vmem [shape: bf16[64,64], index: 5, kind: input, shape index: {}]   ;;  %s4436_s6 = inlined_call_operand.vmem [shape: f32[2,64], index: 6, kind: input, shape index: {}]   ;;  %s4437_s7 = inlined_call_operand.vmem [shape: f32[1,64], index: 7, kind: input, shape index: {}]   ;;  %s4438_s8 = inlined_call_operand.vmem [shape: bf16[64,64], index: 8, kind: input, shape index: {}]   ;;  %s4439_s9 = inlined_call_operand.vmem [shape: f32[1,64], index: 9, kind: input, shape index: {}]   ;;  %s4440_s10 = inlined_call_operand.vmem [shape: f32[8,64], index: 10, kind: input, shape index: {}]   ;;  %s4441_s11 = inlined_call_operand.<no memory space> [shape: f32[1,1], index: 11, kind: input, shape index: {}]   ;;  %s4442_s12 = inlined_call_operand.hbm [shape: f32[2,1,256], index: 12, kind: output, shape index: {}]  }
   0x1   :  { %4469 = sst [smem:[#allocation49_spill]] %s4430_s0 }
   0x2   :  { %4470 = sst [smem:[#allocation50_spill]] %s4431_s1 }
   0x3   :  { %17 = sst [smem:[#allocation2]] %s4441_s11 }
   0x4   :  { %18 = vsyncpa [#allocation4], 0 }
   0x5   :  { %20 = vsyncpa [#allocation4 + $0x1], 0  ;;  %s3156_s23 = smov 0   ;;  %s3158_s24 = smov 0  }
   0x6   :  { %s3160_s25 = smov 0   ;;  %s3162_s26 = smov 0  }
   0x7 LB: > { %s2539_s11 = sadd.s32 4294967295, %s3082_s26   ;;  %s2540_s27 = sadd.s32 4294967294, %s3082_s26   ;;  %s3082_s26 = sphi %s3162_s26, %s4607_s26   ;;  %s3078_s25 = sphi %s3160_s25, %s4606_s25   ;;  %s3074_s24 = sphi %s3158_s24, %s4605_s24   ;;  %s3070_s23 = sphi %s3156_s23, %s4604_s23  }
   0x8   : > { %s3179_s28 = sadd.s32 1, %s3082_s26   ;;  %s300_s29 = sadd.s32 1, %s3078_s25 }
   0x9   : > { %s297_s30 = ssub.s32 %s3082_s26, %s3179_s28  ;;  %p310_p0 = scmp.ne.s32.totalorder %s3078_s25, %s3074_s24 }
   0xa   : > { %p298_p1 = scmp.eq.s32.totalorder %s297_s30, 0  ;;  %p311_p2 = scmp.eq.s32.totalorder %s2539_s11, 1 }
   0xb   : > { %p316_p3 = scmp.ne.s32.totalorder %s3074_s24, %s3070_s23  ;;  %p317_p4 = scmp.eq.s32.totalorder %s2540_s27, 1 }
   0xc   : > { %s3189_s13 = scalar_select %p298_p1, %s3078_s25, %s300_s29  }
   0xd   : > { %p3191_p5 = por %p311_p2, %p310_p0  ;;  %p3195_p6 = por %p317_p4, %p316_p3 }
   0xe   : > { %p2543_p7 = scmp.ge.s32.totalorder %s3082_s26, 1  ;;  %p413_p8 = scmp.lt.s32.totalorder %s3082_s26, 3 }
  0x10   : > { %p414_p9 = pnand %p2543_p7, %p413_p8 }
  0x12   : > { %417 = sbr.rel (%p414_p9) target bundleno = 854 (0x356), region = 68 }
  0x17   : > { %v3006_v0 = vld [vmem:[%s4434_s4 + $0x18] sm:$0xff]   ;;  %s3204_s18 = sshll.u32 %s2539_s11, 5  ;;  %v3008_v2 = vld [vmem:[%s4434_s4 + $0x10] sm:$0xff]   ;;  %v3010_v4 = vld [vmem:[%s4434_s4 + $0x8] sm:$0xff]   ;;  %v4443_v6 = vmov 0   ;;  %s4473_s1 = sld [smem:[#allocation50_spill]] }
  0x18   : > { %v3007_v1 = vld [vmem:[%s4433_s3 + $0x18] sm:$0xff]   ;;  %p482_p10 = scmp.lt.s32.totalorder %s3204_s18, 37  ;;  %2786 = vmatprep.subr.bf16.mxu0 %v3006_v0  ;;  %v3009_v3 = vld [vmem:[%s4433_s3 + $0x10] sm:$0xff]   ;;  %v3011_v5 = vld [vmem:[%s4433_s3 + $0x8] sm:$0xff]   ;;  %2989 = vset.pattern.permute.xlu1 %v4443_v6  ;;  %s4474_s0 = sld [smem:[#allocation49_spill]]  ;;  %vm704_vm0 = vcmask 523264  }
  0x19   : > { %2826 = vmatprep.subr.bf16.mxu1 %v3007_v1  ;;  %2787 = vmatpush3.bf16.msra.mxu0 %v3006_v0  ;;  %v3012_v7 = vld [vmem:[%s4434_s4] sm:$0xff]   ;;  %v3014_v19 = vld [vmem:[%s4435_s5 + $0x18] sm:$0xff]   ;;  %v3015_v28 = vld [vmem:[%s4435_s5 + $0x10] sm:$0xff]   ;;  %v4445_v54 = vmov 1   ;;  %s2415_s22 = sld [smem:[#allocation2]]  ;;  %s474_s29 = sand.u32 1, %s3074_s24  }
  0x1a   : > { %s483_s11 = scalar_select %p482_p10, %s3204_s18, 37  ;;  %2827 = vmatpush3.bf16.msra.mxu1 %v3007_v1  ;;  %2788 = vmatprep.subr.bf16.mxu0 %v3008_v2  ;;  %v3013_v11 = vld [vmem:[%s4433_s3] sm:$0xff]   ;;  %v3016_v43 = vld [vmem:[%s4435_s5 + $0x8] sm:$0xff]  }
  0x1b   : > { %2828 = vmatprep.subr.bf16.mxu1 %v3009_v3  ;;  %2988 = vset.pattern.permute.xlu0 %v4443_v6  ;;  %v3017_v59 = vld [vmem:[%s4435_s5] sm:$0xff]   ;;  %s2455_s19 = scalar_lea.hbm %s4442_s12, %s3204_s18  ;;  %s2443_s21 = scalar_lea.sflag [#allocation4], %s474_s29 }
  0x1c   : > { %s3223_s20 = sshll.u32 %s483_s11, 3 }
  0x1d   : > { %s3230_s27 = scalar_lea.vmem %s4473_s1, %s3223_s20  ;;  %2789 = vmatpush3.bf16.msra.mxu0 %v3008_v2  ;;  %s3298_s17 = scalar_lea.vmem %s4432_s2, %s3223_s20 }
  0x1e   : > { %s3236_s16 = scalar_lea.vmem %s4474_s0, %s3223_s20  ;;  %2829 = vmatpush3.bf16.msra.mxu1 %v3009_v3  ;;  %2790 = vmatprep.subr.bf16.mxu0 %v3010_v4  ;;  %v3243_v8 = vld [vmem:[%s3230_s27] sm:$0xff]  ;;  %v3246_v9 = vld [vmem:[%s3230_s27 + $0x8] sm:$0xff]  ;;  %v3262_v15 = vld [vmem:[%s3230_s27 + $0x10] sm:$0xff] }
  0x1f   : > { %v3249_v10 = vld [vmem:[%s3236_s16] sm:$0xff]  ;;  %2830 = vmatprep.subr.bf16.mxu1 %v3011_v5  ;;  %v600_v12 = vpack.c.bf16 %v3246_v9, %v3243_v8  ;;  %v3257_v13 = vld [vmem:[%s3236_s16 + $0x8] sm:$0xff]  ;;  %v3266_v16 = vld [vmem:[%s3230_s27 + $0x18] sm:$0xff] }
  0x20   : > { %v584_v14 = vpack.c.bf16 %v3257_v13, %v3249_v10  ;;  %v3269_v17 = vld [vmem:[%s3236_s16 + $0x10] sm:$0xff]  ;;  %v3272_v18 = vld [vmem:[%s3236_s16 + $0x18] sm:$0xff]  ;;  %v3278_v20 = vld [vmem:[%s3230_s27 + $0x20] sm:$0xff]  ;;  %v601_v24 = vpack.c.bf16 %v3266_v16, %v3262_v15 }
  0x21   : > { %2791 = vmatpush3.bf16.msra.mxu0 %v3010_v4  ;;  %2794 = vmatprep.mubr.msk.bf16.mxu0 %vm704_vm0, %v600_v12  ;;  %v3282_v21 = vld [vmem:[%s3230_s27 + $0x28] sm:$0xff]  ;;  %v3285_v22 = vld [vmem:[%s3236_s16 + $0x20] sm:$0xff]  ;;  %v585_v25 = vpack.c.bf16 %v3272_v18, %v3269_v17  ;;  %v1422_v29 = vld [vmem:[%s3298_s17 + $0x10] sm:$0xff] }
  0x22   : > { %2831 = vmatpush3.bf16.msra.mxu1 %v3011_v5  ;;  %2792 = vmatprep.subr.bf16.mxu0 %v3012_v7  ;;  %v3288_v23 = vld [vmem:[%s3236_s16 + $0x28] sm:$0xff]  ;;  %v602_v26 = vpack.c.bf16 %v3282_v21, %v3278_v20  ;;  %v3311_v30 = vld [vmem:[%s3230_s27 + $0x30] sm:$0xff]  ;;  %v3314_v31 = vld [vmem:[%s3230_s27 + $0x38] sm:$0xff] }
  0x23   : > { %2832 = vmatprep.subr.bf16.mxu1 %v3013_v11  ;;  %2834 = vmatprep.mubr.msk.bf16.mxu1 %vm704_vm0, %v584_v14  ;;  %v586_v27 = vpack.c.bf16 %v3288_v23, %v3285_v22  ;;  %v3317_v32 = vld [vmem:[%s3236_s16 + $0x30] sm:$0xff]  ;;  %v3322_v33 = vld [vmem:[%s3236_s16 + $0x38] sm:$0xff]  ;;  %v3325_v34 = vld [vmem:[%s3230_s27 + $0x40] sm:$0xff]  ;;  %v603_v38 = vpack.c.bf16 %v3314_v31, %v3311_v30 }
  0x24   : > { %v3328_v35 = vld [vmem:[%s3230_s27 + $0x48] sm:$0xff]  ;;  %v3331_v36 = vld [vmem:[%s3236_s16 + $0x40] sm:$0xff]  ;;  %1465 = vperm.xlu1 %2989, %v1422_v29   ;;  %v3339_v39 = vld [vmem:[%s3298_s17 + $0x18] sm:$0xff]  ;;  %v587_v40 = vpack.c.bf16 %v3322_v33, %v3317_v32 }
  0x25   : > { %2793 = vmatpush3.bf16.msra.mxu0 %v3012_v7  ;;  %v3334_v37 = vld [vmem:[%s3236_s16 + $0x48] sm:$0xff]  ;;  %v604_v41 = vpack.c.bf16 %v3328_v35, %v3325_v34  ;;  %v3353_v44 = vld [vmem:[%s3230_s27 + $0x50] sm:$0xff]  ;;  %v3356_v45 = vld [vmem:[%s3230_s27 + $0x58] sm:$0xff] }
  0x26   : > { %2833 = vmatpush3.bf16.msra.mxu1 %v3013_v11  ;;  %2866 = vmatprep.subr.bf16.mxu0 %v3014_v19  ;;  %v588_v42 = vpack.c.bf16 %v3334_v37, %v3331_v36  ;;  %v3361_v46 = vld [vmem:[%s3236_s16 + $0x50] sm:$0xff]  ;;  %v3364_v47 = vld [vmem:[%s3236_s16 + $0x58] sm:$0xff]  ;;  %v1421_v48 = vld [vmem:[%s3298_s17 + $0x8] sm:$0xff]  ;;  %v605_v55 = vpack.c.bf16 %v3356_v45, %v3353_v44 }
  0x27   : > { %v3369_v49 = vld [vmem:[%s3230_s27 + $0x60] sm:$0xff]  ;;  %v3372_v50 = vld [vmem:[%s3230_s27 + $0x68] sm:$0xff]  ;;  %v589_v56 = vpack.c.bf16 %v3364_v47, %v3361_v46  ;;  %v3398_v60 = vld [vmem:[%s3230_s27 + $0x70] sm:$0xff] }
  0x28   : > { %2795 = vmatmul.mubr.msk.bf16.vlgmr.msra.gmra.mxu0 %vm704_vm0, %v601_v24  ;;  %1470 = vperm.xlu1 %2989, %v3339_v39   ;;  %v3375_v51 = vld [vmem:[%s3298_s17] sm:$0xff]  ;;  %v3381_v53 = vld [vmem:[%s3236_s16 + $0x68] sm:$0xff]  ;;  %v606_v57 = vpack.c.bf16 %v3372_v50, %v3369_v49  ;;  %v3403_v61 = vld [vmem:[%s3230_s27 + $0x78] sm:$0xff] }
  0x29   : > { %2835 = vmatmul.mubr.msk.bf16.vlgmr.msra.gmra.mxu1 %vm704_vm0, %v585_v25  ;;  %2867 = vmatpush3.bf16.msra.mxu0 %v3014_v19  ;;  %v3378_v52 = vld [vmem:[%s3236_s16 + $0x60] sm:$0xff]  ;;  %v3406_v62 = vld [vmem:[%s3236_s16 + $0x70] sm:$0xff]  ;;  %v3409_v63 = vld [vmem:[%s3236_s16 + $0x78] sm:$0xff]  ;;  %v607_v7 = vpack.c.bf16 %v3403_v61, %v3398_v60 }
  0x2a   : > { %2798 = vmatprep.mubr.msk.bf16.mxu0 %vm704_vm0, %v602_v26  ;;  %2838 = vmatprep.mubr.msk.bf16.mxu1 %vm704_vm0, %v586_v27  ;;  %v590_v58 = vpack.c.bf16 %v3381_v53, %v3378_v52  ;;  %v3413_v0 = vld [vmem:[%s3230_s27 + $0x80] sm:$0xff]  ;;  %v3416_v1 = vld [vmem:[%s3230_s27 + $0x88] sm:$0xff]  ;;  %v591_v11 = vpack.c.bf16 %v3409_v63, %v3406_v62  ;;  %v3439_v19 = vld [vmem:[%s3230_s27 + $0x90] sm:$0xff] }
  0x2b   : > { %2868 = vmatprep.subr.bf16.mxu0 %v3015_v28  ;;  %1455 = vperm.xlu0 %2988, %v3375_v51   ;;  %v3419_v2 = vld [vmem:[%s3298_s17 + $0x20] sm:$0xff]  ;;  %v3425_v4 = vld [vmem:[%s3236_s16 + $0x88] sm:$0xff]  ;;  %v608_v12 = vpack.c.bf16 %v3416_v1, %v3413_v0  ;;  %v3442_v24 = vld [vmem:[%s3230_s27 + $0x98] sm:$0xff] }
  0x2c   : > { %2990 = vset.pattern.permute.xlu1 %v4445_v54  ;;  %v3422_v3 = vld [vmem:[%s3236_s16 + $0x80] sm:$0xff]  ;;  %v1425_v5 = vld [vmem:[%s3298_s17 + $0x28] sm:$0xff]  ;;  %v1426_v25 = vld [vmem:[%s3298_s17 + $0x30] sm:$0xff] }
  0x2d   : > { %2869 = vmatpush3.bf16.msra.mxu0 %v3015_v28  ;;  %1686 = vperm.xlu1 %2990, %v1421_v48   ;;  %v592_v14 = vpack.c.bf16 %v3425_v4, %v3422_v3  ;;  %v3447_v26 = vld [vmem:[%s3236_s16 + $0x90] sm:$0xff]  ;;  %v3450_v27 = vld [vmem:[%s3236_s16 + $0x98] sm:$0xff]  ;;  %v3453_v28 = vld [vmem:[%s3230_s27 + $0xa0] sm:$0xff] }
  0x2e   : > { %2870 = vmatprep.subr.bf16.mxu0 %v3016_v43 }
  0x2f   : > { %1460 = vperm.xlu0 %2988, %v1421_v48   ;;  %v609_v48 = vpack.c.bf16 %v3442_v24, %v3439_v19 }
  0x30   : > { %2799 = vmatmul.mubr.msk.bf16.gmra.mxu0 %vm704_vm0, %v603_v38  ;;  %v3459_v38 = vld [vmem:[%s3298_s17 + $0x48] sm:$0xff] }
  0x31   : > { %2839 = vmatmul.mubr.msk.bf16.gmra.mxu1 %vm704_vm0, %v587_v40  ;;  %2802 = vmatprep.mubr.msk.bf16.mxu0 %vm704_vm0, %v604_v41  ;;  %v3464_v40 = vld [vmem:[%s3236_s16 + $0xa0] sm:$0xff]  ;;  %v3467_v41 = vld [vmem:[%s3236_s16 + $0xa8] sm:$0xff] }
  0x32   : > { %2842 = vmatprep.mubr.msk.bf16.mxu1 %vm704_vm0, %v588_v42  ;;  %2871 = vmatpush3.bf16.msra.mxu0 %v3016_v43  ;;  %4476 = vst [vmem:[#allocation7_spill] sm:$0xff] %v3467_v41  ;;  %v3470_v42 = vld [vmem:[%s3298_s17 + $0x38] sm:$0xff]  ;;  %v3475_v43 = vld [vmem:[%s3298_s17 + $0x68] sm:$0xff] }
  0x33   : > { %1690 = vperm.xlu1 %2990, %v1422_v29   ;;  %2872 = vmatprep.subr.bf16.mxu0 %v3017_v59  ;;  %v3456_v29 = vld [vmem:[%s3230_s27 + $0xa8] sm:$0xff] }
  0x34   : > { %1480 = vperm.xlu0 %2988, %v1425_v5   ;;  %4475 = vst [vmem:[#allocation6_spill] sm:$0xff] %v3456_v29 }
  0x36   : > { %2873 = vmatpush3.bf16.msra.mxu0 %v3017_v59  ;;  %v3494_v59 = vld [vmem:[%s3230_s27 + $0xb0] sm:$0xff] }
  0x37   : > { %2991 = vset.pattern.permute.xlu1 %v4443_v6  ;;  %4478 = vst [vmem:[#allocation9_spill] sm:$0xff] %v3494_v59  ;;  %v3523_v6 = vld [vmem:[%s3298_s17 + $0xa8] sm:$0xff] }
  0x38   : > { %2803 = vmatmul.mubr.msk.bf16.gmra.mxu0 %vm704_vm0, %v605_v55  ;;  %1475 = vperm.xlu1 %2991, %v3419_v2   ;;  %v593_v55 = vpack.c.bf16 %v3450_v27, %v3447_v26  ;;  %4486 = vst [vmem:[#allocation17_spill] sm:$0xff] %v3523_v6 }
  0x39   : > { %2843 = vmatmul.mubr.msk.bf16.gmra.mxu1 %vm704_vm0, %v589_v56  ;;  %2806 = vmatprep.mubr.msk.bf16.mxu0 %vm704_vm0, %v606_v57  ;;  %v610_v56 = vpack.c.bf16 %v3456_v29, %v3453_v28  ;;  %v594_v57 = vpack.c.bf16 %v3467_v41, %v3464_v40  ;;  %v1430_v41 = vld [vmem:[%s3298_s17 + $0x50] sm:$0xff] }
  0x3a   : > { %2846 = vmatprep.mubr.msk.bf16.mxu1 %vm704_vm0, %v590_v58  ;;  %1500 = vperm.xlu0 %2988, %v3459_v38   ;;  %v3489_v58 = vld [vmem:[%s3298_s17 + $0x88] sm:$0xff] }
  0x3b   : > { %4477 = vst [vmem:[#allocation8_spill] sm:$0xff] %v3489_v58 }
  0x3c   : > { %1485 = vperm.xlu1 %2991, %v1426_v25  }
  0x3e   : > { %1520 = vperm.xlu0 %2988, %v3475_v43  }
  0x40   : > { %2807 = vmatmul.mubr.msk.bf16.gmra.mxu0 %vm704_vm0, %v607_v7  ;;  %1490 = vperm.xlu1 %2991, %v3470_v42   ;;  %v3497_v7 = vld [vmem:[%s3230_s27 + $0xb8] sm:$0xff] }
  0x41   : > { %2847 = vmatmul.mubr.msk.bf16.gmra.mxu1 %vm704_vm0, %v591_v11  ;;  %2810 = vmatprep.mubr.msk.bf16.mxu0 %vm704_vm0, %v608_v12  ;;  %4479 = vst [vmem:[#allocation10_spill] sm:$0xff] %v3497_v7  ;;  %v3500_v11 = vld [vmem:[%s3236_s16 + $0xb0] sm:$0xff]  ;;  %v3504_v12 = vld [vmem:[%s3236_s16 + $0xb8] sm:$0xff] }
  0x42   : > { %2850 = vmatprep.mubr.msk.bf16.mxu1 %vm704_vm0, %v592_v14  ;;  %4480 = vst [vmem:[#allocation11_spill] sm:$0xff] %v3500_v11  ;;  %4481 = vst [vmem:[#allocation12_spill] sm:$0xff] %v3504_v12  ;;  %v3507_v14 = vld [vmem:[%s3230_s27 + $0xc0] sm:$0xff]  ;;  %1540 = vperm.xlu0 %2988, %v3489_v58   ;;  %v3534_v58 = vld [vmem:[%s3230_s27 + $0xd0] sm:$0xff] }
  0x43   : > { %4482 = vst [vmem:[#allocation13_spill] sm:$0xff] %v3507_v14  ;;  %4487 = vst [vmem:[#allocation18_spill] sm:$0xff] %v3534_v58 }
  0x44   : > { %2992 = vset.pattern.permute.xlu1 %v4445_v54  ;;  %v595_v54 = vpack.c.bf16 %v3504_v12, %v3500_v11  ;;  %v3562_v12 = vld [vmem:[%s3236_s16 + $0xe8] sm:$0xff] }
  0x45   : > { %1702 = vperm.xlu1 %2992, %v1425_v5   ;;  %4493 = vst [vmem:[#allocation24_spill] sm:$0xff] %v3562_v12 }
  0x46   : > { %1560 = vperm.xlu0 %2988, %v3523_v6   ;;  %v3556_v6 = vld [vmem:[%s3230_s27 + $0xe8] sm:$0xff] }
  0x47   : > { %4491 = vst [vmem:[#allocation22_spill] sm:$0xff] %v3556_v6 }
  0x48   : > { %2811 = vmatmul.mubr.msk.bf16.gmra.mxu0 %vm704_vm0, %v609_v48  ;;  %v3510_v48 = vld [vmem:[%s3230_s27 + $0xc8] sm:$0xff] }
  0x49   : > { %2851 = vmatmul.mubr.msk.bf16.gmra.mxu1 %vm704_vm0, %v593_v55  ;;  %2814 = vmatprep.mubr.msk.bf16.mxu0 %vm704_vm0, %v610_v56  ;;  %4483 = vst [vmem:[#allocation14_spill] sm:$0xff] %v3510_v48  ;;  %v3514_v55 = vld [vmem:[%s3236_s16 + $0xc0] sm:$0xff]  ;;  %v3517_v56 = vld [vmem:[%s3236_s16 + $0xc8] sm:$0xff]  ;;  %v612_v29 = vpack.c.bf16 %v3510_v48, %v3507_v14  ;;  %v3542_v48 = vld [vmem:[%s3230_s27 + $0xd8] sm:$0xff] }
  0x4a   : > { %2854 = vmatprep.mubr.msk.bf16.mxu1 %vm704_vm0, %v594_v57  ;;  %4484 = vst [vmem:[#allocation15_spill] sm:$0xff] %v3514_v55  ;;  %4485 = vst [vmem:[#allocation16_spill] sm:$0xff] %v3517_v56  ;;  %v611_v57 = vpack.c.bf16 %v3497_v7, %v3494_v59  ;;  %v596_v5 = vpack.c.bf16 %v3517_v56, %v3514_v55  ;;  %1706 = vperm.xlu1 %2992, %v1426_v25   ;;  %v3537_v7 = vld [vmem:[%s3298_s17 + $0xc8] sm:$0xff]  ;;  %v3545_v14 = vld [vmem:[%s3236_s16 + $0xd0] sm:$0xff] }
  0x4b   : > { %4488 = vst [vmem:[#allocation19_spill] sm:$0xff] %v3537_v7  ;;  %4489 = vst [vmem:[#allocation20_spill] sm:$0xff] %v3542_v48  ;;  %v1428_v56 = vld [vmem:[%s3298_s17 + $0x40] sm:$0xff]  ;;  %v3550_v25 = vld [vmem:[%s3236_s16 + $0xd8] sm:$0xff]  ;;  %1580 = vperm.xlu0 %2988, %v3537_v7  }
  0x4c   : > { %v3559_v55 = vld [vmem:[%s3236_s16 + $0xe0] sm:$0xff]  ;;  %v597_v59 = vpack.c.bf16 %v3550_v25, %v3545_v14 }
  0x4d   : > { %4492 = vst [vmem:[#allocation23_spill] sm:$0xff] %v3559_v55  ;;  %v598_v7 = vpack.c.bf16 %v3562_v12, %v3559_v55  ;;  %v1431_v12 = vld [vmem:[%s3298_s17 + $0x58] sm:$0xff]  ;;  %v4496_v55 = vmov 1  }
  0x50   : > { %2815 = vmatmul.mubr.msk.bf16.gmra.mxu0 %vm704_vm0, %v611_v57  ;;  %v3553_v57 = vld [vmem:[%s3230_s27 + $0xe0] sm:$0xff] }
  0x51   : > { %2855 = vmatmul.mubr.msk.bf16.gmra.mxu1 %vm704_vm0, %v595_v54  ;;  %2818 = vmatprep.mubr.msk.bf16.mxu0 %vm704_vm0, %v612_v29  ;;  %4490 = vst [vmem:[#allocation21_spill] sm:$0xff] %v3553_v57  ;;  %v4494_v54 = vmov 0   ;;  %v613_v29 = vpack.c.bf16 %v3542_v48, %v3534_v58  ;;  %v614_v11 = vpack.c.bf16 %v3556_v6, %v3553_v57  ;;  %v3587_v6 = vld [vmem:[%s3230_s27 + $0xf0] sm:$0xff]  ;;  %v3590_v57 = vld [vmem:[%s3230_s27 + $0xf8] sm:$0xff] }
  0x52   : > { %2858 = vmatprep.mubr.msk.bf16.mxu1 %vm704_vm0, %v596_v5  ;;  %2993 = vset.pattern.permute.xlu1 %v4494_v54  ;;  %v3569_v5 = vld [vmem:[%s3298_s17 + $0xe8] sm:$0xff]  ;;  %v616_v48 = vmul.f32 %v3243_v8, %v3249_v10  ;;  %v617_v58 = vmul.f32 %v3246_v9, %v3257_v13  ;;  %v615_v8 = vpack.c.bf16 %v3590_v57, %v3587_v6 }
  0x53   : > { %1495 = vperm.xlu1 %2993, %v1428_v56   ;;  %4495 = vst [vmem:[#allocation25_spill] sm:$0xff] %v3569_v5  ;;  %1600 = vperm.xlu0 %2988, %v3569_v5   ;;  %v3595_v5 = vld [vmem:[%s3236_s16 + $0xf0] sm:$0xff]  ;;  %v618_v13 = vmul.f32 %v3262_v15, %v3269_v17  ;;  %v622_v17 = vmul.f32 %v3311_v30, %v3317_v32 }
  0x54   : > { %v648_v9 = vpack.c.bf16 %v617_v58, %v616_v48  ;;  %v621_v58 = vmul.f32 %v3282_v21, %v3288_v23  ;;  %v624_v21 = vmul.f32 %v3325_v34, %v3331_v36  ;;  %v1434_v30 = vld [vmem:[%s3298_s17 + $0x70] sm:$0xff]  ;;  %v1435_v34 = vld [vmem:[%s3298_s17 + $0x78] sm:$0xff]  ;;  %v629_v36 = vmul.f32 %v3372_v50, %v3381_v53  ;;  %v1436_v53 = vld [vmem:[%s3298_s17 + $0x80] sm:$0xff] }
  0x55   : > { %v3018_v50 = vld [vmem:[%s4438_s8 + $0x18] sm:$0xff]   ;;  %v4506_v48 = vld [vmem:[#allocation14_spill] sm:$0xff] }
  0x56   : > { %2906 = vmatprep.subr.bf16.mxu1 %v3018_v50 }
  0x57   : > { %1505 = vperm.xlu1 %2993, %v1430_v41   ;;  %3004 = vset.pattern.permute.xlu0 %v4496_v55 }
  0x58   : > { %2819 = vmatmul.mubr.msk.bf16.gmra.mxu0 %vm704_vm0, %v613_v29  ;;  %v3598_v29 = vld [vmem:[%s3236_s16 + $0xf8] sm:$0xff]  ;;  %1682 = vperm.xlu0 %3004, %v3375_v51   ;;  %v620_v51 = vmul.f32 %v3278_v20, %v3285_v22  ;;  %v1432_v20 = vld [vmem:[%s3298_s17 + $0x60] sm:$0xff]  ;;  %v625_v22 = vmul.f32 %v3328_v35, %v3334_v37  ;;  %v628_v35 = vmul.f32 %v3369_v49, %v3378_v52 }
  0x59   : > { %2859 = vmatmul.mubr.msk.bf16.gmra.mxu1 %vm704_vm0, %v597_v59  ;;  %2822 = vmatprep.mubr.msk.bf16.mxu0 %vm704_vm0, %v614_v11  ;;  %v599_v10 = vpack.c.bf16 %v3598_v29, %v3595_v5  ;;  %v619_v59 = vmul.f32 %v3266_v16, %v3272_v18  ;;  %v623_v18 = vmul.f32 %v3314_v31, %v3322_v33 }
  0x5a   : > { %2862 = vmatprep.mubr.msk.bf16.mxu1 %vm704_vm0, %v598_v7  ;;  %v650_v16 = vpack.c.bf16 %v621_v58, %v620_v51  ;;  %v652_v32 = vpack.c.bf16 %v625_v22, %v624_v21  ;;  %v626_v31 = vmul.f32 %v3353_v44, %v3361_v46  ;;  %v627_v33 = vmul.f32 %v3356_v45, %v3364_v47  ;;  %v4504_v7 = vld [vmem:[#allocation13_spill] sm:$0xff]  ;;  %v4508_v58 = vld [vmem:[#allocation18_spill] sm:$0xff]  ;;  %v4512_v22 = vld [vmem:[#allocation24_spill] sm:$0xff] }
  0x5b   : > { %1510 = vperm.xlu1 %2993, %v1431_v12   ;;  %v649_v15 = vpack.c.bf16 %v619_v59, %v618_v13  ;;  %v651_v23 = vpack.c.bf16 %v623_v18, %v622_v17  ;;  %v630_v44 = vmul.f32 %v3398_v60, %v3406_v62  ;;  %v631_v45 = vmul.f32 %v3403_v61, %v3409_v63  ;;  %v1439_v60 = vld [vmem:[%s3298_s17 + $0x98] sm:$0xff]  ;;  %v3019_v59 = vld [vmem:[%s4438_s8 + $0x10] sm:$0xff]  }
  0x5c   : > { %1694 = vperm.xlu0 %3004, %v3339_v39   ;;  %v653_v37 = vpack.c.bf16 %v627_v33, %v626_v31  ;;  %v654_v39 = vpack.c.bf16 %v629_v36, %v628_v35  ;;  %v632_v46 = vmul.f32 %v3413_v0, %v3422_v3  ;;  %v633_v47 = vmul.f32 %v3416_v1, %v3425_v4  ;;  %v4497_v0 = vld [vmem:[#allocation7_spill] sm:$0xff]  ;;  %v4498_v1 = vld [vmem:[#allocation6_spill] sm:$0xff]  ;;  %v4507_v13 = vld [vmem:[#allocation8_spill] sm:$0xff] }
  0x5d   : > { %v655_v49 = vpack.c.bf16 %v631_v45, %v630_v44  ;;  %2907 = vmatpush3.bf16.msra.mxu1 %v3018_v50  ;;  %v634_v61 = vmul.f32 %v3439_v19, %v3447_v26  ;;  %v635_v62 = vmul.f32 %v3442_v24, %v3450_v27  ;;  %v636_v63 = vmul.f32 %v3453_v28, %v3464_v40  ;;  %v1438_v3 = vld [vmem:[%s3298_s17 + $0x90] sm:$0xff]  ;;  %v1440_v4 = vld [vmem:[%s3298_s17 + $0xa0] sm:$0xff]  ;;  %v1443_v24 = vld [vmem:[%s3298_s17 + $0xb8] sm:$0xff] }
  0x5e   : > { %v656_v52 = vpack.c.bf16 %v633_v47, %v632_v46  ;;  %v4499_v26 = vld [vmem:[#allocation11_spill] sm:$0xff]  ;;  %v4500_v27 = vld [vmem:[#allocation9_spill] sm:$0xff]  ;;  %v4501_v28 = vld [vmem:[#allocation12_spill] sm:$0xff]  ;;  %2908 = vmatprep.subr.bf16.mxu1 %v3019_v59 }
  0x5f   : > { %2994 = vset.pattern.permute.xlu1 %v4496_v55  ;;  %v4502_v40 = vld [vmem:[#allocation10_spill] sm:$0xff]  ;;  %v1447_v51 = vld [vmem:[%s3298_s17 + $0xd8] sm:$0xff]  ;;  %v4510_v18 = vld [vmem:[#allocation23_spill] sm:$0xff] }
  0x60   : > { %2823 = vmatmul.mubr.msk.bf16.gmra.mxu0 %vm704_vm0, %v615_v8  ;;  %1718 = vperm.xlu1 %2994, %v3459_v38   ;;  %v657_v38 = vpack.c.bf16 %v635_v62, %v634_v61  ;;  %v1444_v8 = vld [vmem:[%s3298_s17 + $0xc0] sm:$0xff]  ;;  %v1442_v35 = vld [vmem:[%s3298_s17 + $0xb0] sm:$0xff] }
  0x61   : > { %2863 = vmatmul.mubr.msk.bf16.gmra.mxu1 %vm704_vm0, %v599_v10  ;;  %2874 = vmatprep.mubr.msk.bf16.mxu0 %vm704_vm0, %v648_v9  ;;  %v3021_v45 = vld [vmem:[%s4438_s8] sm:$0xff]   ;;  %v4515_v47 = vld [vmem:[#allocation19_spill] sm:$0xff] }
  0x62   : > { %1698 = vperm.xlu0 %3004, %v3419_v2   ;;  %v637_v2 = vmul.f32 %v4498_v1, %v4497_v0  ;;  %2909 = vmatpush3.bf16.msra.mxu1 %v3019_v59  ;;  %v4516_v0 = vld [vmem:[#allocation25_spill] sm:$0xff] }
  0x64   : > { %1722 = vperm.xlu1 %2994, %v1430_v41   ;;  %v658_v19 = vpack.c.bf16 %v637_v2, %v636_v63  ;;  %v638_v41 = vmul.f32 %v4500_v27, %v4499_v26 }
  0x66   : > { %1710 = vperm.xlu0 %3004, %v3470_v42   ;;  %v639_v42 = vmul.f32 %v4502_v40, %v4501_v28 }
  0x68   : > { %2875 = vmatmul.mubr.msk.bf16.vlgmr.msra.gmra.mxu0 %vm704_vm0, %v649_v15  ;;  %2995 = vset.pattern.permute.xlu1 %v4494_v54  ;;  %v659_v9 = vpack.c.bf16 %v639_v42, %v638_v41  ;;  %v642_v15 = vmul.f32 %v4508_v58, %v3545_v14  ;;  %v1451_v14 = vld [vmem:[%s3298_s17 + $0xf8] sm:$0xff] }
  0x69   : > { %2878 = vmatprep.mubr.msk.bf16.mxu0 %vm704_vm0, %v650_v16  ;;  %1515 = vperm.xlu1 %2995, %v1432_v20   ;;  %v4509_v16 = vld [vmem:[#allocation20_spill] sm:$0xff] }
  0x6a   : > { %1714 = vperm.xlu0 %3004, %v1428_v56   ;;  %v643_v17 = vmul.f32 %v4509_v16, %v3550_v25  ;;  %v646_v25 = vmul.f32 %v3587_v6, %v3595_v5  ;;  %v4514_v6 = vld [vmem:[#allocation17_spill] sm:$0xff] }
  0x6c   : > { %v661_v31 = vpack.c.bf16 %v643_v17, %v642_v15 }
  0x6d   : > { %1525 = vperm.xlu1 %2995, %v1434_v30  }
  0x6e   : > { %1726 = vperm.xlu0 %3004, %v1431_v12   ;;  %v4505_v12 = vld [vmem:[#allocation16_spill] sm:$0xff] }
  0x6f   : > { %v641_v56 = vmul.f32 %v4506_v48, %v4505_v12 }
  0x70   : > { %2879 = vmatmul.mubr.msk.bf16.gmra.mxu0 %vm704_vm0, %v651_v23  ;;  %v4513_v23 = vld [vmem:[#allocation22_spill] sm:$0xff] }
  0x71   : > { %2882 = vmatprep.mubr.msk.bf16.mxu0 %vm704_vm0, %v652_v32  ;;  %1530 = vperm.xlu1 %2995, %v1435_v34   ;;  %v1448_v32 = vld [vmem:[%s3298_s17 + $0xe0] sm:$0xff] }
  0x72   : > { %1730 = vperm.xlu0 %3004, %v1432_v20   ;;  %v4511_v20 = vld [vmem:[#allocation21_spill] sm:$0xff] }
  0x73   : > { %v644_v21 = vmul.f32 %v4511_v20, %v4510_v18 }
  0x75   : > { %2996 = vset.pattern.permute.xlu1 %v4496_v55 }
  0x76   : > { %1734 = vperm.xlu1 %2996, %v3475_v43   ;;  %1742 = vperm.xlu0 %3004, %v1435_v34   ;;  %v4503_v43 = vld [vmem:[#allocation15_spill] sm:$0xff]  ;;  %v647_v34 = vmul.f32 %v3590_v57, %v3598_v29 }
  0x77   : > { %v640_v11 = vmul.f32 %v4504_v7, %v4503_v43  ;;  %v1446_v29 = vld [vmem:[%s3298_s17 + $0xd0] sm:$0xff] }
  0x78   : > { %2883 = vmatmul.mubr.msk.bf16.gmra.mxu0 %vm704_vm0, %v653_v37  ;;  %v663_v36 = vpack.c.bf16 %v647_v34, %v646_v25  ;;  %v3020_v37 = vld [vmem:[%s4438_s8 + $0x8] sm:$0xff]  }
  0x79   : > { %2886 = vmatprep.mubr.msk.bf16.mxu0 %vm704_vm0, %v654_v39  ;;  %v660_v10 = vpack.c.bf16 %v641_v56, %v640_v11  ;;  %2910 = vmatprep.subr.bf16.mxu1 %v3020_v37 }
  0x7a   : > { %1738 = vperm.xlu1 %2996, %v1434_v30   ;;  %1746 = vperm.xlu0 %3004, %v1436_v53   ;;  %v645_v30 = vmul.f32 %v4513_v23, %v4512_v22 }
  0x7b   : > { %2911 = vmatpush3.bf16.msra.mxu1 %v3020_v37 }
  0x7c   : > { %v662_v33 = vpack.c.bf16 %v645_v30, %v644_v21  ;;  %2912 = vmatprep.subr.bf16.mxu1 %v3021_v45 }
  0x7e   : > { %2997 = vset.pattern.permute.xlu1 %v4494_v54  ;;  %1758 = vperm.xlu0 %3004, %v1439_v60  }
  0x7f   : > { %1535 = vperm.xlu1 %2997, %v1436_v53   ;;  %2913 = vmatpush3.bf16.msra.mxu1 %v3021_v45 }
  0x80   : > { %2887 = vmatmul.mubr.msk.bf16.gmra.mxu0 %vm704_vm0, %v655_v49 }
  0x81   : > { %2890 = vmatprep.mubr.msk.bf16.mxu0 %vm704_vm0, %v656_v52  ;;  %v1450_v52 = vld [vmem:[%s3298_s17 + $0xf0] sm:$0xff]  ;;  %s2544_s17 = sshll.u32 %s474_s29, 1 }
  0x82   : > { %1762 = vperm.xlu0 %3004, %v1440_v4   ;;  %s476_s30 = scalar_lea.vmem [#allocation3], %s2544_s17 }
  0x83   : > { %1545 = vperm.xlu1 %2997, %v1438_v3   ;;  %s2457_s27 = sshll.u32 %s476_s30, 4  ;;  %s2458_s27 = int_to_ptr.vmem [resolvable:$true] %s2457_s27 }
  0x84   : > { %s3022_s20 = scalar_lea.vmem %s2458_s27, 32 }
  0x85   : > { %p3023_p11 = scmp.ne.s32.totalorder %s2458_s27, %s3022_s20 }
  0x86   : > { %1774 = vperm.xlu0 %3004, %v1443_v24  }
  0x87   : > { %1550 = vperm.xlu1 %2997, %v1439_v60   ;;  %p3024_p12 = pnand %p3023_p11, %p3191_p5 }
  0x88   : > { %2891 = vmatmul.mubr.msk.bf16.gmra.mxu0 %vm704_vm0, %v657_v38 }
  0x89   : > { %2894 = vmatprep.mubr.msk.bf16.mxu0 %vm704_vm0, %v658_v19  ;;  %p3025_p13 = pneg %p3024_p12 }
  0x8a   : > { %1778 = vperm.xlu0 %3004, %v1444_v8  }
  0x8b   : > { %2998 = vset.pattern.permute.xlu1 %v4496_v55 }
  0x8c   : > { %1750 = vperm.xlu1 %2998, %v4507_v13  }
  0x8e   : > { %1790 = vperm.xlu0 %3004, %v1447_v51  }
  0x90   : > { %2895 = vmatmul.mubr.msk.bf16.gmra.mxu0 %vm704_vm0, %v659_v9  ;;  %1754 = vperm.xlu1 %2998, %v1438_v3  }
  0x91   : > { %2898 = vmatprep.mubr.msk.bf16.mxu0 %vm704_vm0, %v660_v10 }
  0x92   : > { %1794 = vperm.xlu0 %3004, %v1448_v32  }
  0x94   : > { %2999 = vset.pattern.permute.xlu1 %v4494_v54 }
  0x95   : > { %1555 = vperm.xlu1 %2999, %v1440_v4  }
  0x96   : > { %1806 = vperm.xlu0 %3004, %v1451_v14  }
  0x98   : > { %2899 = vmatmul.mubr.msk.bf16.gmra.mxu0 %vm704_vm0, %v661_v31 }
  0x99   : > { %2902 = vmatprep.mubr.msk.bf16.mxu0 %vm704_vm0, %v662_v33  ;;  %1565 = vperm.xlu1 %2999, %v1442_v35  }
  0x9d   : > { %1570 = vperm.xlu1 %2999, %v1443_v24  }
  0x9f   : > { %v3720_v57 = vpop.permute.xlu1 %1465 }
  0xa0   : > { %2903 = vmatmul.mubr.msk.bf16.gmra.mxu0 %vm704_vm0, %v663_v36 }
  0xa1   : > { %3000 = vset.pattern.permute.xlu1 %v4496_v55 }
  0xa2   : > { %1766 = vperm.xlu1 %3000, %v4514_v6  }
  0xa3   : > { %v3722_v5 = vpop.permute.xlu1 %1470 }
  0xa6   : > { %1770 = vperm.xlu1 %3000, %v1442_v35   ;;  %v3745_v60 = vpop.permute.xlu0 %1455 }
  0xa8   : > { %v3726_v39 = vpop.permute.xlu1 %1686 }
  0xaa   : > { %3001 = vset.pattern.permute.xlu1 %v4494_v54  ;;  %v3749_v62 = vpop.permute.xlu0 %1460 }
  0xab   : > { %1575 = vperm.xlu1 %3001, %v1444_v8  }
  0xae   : > { %v3728_v44 = vpop.permute.xlu1 %1690 }
  0xaf   : > { %1585 = vperm.xlu1 %3001, %v1446_v29   ;;  %v3757_v1 = vpop.permute.xlu0 %1480 }
  0xb3   : > { %1590 = vperm.xlu1 %3001, %v1447_v51   ;;  %v3733_v46 = vpop.permute.xlu1 %1475 }
  0xb5   : > { %v3761_v3 = vpop.permute.xlu0 %1500 }
  0xb7   : > { %3002 = vset.pattern.permute.xlu1 %v4496_v55  ;;  %v3737_v49 = vpop.permute.xlu1 %1485 }
  0xb8   : > { %1782 = vperm.xlu1 %3002, %v4515_v47  }
  0xb9   : > { %v3765_v38 = vpop.permute.xlu0 %1520 }
  0xbb   : > { %v3740_v50 = vpop.permute.xlu1 %1490 }
  0xbc   : > { %1786 = vperm.xlu1 %3002, %v1446_v29  }
  0xc0   : > { %3003 = vset.pattern.permute.xlu1 %v4494_v54  ;;  %v3743_v53 = vpop.permute.xlu1 %1702 }
  0xc1   : > { %1595 = vperm.xlu1 %3003, %v1448_v32  }
  0xc5   : > { %1605 = vperm.xlu1 %3003, %v1450_v52   ;;  %v3747_v61 = vpop.permute.xlu1 %1706 }
  0xc9   : > { %1610 = vperm.xlu1 %3003, %v1451_v14  }
  0xcd   : > { %3005 = vset.pattern.permute.xlu1 %v4496_v55  ;;  %v3769_v55 = vpop.permute.xlu0 %1540 }
  0xce   : > { %v3752_v63 = vpop.permute.xlu1 %1495  ;;  %1798 = vperm.xlu1 %3005, %v4516_v0  }
  0xd1   : > { %v3783_v42 = vpop.permute.xlu0 %1560 }
  0xd2   : > { %v3755_v54 = vpop.permute.xlu1 %1505  ;;  %1802 = vperm.xlu1 %3005, %v1450_v52  }
  0xd5   : > { %v3797_v8 = vpop.permute.xlu0 %1580 }
  0xd6   : > { %v3759_v2 = vpop.permute.xlu1 %1510 }
  0xd9   : > { %v3815_v17 = vpop.permute.xlu0 %1600 }
  0xda   : > { %4520 = vst [vmem:[#allocation9_spill] sm:$0xff] %v3815_v17 }
  0xdb   : > { %v3763_v4 = vpop.permute.xlu1 %1718 }
  0xdd   : > { %v3827_v30 = vpop.permute.xlu0 %1682 }
  0xdf   : > { %v3767_v19 = vpop.permute.xlu1 %1722 }
  0xe1   : > { %v3841_v35 = vpop.permute.xlu0 %1694 }
  0xe4   : > { %v3771_v24 = vpop.permute.xlu1 %1515 }
  0xe5   : > { %v3855_v52 = vpop.permute.xlu0 %1698 }
  0xe8   : > { %v3773_v26 = vpop.f32.mrf.mxu0  ;;  %v3779_v28 = vpop.permute.xlu1 %1525 }
  0xe9   : > { %v3775_v27 = vpop.f32.mrf.mxu1 }
  0xea   : > { %v3777_v41 = vpop.f32.mrf.mxu0 }
  0xeb   : > { %v3781_v40 = vpop.f32.mrf.mxu1 }
  0xec   : > { %v3785_v43 = vpop.f32.mrf.mxu0  ;;  %v3793_v48 = vpop.permute.xlu1 %1530 }
  0xed   : > { %v3787_v7 = vpop.f32.mrf.mxu1  ;;  %4517 = vst [vmem:[#allocation7_spill] sm:$0xff] %v3793_v48 }
  0xee   : > { %v3789_v11 = vpop.f32.mrf.mxu0 }
  0xef   : > { %v3791_v12 = vpop.f32.mrf.mxu1 }
  0xf0   : > { %v3795_v56 = vpop.f32.mrf.mxu0 }
  0xf1   : > { %v3801_v10 = vpop.f32.mrf.mxu1  ;;  %v3803_v13 = vpop.permute.xlu1 %1734 }
  0xf2   : > { %v3799_v9 = vpop.f32.mrf.mxu0  ;;  %4518 = vst [vmem:[#allocation6_spill] sm:$0xff] %v3803_v13 }
  0xf3   : > { %v3809_v58 = vpop.f32.mrf.mxu1 }
  0xf4   : > { %v3805_v59 = vpop.f32.mrf.mxu0 }
  0xf5   : > { %v3811_v15 = vpop.permute.xlu1 %1738  ;;  %v3819_v20 = vpop.f32.mrf.mxu1 }
  0xf6   : > { %v3807_v51 = vpop.f32.mrf.mxu0  ;;  %4519 = vst [vmem:[#allocation11_spill] sm:$0xff] %v3811_v15 }
  0xf7   : > { %v3829_v32 = vpop.f32.mrf.mxu1 }
  0xf8   : > { %v3813_v16 = vpop.f32.mrf.mxu0 }
  0xf9   : > { %v3837_v25 = vpop.f32.mrf.mxu1 }
  0xfa   : > { %v3817_v18 = vpop.f32.mrf.mxu0  ;;  %v3823_v22 = vpop.permute.xlu1 %1535 }
  0xfb   : > { %4521 = vst [vmem:[#allocation12_spill] sm:$0xff] %v3823_v22  ;;  %v3847_v6 = vpop.f32.mrf.mxu1 }
  0xfc   : > { %v3821_v21 = vpop.f32.mrf.mxu0 }
  0xfd   : > { %v3857_v0 = vpop.f32.mrf.mxu1 }
  0xfe   : > { %v3825_v23 = vpop.f32.mrf.mxu0  ;;  %v3833_v33 = vpop.permute.xlu1 %1545  ;;  %4532 = vst [vmem:[#allocation24_spill] sm:$0xff] %v3857_v0  ;;  %v1029_v0 = vadd.f32 %v3775_v27, %v3773_v26 }
  0xff   : > { %4522 = vst [vmem:[#allocation10_spill] sm:$0xff] %v3825_v23  ;;  %4524 = vst [vmem:[#allocation13_spill] sm:$0xff] %v3833_v33 }
 0x100   : > { %v3831_v31 = vpop.f32.mrf.mxu0 }
 0x101   : > { %4523 = vst [vmem:[#allocation15_spill] sm:$0xff] %v3831_v31  ;;  %v4467_v31 = vlaneseq }
 0x102   : > { %v3835_v14 = vpop.f32.mrf.mxu0  ;;  %v3843_v36 = vpop.permute.xlu1 %1550 }
 0x103   : > { %4525 = vst [vmem:[#allocation16_spill] sm:$0xff] %v3835_v14  ;;  %4527 = vst [vmem:[#allocation8_spill] sm:$0xff] %v3843_v36  ;;  %v3865_v36 = vpop.f32.mrf.mxu1 }
 0x104   : > { %v3839_v34 = vpop.f32.mrf.mxu0  ;;  %4536 = vst [vmem:[#allocation25_spill] sm:$0xff] %v3865_v36 }
 0x105   : > { %4526 = vst [vmem:[#allocation14_spill] sm:$0xff] %v3839_v34  ;;  %v3869_v34 = vpop.permute.xlu0 %1710 }
 0x106   : > { %v3845_v37 = vpop.f32.mrf.mxu0 }
 0x107   : > { %4528 = vst [vmem:[#allocation18_spill] sm:$0xff] %v3845_v37  ;;  %v3851_v45 = vpop.permute.xlu1 %1750 }
 0x108   : > { %v3849_v29 = vpop.f32.mrf.mxu0  ;;  %4530 = vst [vmem:[#allocation23_spill] sm:$0xff] %v3851_v45 }
 0x109   : > { %4529 = vst [vmem:[#allocation20_spill] sm:$0xff] %v3849_v29 }
 0x10a   : > { %v3853_v47 = vpop.f32.mrf.mxu0 }
 0x10b   : > { %4531 = vst [vmem:[#allocation21_spill] sm:$0xff] %v3853_v47  ;;  %v3861_v33 = vpop.permute.xlu1 %1754  ;;  %v3875_v47 = vpop.f32.mrf.mxu1 }
 0x10c   : > { %v3859_v17 = vpop.f32.mrf.mxu0  ;;  %4534 = vst [vmem:[#allocation17_spill] sm:$0xff] %v3861_v33  ;;  %4540 = vst [vmem:[#allocation29_spill] sm:$0xff] %v3875_v47  ;;  %v3883_v33 = vpop.permute.xlu0 %1714 }
 0x10d   : > { %4533 = vst [vmem:[#allocation22_spill] sm:$0xff] %v3859_v17 }
 0x10e   : > { %v3863_v22 = vpop.f32.mrf.mxu0 }
 0x10f   : > { %4535 = vst [vmem:[#allocation19_spill] sm:$0xff] %v3863_v22  ;;  %v3885_v22 = vpop.f32.mrf.mxu1 }
 0x110   : > { %v3867_v37 = vpop.f32.mrf.mxu0  ;;  %v3873_v45 = vpop.permute.xlu1 %1555  ;;  %4544 = vst [vmem:[#allocation33_spill] sm:$0xff] %v3885_v22 }
 0x111   : > { %4537 = vst [vmem:[#allocation26_spill] sm:$0xff] %v3867_v37  ;;  %4539 = vst [vmem:[#allocation28_spill] sm:$0xff] %v3873_v45  ;;  %v3894_v45 = vshrl.u32 %v4467_v31, 7  ;;  %v1452_v31 = vld [vmem:[%s4436_s6] sm:$0x3] }
 0x112   : > { %v3871_v29 = vpop.f32.mrf.mxu0 }
 0x113   : > { %4538 = vst [vmem:[#allocation27_spill] sm:$0xff] %v3871_v29  ;;  %v3891_v29 = vpop.f32.mrf.mxu1  ;;  %4548 = vst [vmem:[#allocation37_spill] sm:$0xff] %v3894_v45  ;;  %v1615_v22 = vsub.s32 0, %v3894_v45 }
 0x114   : > { %v3877_v15 = vpop.f32.mrf.mxu0  ;;  %v3881_v17 = vpop.permute.xlu1 %1565  ;;  %4547 = vst [vmem:[#allocation36_spill] sm:$0xff] %v3891_v29 }
 0x115   : > { %4541 = vst [vmem:[#allocation30_spill] sm:$0xff] %v3877_v15  ;;  %4543 = vst [vmem:[#allocation32_spill] sm:$0xff] %v3881_v17  ;;  %v3904_v36 = vpop.f32.mrf.mxu1 }
 0x116   : > { %v3879_v14 = vpop.f32.mrf.mxu0  ;;  %4552 = vst [vmem:[#allocation41_spill] sm:$0xff] %v3904_v36 }
 0x117   : > { %4542 = vst [vmem:[#allocation31_spill] sm:$0xff] %v3879_v14  ;;  %v3900_v14 = vpop.permute.xlu0 %1726 }
 0x118   : > { %v3887_v37 = vpop.f32.mrf.mxu0  ;;  %v3898_v15 = vpop.permute.xlu1 %1570 }
 0x119   : > { %4545 = vst [vmem:[#allocation34_spill] sm:$0xff] %v3887_v37  ;;  %4550 = vst [vmem:[#allocation39_spill] sm:$0xff] %v3898_v15  ;;  %v3917_v15 = vpop.f32.mrf.mxu1 }
 0x11a   : > { %v3889_v13 = vpop.f32.mrf.mxu0  ;;  %4556 = vst [vmem:[#allocation45_spill] sm:$0xff] %v3917_v15 }
 0x11b   : > { %4546 = vst [vmem:[#allocation35_spill] sm:$0xff] %v3889_v13  ;;  %v3919_v23 = vpop.permute.xlu0 %1730 }
 0x11c   : > { %v3896_v47 = vpop.f32.mrf.mxu0 }
 0x11d   : > { %4549 = vst [vmem:[#allocation38_spill] sm:$0xff] %v3896_v47  ;;  %v3909_v13 = vpop.permute.xlu1 %1766  ;;  %v1811_v47 = vsub.s32 1, %v3894_v45  ;;  %v3933_v45 = vpop.f32.mrf.mxu1 }
 0x11e   : > { %v3902_v17 = vpop.f32.mrf.mxu0  ;;  %4554 = vst [vmem:[#allocation43_spill] sm:$0xff] %v3909_v13 }
 0x11f   : > { %4551 = vst [vmem:[#allocation40_spill] sm:$0xff] %v3902_v17  ;;  %v3921_v17 = vrot.slane %v1452_v31, %v1615_v22  ;;  %v3925_v48 = vrot.slane %v1452_v31, %v1811_v47 }
 0x120   : > { %v3907_v37 = vpop.f32.mrf.mxu0 }
 0x121   : > { %4553 = vst [vmem:[#allocation42_spill] sm:$0xff] %v3907_v37  ;;  %v3929_v13 = vpop.permute.xlu1 %1770  ;;  %v1620_v22 = vmul.f32 %v3921_v17, %v3722_v5  ;;  %v1814_v31 = vmul.f32 %v3925_v48, %v3726_v39  ;;  %v1617_v47 = vmul.f32 %v3921_v17, %v3745_v60  ;;  %v1815_v27 = vmul.f32 %v3925_v48, %v3728_v44 }
 0x122   : > { %v3915_v29 = vpop.f32.mrf.mxu0  ;;  %4559 = vst [vmem:[#allocation48_spill] sm:$0xff] %v3929_v13  ;;  %v1618_v5 = vmul.f32 %v3921_v17, %v3749_v62  ;;  %v3955_v39 = vmul.f32 %v3921_v17, %v3757_v1  ;;  %v1624_v62 = vmul.f32 %v3921_v17, %v3740_v50  ;;  %v3969_v1 = vmul.f32 %v3921_v17, %v3761_v3 }
 0x123   : > { %4555 = vst [vmem:[#allocation44_spill] sm:$0xff] %v3915_v29  ;;  %v1619_v29 = vmul.f32 %v3921_v17, %v3720_v57  ;;  %v1621_v57 = vmul.f32 %v3921_v17, %v3733_v46  ;;  %v1623_v46 = vmul.f32 %v3921_v17, %v3737_v49  ;;  %v3980_v49 = vld [vmem:[%s4437_s7] ss:$0 sm:$0xff]  ;;  %v3984_v3 = vmul.f32 %v3925_v48, %v3743_v53 }
 0x124   : > { %v3923_v36 = vpop.f32.mrf.mxu0 }
 0x125   : > { %4557 = vst [vmem:[#allocation46_spill] sm:$0xff] %v3923_v36  ;;  %v3945_v36 = vpop.permute.xlu0 %1742 }
 0x126   : > { %v3927_v37 = vpop.f32.mrf.mxu0  ;;  %v3973_v13 = vpop.permute.xlu1 %1575 }
 0x127   : > { %4558 = vst [vmem:[#allocation47_spill] sm:$0xff] %v3927_v37  ;;  %v1021_v37 = vadd.f32 %v3781_v40, %v3777_v41  ;;  %v1032_v41 = vadd.f32 %v3787_v7, %v3785_v43  ;;  %v1813_v40 = vmul.f32 %v3925_v48, %v3827_v30  ;;  %v1816_v43 = vmul.f32 %v3925_v48, %v3841_v35 }
 0x128   : > { %v2876_v15 = vpop.f32.mrf.mxu0  ;;  %v1024_v30 = vadd.f32 %v3791_v12, %v3789_v11  ;;  %v3988_v35 = vmul.f32 %v3921_v17, %v3765_v38  ;;  %v3994_v11 = vmul.f32 %v3921_v17, %v3769_v55  ;;  %v1045_v55 = vadd.f32 %v3801_v10, %v3795_v56 }
 0x129   : > { %v1390_v26 = vadd.f32 %v2876_v15, %v1029_v0  ;;  %v3961_v15 = vpop.f32.mrf.mxu1  ;;  %v4002_v53 = vpop.permute.xlu0 %1746  ;;  %v1048_v56 = vadd.f32 %v3819_v20, %v3805_v59 }
 0x12a   : > { %v1261_v60 = vpop.f32.mrf.mxu0 }
 0x12b   : > { %v1651_v44 = vadd.f32 %v1619_v29, %v1390_v26  ;;  %v1388_v0 = vadd.f32 %v1261_v60, %v1021_v37  ;;  %v1819_v26 = vmul.f32 %v3925_v48, %v3747_v61  ;;  %v4010_v61 = vmul.f32 %v3921_v17, %v3797_v8 }
 0x12c   : > { %v2877_v7 = vpop.f32.mrf.mxu0  ;;  %v4025_v8 = vmul.f32 %v3925_v48, %v3763_v4  ;;  %v1817_v4 = vmul.f32 %v3925_v48, %v3855_v52 }
 0x12d   : > { %v1847_v37 = vadd.f32 %v1815_v27, %v1651_v44  ;;  %v1649_v50 = vadd.f32 %v1617_v47, %v1388_v0  ;;  %v1391_v29 = vadd.f32 %v2877_v7, %v1032_v41  ;;  %v3998_v47 = vmul.f32 %v3921_v17, %v3783_v42  ;;  %v4000_v27 = vpop.f32.mrf.mxu1 }
 0x12e   : > { %v1264_v12 = vpop.f32.mrf.mxu0  ;;  %v4006_v44 = vmul.f32 %v3921_v17, %v3752_v63  ;;  %v1627_v7 = vmul.f32 %v3921_v17, %v3755_v54  ;;  %v4021_v63 = vmul.f32 %v3921_v17, %v3759_v2 }
 0x12f   : > { %v1845_v60 = vadd.f32 %v1813_v40, %v1649_v50  ;;  %v1652_v41 = vadd.f32 %v1620_v22, %v1391_v29  ;;  %v1389_v38 = vadd.f32 %v1264_v12, %v1024_v30  ;;  %v1886_v42 = vadd.f32 %v3980_v49, %v1847_v37  ;;  %v4029_v50 = vpop.permute.xlu1 %1585  ;;  %v4031_v54 = vpop.f32.mrf.mxu1 }
 0x130   : > { %v2880_v0 = vpop.f32.mrf.mxu0  ;;  %v1037_v22 = vadd.f32 %v3809_v58, %v3799_v9  ;;  %v4039_v12 = vpop.permute.xlu0 %1758 }
 0x131   : > { %v1848_v40 = vadd.f32 %v1816_v43, %v1652_v41  ;;  %v1650_v30 = vadd.f32 %v1618_v5, %v1389_v38  ;;  %v1394_v10 = vadd.f32 %v2880_v0, %v1045_v55  ;;  %v1884_v9 = vadd.f32 %v3980_v49, %v1845_v60 }
 0x132   : > { %v1277_v37 = vpop.f32.mrf.mxu0  ;;  %v1823_v43 = vmul.f32 %v3925_v48, %v3767_v19  ;;  %v1918_v29 = vmax.f32 %v1886_v42, 0.0  ;;  %v1061_v0 = vadd.f32 %v3837_v25, %v3813_v16  ;;  %v1820_v19 = vmul.f32 %v3925_v48, %v3869_v34 }
 0x133   : > { %v1887_v58 = vadd.f32 %v3980_v49, %v1848_v40  ;;  %v1846_v5 = vadd.f32 %v1814_v31, %v1650_v30  ;;  %v1392_v2 = vadd.f32 %v1277_v37, %v1037_v22  ;;  %v1655_v59 = vadd.f32 %v1623_v46, %v1394_v10  ;;  %v4048_v46 = vpop.f32.mrf.mxu1 }
 0x134   : > { %v2881_v20 = vpop.f32.mrf.mxu0  ;;  %v1040_v31 = vadd.f32 %v3829_v32, %v3807_v51  ;;  %v1916_v22 = vmax.f32 %v1884_v9, 0.0  ;;  %v1821_v51 = vmul.f32 %v3925_v48, %v3883_v33  ;;  %v1053_v34 = vadd.f32 %v3847_v6, %v3817_v18  ;;  %v4070_v18 = vpop.permute.xlu0 %1762 }
 0x135   : > { %v1919_v41 = vmax.f32 %v1887_v58, 0.0  ;;  %v1885_v38 = vadd.f32 %v3980_v49, %v1846_v5  ;;  %v1653_v55 = vadd.f32 %v1621_v57, %v1392_v2  ;;  %v1395_v60 = vadd.f32 %v2881_v20, %v1048_v56  ;;  %v4056_v56 = vpop.permute.xlu1 %1590  ;;  %v4560_v2 = vld [vmem:[#allocation24_spill] sm:$0xff] }
 0x136   : > { %v1851_v52 = vadd.f32 %v1819_v26, %v1655_v59  ;;  %v1280_v42 = vpop.f32.mrf.mxu0  ;;  %v4052_v57 = vmul.f32 %v3921_v17, %v3771_v24  ;;  %v1824_v24 = vmul.f32 %v3925_v48, %v3900_v14 }
 0x137   : > { %v1949_v40 = vpack.c.bf16 %v1919_v41, %v1918_v29  ;;  %v1917_v30 = vmax.f32 %v1885_v38, 0.0  ;;  %v1656_v10 = vadd.f32 %v1624_v62, %v1395_v60  ;;  %v1849_v32 = vadd.f32 %v1817_v4, %v1653_v55  ;;  %v4068_v29 = vpop.f32.mrf.mxu1  ;;  %v4563_v60 = vld [vmem:[#allocation25_spill] sm:$0xff] }
 0x138   : > { %v1393_v16 = vadd.f32 %v1280_v42, %v1040_v31  ;;  %v2884_v25 = vpop.f32.mrf.mxu0  ;;  %v1631_v62 = vmul.f32 %v3921_v17, %v3779_v28  ;;  %v1890_v58 = vadd.f32 %v3980_v49, %v1851_v52  ;;  %v1064_v4 = vadd.f32 %v4560_v2, %v3821_v21  ;;  %v4561_v28 = vld [vmem:[#allocation7_spill] sm:$0xff]  ;;  %v4564_v42 = vld [vmem:[#allocation6_spill] sm:$0xff]  ;;  %v4567_v2 = vld [vmem:[#allocation16_spill] sm:$0xff] }
 0x139   : > { %v1852_v26 = vadd.f32 %v1820_v19, %v1656_v10  ;;  %v1398_v37 = vadd.f32 %v2884_v25, %v1061_v0  ;;  %v1948_v9 = vpack.c.bf16 %v1917_v30, %v1916_v22  ;;  %v1632_v14 = vmul.f32 %v3921_v17, %v4561_v28  ;;  %v4083_v55 = vpop.permute.xlu1 %1782 }
 0x13a   : > { %v1654_v33 = vadd.f32 %v3955_v39, %v1393_v16  ;;  %v1293_v5 = vpop.f32.mrf.mxu0  ;;  %v4078_v39 = vmul.f32 %v3925_v48, %v3919_v23  ;;  %v1888_v41 = vadd.f32 %v3980_v49, %v1849_v32  ;;  %v4090_v23 = vmul.f32 %v3925_v48, %v4564_v42  ;;  %v4565_v32 = vld [vmem:[#allocation15_spill] sm:$0xff]  ;;  %v4572_v42 = vld [vmem:[#allocation18_spill] sm:$0xff] }
 0x13b   : > { %v1891_v6 = vadd.f32 %v3980_v49, %v1852_v26  ;;  %v1659_v59 = vadd.f32 %v1627_v7, %v1398_v37  ;;  %v1396_v20 = vadd.f32 %v1293_v5, %v1053_v34  ;;  %2914 = vmatprep.mubr.msk.bf16.mxu1 %vm704_vm0, %v1948_v9  ;;  %v4562_v7 = vld [vmem:[#allocation10_spill] sm:$0xff]  ;;  %v1922_v22 = vmax.f32 %v1890_v58, 0.0  ;;  %v4097_v34 = vpop.f32.mrf.mxu1 }
 0x13c   : > { %v1850_v21 = vadd.f32 %v3984_v3, %v1654_v33  ;;  %v2885_v38 = vpop.f32.mrf.mxu0  ;;  %2915 = vmatmul.mubr.msk.bf16.vlgmr.msra.gmra.mxu1 %vm704_vm0, %v1949_v40  ;;  %v1056_v31 = vadd.f32 %v4563_v60, %v4562_v7  ;;  %v4566_v40 = vld [vmem:[#allocation29_spill] sm:$0xff]  ;;  %v1828_v25 = vmul.f32 %v3925_v48, %v3945_v36  ;;  %v1920_v37 = vmax.f32 %v1888_v41, 0.0  ;;  %v4570_v60 = vld [vmem:[#allocation14_spill] sm:$0xff] }
 0x13d   : > { %v1923_v0 = vmax.f32 %v1891_v6, 0.0  ;;  %v1657_v19 = vadd.f32 %v4006_v44, %v1396_v20  ;;  %v1399_v52 = vadd.f32 %v2885_v38, %v1064_v4  ;;  %v1855_v3 = vadd.f32 %v1823_v43, %v1659_v59  ;;  %v4568_v4 = vld [vmem:[#allocation33_spill] sm:$0xff]  ;;  %v4569_v6 = vld [vmem:[#allocation11_spill] sm:$0xff]  ;;  %v1775_v20 = vpop.permute.xlu0 %1774  ;;  %v4110_v7 = vpop.permute.xlu1 %1786 }
 0x13e   : > { %v1889_v30 = vadd.f32 %v3980_v49, %v1850_v21  ;;  %v1296_v10 = vpop.f32.mrf.mxu0  ;;  %v1077_v16 = vadd.f32 %v4566_v40, %v4565_v32  ;;  %v1069_v43 = vadd.f32 %v4568_v4, %v4567_v2  ;;  %v1827_v59 = vmul.f32 %v3925_v48, %v4569_v6  ;;  %v4576_v4 = vld [vmem:[#allocation20_spill] sm:$0xff] }
 0x13f   : > { %v1660_v44 = vadd.f32 %v4021_v63, %v1399_v52  ;;  %v1397_v26 = vadd.f32 %v1296_v10, %v1056_v31  ;;  %v1853_v33 = vadd.f32 %v1821_v51, %v1657_v19  ;;  %v1951_v58 = vpack.c.bf16 %v1923_v0, %v1922_v22  ;;  %v4571_v31 = vld [vmem:[#allocation36_spill] sm:$0xff]  ;;  %v4114_v19 = vpop.f32.mrf.mxu1 }
 0x140   : > { %v1921_v9 = vmax.f32 %v1889_v30, 0.0  ;;  %v2888_v5 = vpop.f32.mrf.mxu0  ;;  %v4107_v21 = vmul.f32 %v3925_v48, %v4002_v53  ;;  %v1894_v63 = vadd.f32 %v3980_v49, %v1855_v3  ;;  %v1080_v0 = vadd.f32 %v4571_v31, %v4570_v60  ;;  %v4573_v53 = vld [vmem:[#allocation41_spill] sm:$0xff]  ;;  %v4574_v30 = vld [vmem:[#allocation12_spill] sm:$0xff] }
 0x141   : > { %v1856_v28 = vadd.f32 %v1824_v24, %v1660_v44  ;;  %v1658_v36 = vadd.f32 %v3969_v1, %v1397_v26  ;;  %v1402_v41 = vadd.f32 %v2888_v5, %v1077_v16  ;;  %v1072_v22 = vadd.f32 %v4573_v53, %v4572_v42  ;;  %v4578_v31 = vld [vmem:[#allocation8_spill] sm:$0xff] }
 0x142   : > { %v1309_v51 = vpop.f32.mrf.mxu0  ;;  %v1950_v38 = vpack.c.bf16 %v1921_v9, %v1920_v37  ;;  %v1633_v3 = vmul.f32 %v3921_v17, %v4574_v30  ;;  %v1892_v10 = vadd.f32 %v3980_v49, %v1853_v33  ;;  %v1832_v5 = vmul.f32 %v3925_v48, %v4039_v12  ;;  %v4580_v30 = vld [vmem:[#allocation22_spill] sm:$0xff] }
 0x143   : > { %v1895_v24 = vadd.f32 %v3980_v49, %v1856_v28  ;;  %v1854_v1 = vadd.f32 %v4025_v8, %v1658_v36  ;;  %v1400_v52 = vadd.f32 %v1309_v51, %v1069_v43  ;;  %v1663_v32 = vadd.f32 %v1631_v62, %v1402_v41  ;;  %v4575_v8 = vld [vmem:[#allocation13_spill] sm:$0xff]  ;;  %v4133_v28 = vpop.f32.mrf.mxu1  ;;  %v1779_v36 = vpop.permute.xlu0 %1778 }
 0x144   : > { %2918 = vmatprep.mubr.msk.bf16.mxu1 %vm704_vm0, %v1950_v38  ;;  %v2889_v40 = vpop.f32.mrf.mxu0  ;;  %v1635_v9 = vmul.f32 %v3921_v17, %v4575_v8  ;;  %v1926_v2 = vmax.f32 %v1894_v63, 0.0  ;;  %v4577_v43 = vld [vmem:[#allocation45_spill] sm:$0xff]  ;;  %v1924_v38 = vmax.f32 %v1892_v10, 0.0  ;;  %v1096_v10 = vadd.f32 %v3961_v15, %v4580_v30  ;;  %v4583_v15 = vld [vmem:[#allocation19_spill] sm:$0xff]  ;;  %v4587_v30 = vld [vmem:[#allocation28_spill] sm:$0xff] }
 0x145   : > { %v1927_v16 = vmax.f32 %v1895_v24, 0.0  ;;  %v1893_v44 = vadd.f32 %v3980_v49, %v1854_v1  ;;  %v1661_v26 = vadd.f32 %v4052_v57, %v1400_v52  ;;  %v1403_v37 = vadd.f32 %v2889_v40, %v1080_v0  ;;  %2919 = vmatmul.mubr.msk.bf16.gmra.mxu1 %vm704_vm0, %v1951_v58 }
 0x146   : > { %v1859_v33 = vadd.f32 %v1827_v59, %v1663_v32  ;;  %v1312_v62 = vpop.f32.mrf.mxu0  ;;  %v1093_v6 = vadd.f32 %v4577_v43, %v4576_v4  ;;  %v4137_v58 = vmul.f32 %v3925_v48, %v4070_v18  ;;  %v4140_v59 = vpop.permute.xlu1 %1595  ;;  %v1636_v0 = vmul.f32 %v3921_v17, %v4578_v31 }
 0x147   : > { %v1925_v41 = vmax.f32 %v1893_v44, 0.0  ;;  %v1664_v57 = vadd.f32 %v1632_v14, %v1403_v37  ;;  %v1401_v51 = vadd.f32 %v1312_v62, %v1072_v22  ;;  %v1857_v60 = vadd.f32 %v4078_v39, %v1661_v26  ;;  %v4579_v14 = vld [vmem:[#allocation21_spill] sm:$0xff]  ;;  %v4153_v32 = vpop.f32.mrf.mxu1 }
 0x148   : > { %v2892_v12 = vpop.f32.mrf.mxu0  ;;  %v1953_v63 = vpack.c.bf16 %v1927_v16, %v1926_v2  ;;  %v1085_v42 = vadd.f32 %v3933_v45, %v4579_v14  ;;  %v4148_v18 = vmul.f32 %v3925_v48, %v1775_v20  ;;  %v1898_v53 = vadd.f32 %v3980_v49, %v1859_v33  ;;  %v4581_v16 = vld [vmem:[#allocation23_spill] sm:$0xff]  ;;  %v4582_v44 = vld [vmem:[#allocation17_spill] sm:$0xff]  ;;  %v1791_v33 = vpop.permute.xlu0 %1790 }
 0x149   : > { %v1860_v24 = vadd.f32 %v1828_v25, %v1664_v57  ;;  %v1662_v1 = vadd.f32 %v3988_v35, %v1401_v51  ;;  %v1406_v52 = vadd.f32 %v2892_v12, %v1093_v6  ;;  %v1952_v22 = vpack.c.bf16 %v1925_v41, %v1924_v38  ;;  %v4584_v38 = vld [vmem:[#allocation26_spill] sm:$0xff] }
 0x14a   : > { %v1325_v39 = vpop.f32.mrf.mxu0  ;;  %v1830_v45 = vmul.f32 %v3925_v48, %v4581_v16  ;;  %v1831_v20 = vmul.f32 %v3925_v48, %v4582_v44  ;;  %v1896_v26 = vadd.f32 %v3980_v49, %v1857_v60  ;;  %v1088_v2 = vadd.f32 %v4000_v27, %v4583_v15  ;;  %v4170_v51 = vpop.permute.xlu1 %1605 }
 0x14b   : > { %v1899_v25 = vadd.f32 %v3980_v49, %v1860_v24  ;;  %v1858_v35 = vadd.f32 %v4090_v23, %v1662_v1  ;;  %v1667_v40 = vadd.f32 %v1635_v9, %v1406_v52  ;;  %v1404_v37 = vadd.f32 %v1325_v39, %v1085_v42  ;;  %2922 = vmatprep.mubr.msk.bf16.mxu1 %vm704_vm0, %v1952_v22  ;;  %v4174_v27 = vpop.f32.mrf.mxu1  ;;  %v4585_v1 = vld [vmem:[#allocation27_spill] sm:$0xff] }
 0x14c   : > { %v2893_v8 = vpop.f32.mrf.mxu0  ;;  %v4168_v4 = vmul.f32 %v3925_v48, %v1779_v36  ;;  %v1930_v43 = vmax.f32 %v1898_v53, 0.0  ;;  %v1109_v60 = vadd.f32 %v4031_v54, %v4584_v38  ;;  %v1928_v52 = vmax.f32 %v1896_v26, 0.0  ;;  %v4588_v26 = vld [vmem:[#allocation30_spill] sm:$0xff] }
 0x14d   : > { %v1931_v62 = vmax.f32 %v1899_v25, 0.0  ;;  %v1897_v23 = vadd.f32 %v3980_v49, %v1858_v35  ;;  %v1407_v9 = vadd.f32 %v2893_v8, %v1096_v10  ;;  %2923 = vmatmul.mubr.msk.bf16.gmra.mxu1 %vm704_vm0, %v1953_v63  ;;  %v1863_v6 = vadd.f32 %v1831_v20, %v1667_v40  ;;  %v1795_v40 = vpop.permute.xlu0 %1794  ;;  %v4589_v8 = vld [vmem:[#allocation48_spill] sm:$0xff] }
 0x14e   : > { %v1665_v41 = vadd.f32 %v1633_v3, %v1404_v37  ;;  %v1328_v57 = vpop.f32.mrf.mxu0  ;;  %v1101_v63 = vadd.f32 %v4048_v46, %v4585_v1  ;;  %v4586_v3 = vld [vmem:[#allocation32_spill] sm:$0xff]  ;;  %v1637_v10 = vmul.f32 %v3921_v17, %v4587_v30  ;;  %v4192_v37 = vmul.f32 %v3925_v48, %v1795_v40  ;;  %v4593_v1 = vld [vmem:[#allocation35_spill] sm:$0xff] }
 0x14f   : > { %v1929_v12 = vmax.f32 %v1897_v23, 0.0  ;;  %v1668_v31 = vadd.f32 %v1636_v0, %v1407_v9  ;;  %v1405_v24 = vadd.f32 %v1328_v57, %v1088_v2  ;;  %v1955_v42 = vpack.c.bf16 %v1931_v62, %v1930_v43  ;;  %v4198_v62 = vpop.permute.xlu1 %1610  ;;  %v4590_v23 = vld [vmem:[#allocation31_spill] sm:$0xff] }
 0x150   : > { %v1861_v36 = vadd.f32 %v4107_v21, %v1665_v41  ;;  %v2896_v14 = vpop.f32.mrf.mxu0  ;;  %v1639_v53 = vmul.f32 %v3921_v17, %v4586_v3  ;;  %v4185_v0 = vmul.f32 %v3925_v48, %v1791_v33  ;;  %v1902_v46 = vadd.f32 %v3980_v49, %v1863_v6  ;;  %v2864_v21 = vpop.f32.mrf.mxu1  ;;  %v4591_v6 = vld [vmem:[#allocation39_spill] sm:$0xff] }
 0x151   : > { %v1864_v39 = vadd.f32 %v1832_v5, %v1668_v31  ;;  %v1666_v22 = vadd.f32 %v3994_v11, %v1405_v24  ;;  %v1410_v54 = vadd.f32 %v2896_v14, %v1109_v60  ;;  %v1954_v35 = vpack.c.bf16 %v1929_v12, %v1928_v52  ;;  %v4592_v31 = vld [vmem:[#allocation34_spill] sm:$0xff] }
 0x152   : > { %v1341_v25 = vpop.f32.mrf.mxu0  ;;  %v1112_v11 = vadd.f32 %v4068_v29, %v4588_v26  ;;  %v1835_v15 = vmul.f32 %v3925_v48, %v4589_v8  ;;  %v1900_v2 = vadd.f32 %v3980_v49, %v1861_v36  ;;  %v1640_v41 = vmul.f32 %v3921_v17, %v4591_v6 }
 0x153   : > { %v1903_v16 = vadd.f32 %v3980_v49, %v1864_v39  ;;  %v1862_v44 = vadd.f32 %v1830_v45, %v1666_v22  ;;  %v1671_v20 = vadd.f32 %v1639_v53, %v1410_v54  ;;  %v1408_v5 = vadd.f32 %v1341_v25, %v1101_v63  ;;  %2926 = vmatprep.mubr.msk.bf16.mxu1 %vm704_vm0, %v1954_v35  ;;  %v4211_v22 = vpop.permute.xlu1 %1798  ;;  %v4594_v54 = vld [vmem:[#allocation43_spill] sm:$0xff] }
 0x154   : > { %v2897_v33 = vpop.f32.mrf.mxu0  ;;  %v1104_v45 = vadd.f32 %v4097_v34, %v4590_v23  ;;  %v1934_v57 = vmax.f32 %v1902_v46, 0.0  ;;  %v1125_v24 = vadd.f32 %v4114_v19, %v4592_v31  ;;  %v1117_v63 = vadd.f32 %v4133_v28, %v4593_v1  ;;  %v1132_v34 = vpop.f32.mrf.mxu1  ;;  %v4595_v46 = vld [vmem:[#allocation38_spill] sm:$0xff] }
 0x155   : > { %v1935_v9 = vmax.f32 %v1903_v16, 0.0  ;;  %v1901_v43 = vadd.f32 %v3980_v49, %v1862_v44  ;;  %v1669_v29 = vadd.f32 %v1637_v10, %v1408_v5  ;;  %2927 = vmatmul.mubr.msk.bf16.gmra.mxu1 %vm704_vm0, %v1955_v42  ;;  %v1867_v38 = vadd.f32 %v1835_v15, %v1671_v20 }
 0x156   : > { %v1411_v60 = vadd.f32 %v2897_v33, %v1112_v11  ;;  %v1344_v12 = vpop.f32.mrf.mxu0  ;;  %v1932_v14 = vmax.f32 %v1900_v2, 0.0  ;;  %v1834_v30 = vmul.f32 %v3925_v48, %v4594_v54  ;;  %v1643_v19 = vmul.f32 %v3921_v17, %v4029_v50  ;;  %v4596_v11 = vld [vmem:[#allocation40_spill] sm:$0xff] }
 0x157   : > { %v1933_v52 = vmax.f32 %v1901_v43, 0.0  ;;  %v1409_v36 = vadd.f32 %v1344_v12, %v1104_v45  ;;  %v1865_v3 = vadd.f32 %v4137_v58, %v1669_v29  ;;  %v1957_v39 = vpack.c.bf16 %v1935_v9, %v1934_v57  ;;  %v1803_v6 = vpop.permute.xlu1 %1802 }
 0x158   : > { %v1672_v42 = vadd.f32 %v1640_v41, %v1411_v60  ;;  %v2900_v53 = vpop.f32.mrf.mxu0  ;;  %v1128_v25 = vadd.f32 %v4153_v32, %v4595_v46  ;;  %v1906_v35 = vadd.f32 %v3980_v49, %v1867_v38  ;;  %v1641_v44 = vmul.f32 %v3921_v17, %v3973_v13  ;;  %v4598_v41 = vld [vmem:[#allocation44_spill] sm:$0xff]  ;;  %v4599_v38 = vld [vmem:[#allocation46_spill] sm:$0xff]  ;;  %v1807_v46 = vpop.permute.xlu0 %1806 }
 0x159   : > { %v1670_v10 = vadd.f32 %v3998_v47, %v1409_v36  ;;  %v1414_v28 = vadd.f32 %v2900_v53, %v1125_v24  ;;  %v1956_v16 = vpack.c.bf16 %v1933_v52, %v1932_v14  ;;  %v1120_v50 = vadd.f32 %v4174_v27, %v4596_v11  ;;  %v2865_v47 = vpop.f32.mrf.mxu1  ;;  %v4597_v27 = vld [vmem:[#allocation42_spill] sm:$0xff] }
 0x15a   : > { %v1868_v58 = vadd.f32 %v4148_v18, %v1672_v42  ;;  %v1357_v40 = vpop.f32.mrf.mxu0  ;;  %v1839_v8 = vmul.f32 %v3925_v48, %v4110_v7  ;;  %v1904_v32 = vadd.f32 %v3980_v49, %v1865_v3  ;;  %v1644_v13 = vmul.f32 %v3921_v17, %v4056_v56 }
 0x15b   : > { %v1866_v20 = vadd.f32 %v1834_v30, %v1670_v10  ;;  %v1675_v5 = vadd.f32 %v1643_v19, %v1414_v28  ;;  %v1412_v26 = vadd.f32 %v1357_v40, %v1117_v63  ;;  %2930 = vmatprep.mubr.msk.bf16.mxu1 %vm704_vm0, %v1956_v16  ;;  %v1141_v45 = vadd.f32 %v2864_v21, %v4597_v27  ;;  %v1135_v36 = vpop.f32.mrf.mxu1 }
 0x15c   : > { %v1907_v15 = vadd.f32 %v3980_v49, %v1868_v58  ;;  %v2901_v18 = vpop.f32.mrf.mxu0  ;;  %v1938_v9 = vmax.f32 %v1906_v35, 0.0  ;;  %v1133_v57 = vadd.f32 %v1132_v34, %v4598_v41  ;;  %v1144_v60 = vadd.f32 %v2865_v47, %v4599_v38  ;;  %v4274_v41 = vld [vmem:[%s4440_s10] sm:$0xff] }
 0x15d   : > { %v1905_v2 = vadd.f32 %v3980_v49, %v1866_v20  ;;  %v1673_v33 = vadd.f32 %v1641_v44, %v1412_v26  ;;  %v1415_v23 = vadd.f32 %v2901_v18, %v1128_v25  ;;  %2931 = vmatmul.mubr.msk.bf16.gmra.mxu1 %vm704_vm0, %v1957_v39  ;;  %v1871_v43 = vadd.f32 %v1839_v8, %v1675_v5  ;;  %v4601_v44 = vld [vmem:[#allocation9_spill] sm:$0xff] }
 0x15e   : > { %v1939_v7 = vmax.f32 %v1907_v15, 0.0  ;;  %v1360_v29 = vpop.f32.mrf.mxu0  ;;  %v1936_v56 = vmax.f32 %v1904_v32, 0.0  ;;  %v1647_v21 = vmul.f32 %v3921_v17, %v4170_v51  ;;  %v1843_v42 = vmul.f32 %v3925_v48, %v1803_v6  ;;  %2784 = vmatprep.mubr.msk.f32.mxu0 %vm704_vm0, %v4274_v41 }
 0x15f   : > { %v1937_v12 = vmax.f32 %v1905_v2, 0.0  ;;  %v1676_v31 = vadd.f32 %v1644_v13, %v1415_v23  ;;  %v1869_v24 = vadd.f32 %v4168_v4, %v1673_v33  ;;  %v1413_v1 = vadd.f32 %v1360_v29, %v1120_v50 }
 0x160   : > { %v2904_v63 = vpop.f32.mrf.mxu0  ;;  %v1959_v52 = vpack.c.bf16 %v1939_v7, %v1938_v9  ;;  %v1838_v34 = vmul.f32 %v3925_v48, %v4083_v55  ;;  %v1910_v53 = vadd.f32 %v3980_v49, %v1871_v43  ;;  %v1645_v30 = vmul.f32 %v3921_v17, %v4140_v59 }
 0x161   : > { %v1872_v14 = vadd.f32 %v4185_v0, %v1676_v31  ;;  %v1418_v3 = vadd.f32 %v2904_v63, %v1141_v45  ;;  %v1674_v39 = vadd.f32 %v4010_v61, %v1413_v1  ;;  %v1958_v54 = vpack.c.bf16 %v1937_v12, %v1936_v56  ;;  %v4600_v0 = vld [vmem:[#allocation47_spill] sm:$0xff] }
 0x162   : > { %v1373_v4 = vpop.f32.mrf.mxu0  ;;  %v1136_v28 = vadd.f32 %v1135_v36, %v4600_v0  ;;  %v1648_v25 = vmul.f32 %v3921_v17, %v4198_v62  ;;  %v1908_v55 = vadd.f32 %v3980_v49, %v1869_v24  ;;  %v1646_v20 = vmul.f32 %v3921_v17, %v4601_v44 }
 0x163   : > { %v1911_v19 = vadd.f32 %v3980_v49, %v1872_v14  ;;  %v1679_v51 = vadd.f32 %v1647_v21, %v1418_v3  ;;  %v1416_v10 = vadd.f32 %v1373_v4, %v1133_v57  ;;  %v1870_v35 = vadd.f32 %v1838_v34, %v1674_v39  ;;  %2934 = vmatprep.mubr.msk.bf16.mxu1 %vm704_vm0, %v1958_v54 }
 0x164   : > { %v2905_v61 = vpop.f32.mrf.mxu0  ;;  %v1942_v5 = vmax.f32 %v1910_v53, 0.0  ;;  %v1844_v62 = vmul.f32 %v3925_v48, %v1807_v46  ;;  %v1940_v32 = vmax.f32 %v1908_v55, 0.0  ;;  %v1842_v13 = vmul.f32 %v3925_v48, %v4211_v22 }
 0x165   : > { %v1943_v58 = vmax.f32 %v1911_v19, 0.0  ;;  %v1875_v40 = vadd.f32 %v1843_v42, %v1679_v51  ;;  %v1677_v16 = vadd.f32 %v1645_v30, %v1416_v10  ;;  %v1419_v59 = vadd.f32 %v2905_v61, %v1144_v60  ;;  %2935 = vmatmul.mubr.msk.bf16.gmra.mxu1 %vm704_vm0, %v1959_v52 }
 0x166   : > { %v1909_v26 = vadd.f32 %v3980_v49, %v1870_v35  ;;  %v1376_v11 = vpop.f32.mrf.mxu0  ;;  %v4311_v35 = vld [vmem:[%s4439_s9] ss:$0 sm:$0xff] }
 0x167   : > { %v1873_v50 = vadd.f32 %v4192_v37, %v1677_v16  ;;  %v1680_v47 = vadd.f32 %v1648_v25, %v1419_v59  ;;  %v1417_v8 = vadd.f32 %v1376_v11, %v1136_v28  ;;  %v1961_v18 = vpack.c.bf16 %v1943_v58, %v1942_v5 }
 0x168   : > { %v1941_v15 = vmax.f32 %v1909_v26, 0.0  ;;  %v1914_v2 = vadd.f32 %v3980_v49, %v1875_v40 }
 0x169   : > { %v1876_v33 = vadd.f32 %v1844_v62, %v1680_v47  ;;  %v1678_v17 = vadd.f32 %v1646_v20, %v1417_v8  ;;  %v1912_v27 = vadd.f32 %v3980_v49, %v1873_v50 }
 0x16a   : > { %v1960_v23 = vpack.c.bf16 %v1941_v15, %v1940_v32  ;;  %v1946_v37 = vmax.f32 %v1914_v2, 0.0 }
 0x16b   : > { %v1915_v45 = vadd.f32 %v3980_v49, %v1876_v33  ;;  %v1874_v9 = vadd.f32 %v1842_v13, %v1678_v17  ;;  %v1944_v29 = vmax.f32 %v1912_v27, 0.0 }
 0x16c   : > { %2938 = vmatprep.mubr.msk.bf16.mxu1 %vm704_vm0, %v1960_v23 }
 0x16d   : > { %v1947_v7 = vmax.f32 %v1915_v45, 0.0  ;;  %v1913_v43 = vadd.f32 %v3980_v49, %v1874_v9  ;;  %2939 = vmatmul.mubr.msk.bf16.gmra.mxu1 %vm704_vm0, %v1961_v18 }
 0x16f   : > { %v1945_v48 = vmax.f32 %v1913_v43, 0.0  ;;  %v1963_v22 = vpack.c.bf16 %v1947_v7, %v1946_v37 }
 0x171   : > { %v1962_v6 = vpack.c.bf16 %v1945_v48, %v1944_v29 }
 0x173   : > { %2942 = vmatprep.mubr.msk.bf16.mxu1 %vm704_vm0, %v1962_v6 }
 0x175   : > { %2943 = vmatmul.mubr.msk.bf16.gmra.mxu1 %vm704_vm0, %v1963_v22 }
 0x1fc   : > { %v4276_v57 = vpop.f32.mrf.mxu1 }
 0x1fe   : > { %v4280_v49 = vpop.f32.mrf.mxu1 }
 0x200   : > { %v4282_v38 = vpop.f32.mrf.mxu1 }
 0x202   : > { %v4284_v60 = vpop.f32.mrf.mxu1 }
 0x205   : > { %v4286_v12 = vpop.f32.mrf.mxu1 }
 0x207   : > { %v4288_v31 = vpop.f32.mrf.mxu1 }
 0x209   : > { %v4290_v56 = vpop.f32.mrf.mxu1 }
 0x20b   : > { %v4292_v24 = vpop.f32.mrf.mxu1 }
 0x20d   : > { %v2924_v1 = vpop.f32.mrf.mxu1 }
 0x20e   : > { %v2126_v27 = vadd.f32 %v2924_v1, %v4311_v35 }
 0x20f   : > { %v4294_v63 = vpop.f32.mrf.mxu1 }
 0x210   : > { %v2222_v7 = vmax.f32 %v2126_v27, 0.0  ;;  %v2118_v22 = vadd.f32 %v4311_v35, %v4294_v63  ;;  %v2110_v63 = vadd.f32 %v4286_v12, %v4311_v35  ;;  %v2102_v12 = vadd.f32 %v4311_v35, %v4288_v31 }
 0x211   : > { %v2925_v52 = vpop.f32.mrf.mxu1  ;;  %v2094_v31 = vadd.f32 %v4276_v57, %v4311_v35  ;;  %v2086_v57 = vadd.f32 %v4311_v35, %v4280_v49  ;;  %v2416_v49 = vstv %s2415_s22  ;;  %s3087_s22 = smov [#allocation3]  }
 0x212   : > { %v2129_v2 = vadd.f32 %v2925_v52, %v4311_v35  ;;  %s3026_s0 = sshll.u32 %s3087_s22, 4  ;;  %s3027_s0 = int_to_ptr.vmem [resolvable:$false] %s3026_s0 }
 0x213   : > { %v2120_v36 = vpop.f32.mrf.mxu1  ;;  %s3028_s17 = scalar_lea.vmem %s3027_s0, 64  ;;  %p3029_p0 = scmp.lt.s32.totalorder %s2458_s27, %s3027_s0 }
 0x214   : > { %v2223_v45 = vmax.f32 %v2129_v2, 0.0  ;;  %v2121_v43 = vadd.f32 %v4311_v35, %v2120_v36  ;;  %v2113_v36 = vadd.f32 %v4290_v56, %v4311_v35  ;;  %v2218_v56 = vmax.f32 %v2110_v63, 0.0  ;;  %p3030_p1 = scmp.lt.s32.totalorder %s3028_s17, %s3022_s20 }
 0x215   : > { %v2928_v21 = vpop.f32.mrf.mxu1 }
 0x216   : > { %v2142_v20 = vadd.f32 %v2928_v21, %v4311_v35  ;;  %v2221_v6 = vmax.f32 %v2121_v43, 0.0  ;;  %v2220_v21 = vmax.f32 %v2118_v22, 0.0  ;;  %p3031_p2 = por %p3030_p1, %p3029_p0 }
 0x217   : > { %v2133_v14 = vpop.f32.mrf.mxu1 }
 0x218   : > { %v2226_v62 = vmax.f32 %v2142_v20, 0.0  ;;  %v2134_v32 = vadd.f32 %v4311_v35, %v2133_v14  ;;  %v2212_v20 = vmax.f32 %v2086_v57, 0.0  ;;  %p3032_p3 = pnand %p3031_p2, %p3025_p13 }
 0x219   : > { %v2929_v3 = vpop.f32.mrf.mxu1 }
 0x21a   : > { %v2145_v61 = vadd.f32 %v2929_v3, %v4311_v35  ;;  %v2224_v33 = vmax.f32 %v2134_v32, 0.0 }
 0x21b   : > { %v2136_v42 = vpop.f32.mrf.mxu1 }
 0x21c   : > { %v2227_v5 = vmax.f32 %v2145_v61, 0.0  ;;  %v2137_v50 = vadd.f32 %v4311_v35, %v2136_v42  ;;  %v2219_v42 = vmax.f32 %v2113_v36, 0.0 }
 0x21d   : > { %v4296_v34 = vpop.f32.mrf.mxu1 }
 0x21e   : > { %v2225_v15 = vmax.f32 %v2137_v50, 0.0  ;;  %v4602_v50 = vld [vmem:[#allocation37_spill] sm:$0xff] }
 0x21f   : > { %v4298_v53 = vpop.f32.mrf.mxu1 }
 0x221   : > { %v4300_v39 = vpop.f32.mrf.mxu1 }
 0x223   : > { %v4302_v4 = vpop.f32.mrf.mxu1 }
 0x225   : > { %v2936_v54 = vpop.f32.mrf.mxu1 }
 0x226   : > { %v2174_v14 = vadd.f32 %v2936_v54, %v4311_v35  ;;  %v2105_v54 = vadd.f32 %v4311_v35, %v4292_v24  ;;  %v2097_v24 = vadd.f32 %v4282_v38, %v4311_v35  ;;  %v2214_v38 = vmax.f32 %v2094_v31, 0.0 }
 0x227   : > { %v4304_v30 = vpop.f32.mrf.mxu1 }
 0x229   : > { %v2937_v19 = vpop.f32.mrf.mxu1 }
 0x22a   : > { %v2177_v1 = vadd.f32 %v2937_v19, %v4311_v35  ;;  %v2234_v19 = vmax.f32 %v2174_v14, 0.0 }
 0x22b   : > { %v4306_v51 = vpop.f32.mrf.mxu1 }
 0x22c   : > { %v2235_v3 = vmax.f32 %v2177_v1, 0.0 }
 0x22d   : > { %v2940_v10 = vpop.f32.mrf.mxu1 }
 0x22e   : > { %v2190_v17 = vadd.f32 %v2940_v10, %v4311_v35  ;;  %v2169_v10 = vadd.f32 %v4311_v35, %v4306_v51  ;;  %v2217_v51 = vmax.f32 %v2105_v54, 0.0 }
 0x22f   : > { %v2181_v0 = vpop.f32.mrf.mxu1 }
 0x230   : > { %v2238_v9 = vmax.f32 %v2190_v17, 0.0  ;;  %v2182_v29 = vadd.f32 %v4311_v35, %v2181_v0  ;;  %v2166_v0 = vadd.f32 %v4311_v35, %v4304_v30  ;;  %v2216_v30 = vmax.f32 %v2102_v12, 0.0 }
 0x231   : > { %v2941_v28 = vpop.f32.mrf.mxu1 }
 0x232   : > { %v2193_v18 = vadd.f32 %v2941_v28, %v4311_v35  ;;  %v2236_v52 = vmax.f32 %v2182_v29, 0.0  ;;  %v2233_v28 = vmax.f32 %v2169_v10, 0.0 }
 0x233   : > { %v2184_v46 = vpop.f32.mrf.mxu1 }
 0x234   : > { %v2239_v23 = vmax.f32 %v2193_v18, 0.0  ;;  %v2185_v37 = vadd.f32 %v4311_v35, %v2184_v46  ;;  %v2161_v46 = vadd.f32 %v4300_v39, %v4311_v35  ;;  %v2215_v39 = vmax.f32 %v2097_v24, 0.0 }
 0x235   : > { %v2944_v25 = vpop.f32.mrf.mxu1 }
 0x236   : > { %v2206_v40 = vadd.f32 %v2944_v25, %v4311_v35  ;;  %v2237_v48 = vmax.f32 %v2185_v37, 0.0  ;;  %v2232_v25 = vmax.f32 %v2166_v0, 0.0  ;;  %v2231_v61 = vmax.f32 %v2161_v46, 0.0 }
 0x237   : > { %v2197_v55 = vpop.f32.mrf.mxu1 }
 0x238   : > { %v2242_v26 = vmax.f32 %v2206_v40, 0.0  ;;  %v2198_v47 = vadd.f32 %v4311_v35, %v2197_v55  ;;  %v2158_v55 = vadd.f32 %v4296_v34, %v4311_v35  ;;  %v2153_v40 = vadd.f32 %v4311_v35, %v4302_v4 }
 0x239   : > { %v2945_v58 = vpop.f32.mrf.mxu1  ;;  %v2089_v34 = vadd.f32 %v4311_v35, %v4284_v60  ;;  %v3086_v60 = vmov 1966171168  }
 0x23a   : > { %v2209_v16 = vadd.f32 %v2945_v58, %v4311_v35  ;;  %v2240_v13 = vmax.f32 %v2198_v47, 0.0  ;;  %v2230_v58 = vmax.f32 %v2158_v55, 0.0 }
 0x23b   : > { %v2200_v59 = vpop.f32.mrf.mxu1  ;;  %v2213_v4 = vmax.f32 %v2089_v34, 0.0 }
 0x23c   : > { %v2243_v44 = vmax.f32 %v2209_v16, 0.0  ;;  %v2201_v11 = vadd.f32 %v4311_v35, %v2200_v59  ;;  %v2150_v16 = vadd.f32 %v4311_v35, %v4298_v53  ;;  %v2229_v59 = vmax.f32 %v2153_v40, 0.0 }
 0x23d   : > { %v2423_v53 = vunpack.c.l.s4 %v3086_v60 }
 0x23e   : > { %2752 = vmatprep.subr.msk.mxu0 %vm704_vm0, %v2243_v44  ;;  %v2241_v8 = vmax.f32 %v2201_v11, 0.0  ;;  %v2228_v44 = vmax.f32 %v2150_v16, 0.0 }
 0x23f   : > { %2753 = vmatpush3.xpose.msk.msra.mxu0 %vm704_vm0, %v2227_v5  ;;  %v2424_v5 = vunpack.c.0.s8 %v2423_v53 }
 0x240   : > { %2754 = vmatprep.subr.msk.mxu0 %vm704_vm0, %v2242_v26 }
 0x241   : > { %v2427_v47 = vsub.s32 %v2424_v5, %v4602_v50 }
 0x243   : > { %2755 = vmatpush3.xpose.msk.msra.mxu0 %vm704_vm0, %v2226_v62 }
 0x244   : > { %2756 = vmatprep.subr.msk.mxu0 %vm704_vm0, %v2241_v8 }
 0x247   : > { %2757 = vmatpush3.xpose.msk.msra.mxu0 %vm704_vm0, %v2225_v15 }
 0x248   : > { %2758 = vmatprep.subr.msk.mxu0 %vm704_vm0, %v2240_v13 }
 0x24b   : > { %2759 = vmatpush3.xpose.msk.msra.mxu0 %vm704_vm0, %v2224_v33 }
 0x24c   : > { %2760 = vmatprep.subr.msk.mxu0 %vm704_vm0, %v2239_v23 }
 0x24f   : > { %2761 = vmatpush3.xpose.msk.msra.mxu0 %vm704_vm0, %v2223_v45 }
 0x250   : > { %2762 = vmatprep.subr.msk.mxu0 %vm704_vm0, %v2238_v9 }
 0x253   : > { %2763 = vmatpush3.xpose.msk.msra.mxu0 %vm704_vm0, %v2222_v7 }
 0x254   : > { %2764 = vmatprep.subr.msk.mxu0 %vm704_vm0, %v2237_v48 }
 0x257   : > { %2765 = vmatpush3.xpose.msk.msra.mxu0 %vm704_vm0, %v2221_v6 }
 0x258   : > { %2766 = vmatprep.subr.msk.mxu0 %vm704_vm0, %v2236_v52 }
 0x25b   : > { %2767 = vmatpush3.xpose.msk.msra.mxu0 %vm704_vm0, %v2220_v21 }
 0x25c   : > { %2768 = vmatprep.subr.msk.mxu0 %vm704_vm0, %v2235_v3 }
 0x25f   : > { %2769 = vmatpush3.xpose.msk.msra.mxu0 %vm704_vm0, %v2219_v42 }
 0x260   : > { %2770 = vmatprep.subr.msk.mxu0 %vm704_vm0, %v2234_v19 }
 0x263   : > { %2771 = vmatpush3.xpose.msk.msra.mxu0 %vm704_vm0, %v2218_v56 }
 0x264   : > { %2772 = vmatprep.subr.msk.mxu0 %vm704_vm0, %v2233_v28 }
 0x267   : > { %2773 = vmatpush3.xpose.msk.msra.mxu0 %vm704_vm0, %v2217_v51 }
 0x268   : > { %2774 = vmatprep.subr.msk.mxu0 %vm704_vm0, %v2232_v25 }
 0x26b   : > { %2775 = vmatpush3.xpose.msk.msra.mxu0 %vm704_vm0, %v2216_v30 }
 0x26c   : > { %2776 = vmatprep.subr.msk.mxu0 %vm704_vm0, %v2231_v61 }
 0x26f   : > { %2777 = vmatpush3.xpose.msk.msra.mxu0 %vm704_vm0, %v2215_v39 }
 0x270   : > { %2778 = vmatprep.subr.msk.mxu0 %vm704_vm0, %v2230_v58 }
 0x273   : > { %2779 = vmatpush3.xpose.msk.msra.mxu0 %vm704_vm0, %v2214_v38 }
 0x274   : > { %2780 = vmatprep.subr.msk.mxu0 %vm704_vm0, %v2229_v59 }
 0x277   : > { %2781 = vmatpush3.xpose.msk.msra.mxu0 %vm704_vm0, %v2213_v4 }
 0x278   : > { %2782 = vmatprep.subr.msk.mxu0 %vm704_vm0, %v2228_v44 }
 0x27b   : > { %2783 = vmatpush3.xpose.msk.msra.mxu0 %vm704_vm0, %v2212_v20 }
 0x27e   : > { %2785 = vmatmul.mubr.msk.f32.vlgmr.msra.gmra.mxu0 %vm704_vm0, %v4274_v41  ;;  %v4603_v41 = vlaneseq }
 0x280   : > { %vm2439_vm1 = vcmp.lt.s32.totalorder %v4603_v41, 256 }
 0x33e   : > { %v2410_v26 = vpop.f32.mrf.mxu0 }
 0x33f   : > { %v2417_v11 = vadd.f32 %v2416_v49, %v2410_v26 }
 0x340   : > { %v2412_v35 = vpop.f32.mrf.mxu0 }
 0x341   : > { %v2418_v62 = vadd.f32 %v2416_v49, %v2412_v35 }
 0x343   : > { %v2421_v8 = vcombine.low %v2417_v11, %v2418_v62 }
 0x345   : > { %v2428_v32 = vrot.slane %v2421_v8, %v2427_v47 }
 0x347   : > { %v2435_v15 = vrot.slane %v2428_v32, %v2427_v47 }
 0x349   : > { %2441 = vst.msk [vmem:[%s476_s30] sm:$0x3] %vm2439_vm1, %v2435_v15 }
 0x34a   : > { %3035 = shalt.err (!%p3032_p3)
}
 0x34b   : > { %s3036_s1 = scalar_lea.hbm %s2455_s19, 32  ;;  %s3040_s30 = scalar_lea.hbm %s4442_s12, 64 }
 0x34c   : > { %p3037_p4 = scmp.ne.s32.totalorder %s2455_s19, %s3036_s1  ;;  %p3041_p9 = scmp.lt.s32.totalorder %s2455_s19, %s4442_s12 }
 0x34d   : > { %p3042_p10 = scmp.lt.s32.totalorder %s3040_s30, %s3036_s1 }
 0x34e   : > { %p3038_p7 = pnand %p3037_p4, %p3191_p5 }
 0x34f   : > { %p3043_p11 = por %p3042_p10, %p3041_p9 }
 0x350   : > { %p3039_p8 = pneg %p3038_p7 }
 0x352   : > { %p3044_p12 = pnand %p3043_p11, %p3039_p8 }
 0x354   : > { %3047 = shalt.err (!%p3044_p12)
}
 0x355   : > { %2946 = dma.vmem_to_hbm [thread:$0]  (%p3191_p5), %s2458_s27, 32, %s2455_s19, %s2443_s21  }
 0x356 PF: > { %p2952_p13 = scmp.ge.s32.totalorder %s3082_s26, 2  ;;  %s2469_s0 = sand.u32 1, %s3070_s23  }
 0x357   : > { %s2470_s20 = scalar_lea.sflag [#allocation4], %s2469_s0 }
 0x358   : > { %p2949_p0 = pnand %p2952_p13, %p3195_p6 }
 0x35a   : > { %p2950_p1 = pneg %p2949_p0 }
 0x35c   : > { %3065 = dma.done.wait (%p2950_p1), %s2470_s20, 32  }
 0x35d   : > { %3067 = vsyncadd (%p2950_p1), %s2470_s20, 4294967264  ;;  %p23_p2 = scmp.ge.s32.totalorder %s3179_s28, 4   ;;  %s4604_s23 = smov %s3074_s24 }
 0x35e   : > { %s4605_s24 = smov %s3078_s25  ;;  %s4606_s25 = smov %s3189_s13 }
 0x35f   : > { %s4607_s26 = smov %s3179_s28  ;;  %25 = sbr.rel (!%p23_p2) target bundleno = 7 (0x7), region = 109 }
 0x364   :  { %2475 = vsyncpa [#allocation4], 1 }
 0x365   :  { %2477 = vsyncpa [#allocation4 + $0x1], 1 }

</bundles_post_ra>
